<compile_context>
chip_gen: v7x
topology: tpu7x:2x2x1
jax: 0.10.0
libtpu: 0.0.40
codegen_flags: <defaults>
</compile_context>

<pallas_src>
import functools
import numpy as np

import jax
import jax.numpy as jnp
from jax.experimental import pallas as pl
from jax.experimental.pallas import tpu as pltpu


def _layer_norm(x, w, b, eps=1e-5):
    mu = jnp.mean(x, axis=-1, keepdims=True)
    var = jnp.mean((x - mu) ** 2, axis=-1, keepdims=True)
    return (x - mu) * jax.lax.rsqrt(var + eps) * w + b


# --------------------------------------------------------------------------
# encoder stack: one pallas_call, grid over layers, weights double-buffered
# --------------------------------------------------------------------------
def encoder_stack_kernel(x_ref, wqkv_ref, bqkv_ref, wo_ref, bo_ref,
                         ln1w_ref, ln1b_ref, w1_ref, b1_ref, w2_ref, b2_ref,
                         ln2w_ref, ln2b_ref, o_ref, *, num_heads):
    layer = pl.program_id(0)

    # Output block index is constant across the layer axis, so o_ref stays
    # resident in VMEM for the whole grid: use it as the carried activation.
    @pl.when(layer == 0)
    def _():
        o_ref[...] = x_ref[...]

    x = o_ref[...]                                    # (L, E) carried activation
    L, E = x.shape
    Dh = E // num_heads
    scale = 1.0 / float(np.sqrt(Dh))

    # fused QKV projection: one (L, E) x (E, 3E) MXU matmul
    qkv = jnp.dot(x, wqkv_ref[...],
                  preferred_element_type=jnp.float32) + bqkv_ref[...]
    q_all = qkv[:, :E] * scale                        # fold 1/sqrt(Dh) into q
    wo = wo_ref[...]                                  # (E, E)

    # multi-head attention over the L (= batch) axis.  L and Dh are tiny and
    # the layer is weight-DMA bound, so a statically unrolled head loop with
    # the output projection folded per head stays off the critical path.
    mha = jnp.zeros((L, E), jnp.float32)
    for h in range(num_heads):
        q_h = q_all[:, h * Dh:(h + 1) * Dh]                       # (L, Dh)
        k_h = qkv[:, E + h * Dh:E + (h + 1) * Dh]                 # (L, Dh)
        v_h = qkv[:, 2 * E + h * Dh:2 * E + (h + 1) * Dh]         # (L, Dh)
        s_h = jnp.einsum('qd,kd->qk', q_h, k_h,
                         preferred_element_type=jnp.float32)      # (L, L)
        s_h = s_h - jnp.max(s_h, axis=-1, keepdims=True)
        p_h = jnp.exp(s_h)
        p_h = p_h * pl.reciprocal(jnp.sum(p_h, axis=-1, keepdims=True),
                                  approx=True)
        o_h = jnp.dot(p_h, v_h, preferred_element_type=jnp.float32)
        mha = mha + jnp.dot(o_h, wo[h * Dh:(h + 1) * Dh, :],
                            preferred_element_type=jnp.float32)
    mha = mha + bo_ref[...]

    h1 = _layer_norm(x + mha, ln1w_ref[...], ln1b_ref[...])

    # position-wise FFN: linear -> ReLU -> linear, 2-D MXU matmuls
    ff = jnp.dot(h1, w1_ref[...],
                 preferred_element_type=jnp.float32) + b1_ref[...]
    ff = jnp.maximum(ff, 0.0)
    ff = jnp.dot(ff, w2_ref[...],
                 preferred_element_type=jnp.float32) + b2_ref[...]

    o_ref[...] = _layer_norm(h1 + ff, ln2w_ref[...], ln2b_ref[...])


def encoder_stack(x_last, params, num_heads):
    L, E = x_last.shape
    n_layers = params['wqkv'].shape[0]
    FF = params['w1'].shape[2]

    def resident(shape):                      # DMA'd once, stays in VMEM
        n = len(shape)
        return pl.BlockSpec(shape, lambda l, n=n: (0,) * n)

    def per_layer(shape):                     # layer-l slab, double-buffered
        n = len(shape)
        return pl.BlockSpec((None,) + shape, lambda l, n=n: (l,) + (0,) * n)

    grid_spec = pltpu.PrefetchScalarGridSpec(
        num_scalar_prefetch=0,
        grid=(n_layers,),
        in_specs=[
            resident((L, E)),
            per_layer((E, 3 * E)), per_layer((1, 3 * E)),
            per_layer((E, E)), per_layer((1, E)),
            per_layer((1, E)), per_layer((1, E)),
            per_layer((E, FF)), per_layer((1, FF)),
            per_layer((FF, E)), per_layer((1, E)),
            per_layer((1, E)), per_layer((1, E)),
        ],
        out_specs=resident((L, E)),
    )
    return pl.pallas_call(
        functools.partial(encoder_stack_kernel, num_heads=num_heads),
        out_shape=jax.ShapeDtypeStruct((L, E), jnp.float32),
        grid_spec=grid_spec,
        compiler_params=pltpu.CompilerParams(
            # layer axis is a carried dependency -> arbitrary (sequential).
            dimension_semantics=("arbitrary",),
            # ~2.1 MB/layer of weights x 2 buffers + tiny activations: far
            # under this limit on every chip generation (incl. v7x 64 MiB).
            vmem_limit_bytes=32 * 1024 * 1024),
    )(x_last, params['wqkv'], params['bqkv'], params['wo'], params['bo'],
      params['ln1w'], params['ln1b'], params['w1'], params['b1'],
      params['w2'], params['b2'], params['ln2w'], params['ln2b'])


# --------------------------------------------------------------------------
# classifier: grid over the vocab axis, lane-dense output tiles
# --------------------------------------------------------------------------
def fc_kernel(x_ref, w_ref, b_ref, o_ref):
    o_ref[...] = (jnp.dot(x_ref[...], w_ref[...],
                          preferred_element_type=jnp.float32) + b_ref[...])


def fc_apply(x, w, b, tile_v=128):
    B, E = x.shape
    V = w.shape[1]
    tv = min(tile_v, V)
    return pl.pallas_call(
        fc_kernel,
        out_shape=jax.ShapeDtypeStruct((B, V), jnp.float32),
        grid_spec=pltpu.PrefetchScalarGridSpec(
            num_scalar_prefetch=0,
            grid=(pl.cdiv(V, tv),),
            in_specs=[pl.BlockSpec((B, E), lambda j: (0, 0)),
                      pl.BlockSpec((E, tv), lambda j: (0, j)),
                      pl.BlockSpec((1, tv), lambda j: (0, j))],
            out_specs=pl.BlockSpec((B, tv), lambda j: (0, j))),
        compiler_params=pltpu.CompilerParams(
            dimension_semantics=("parallel",)),
    )(x, w, b)


# --------------------------------------------------------------------------
# params / wrapper
# --------------------------------------------------------------------------
def positional_encoding(max_seq_length, embedding_dim):
    pos = np.arange(max_seq_length)[:, np.newaxis]
    div_term = np.exp(np.arange(0, embedding_dim, 2) *
                      -(np.log(10000.0) / embedding_dim))
    pe = np.zeros((max_seq_length, embedding_dim), dtype=np.float32)
    pe[:, 0::2] = np.sin(pos * div_term)
    pe[:, 1::2] = np.cos(pos * div_term)
    return jnp.asarray(pe)


def init_params(key, vocab_size, E, FF, n_layers, max_seq_len):
    keys = jax.random.split(key, 15)
    nrm = lambda k, s, sc: sc * jax.random.normal(k, s, jnp.float32)
    stk = lambda k, s, sc: sc * jax.random.normal(k, (n_layers,) + s, jnp.float32)
    return {
        'embedding': nrm(keys[0], (vocab_size, E), 0.1),
        'pos_enc': positional_encoding(max_seq_len, E),
        'fc_w': nrm(keys[1], (E, vocab_size), 0.05),
        'fc_b': nrm(keys[2], (1, vocab_size), 0.02),
        # per-layer weights stacked on a leading layer axis
        'wqkv': stk(keys[3], (E, 3 * E), 0.05),
        'bqkv': stk(keys[4], (1, 3 * E), 0.02),
        'wo':   stk(keys[5], (E, E), 0.05),
        'bo':   stk(keys[6], (1, E), 0.02),
        'ln1w': 1.0 + stk(keys[7], (1, E), 0.1),
        'ln1b': stk(keys[8], (1, E), 0.05),
        'w1':   stk(keys[9], (E, FF), 0.05),
        'b1':   stk(keys[10], (1, FF), 0.02),
        'w2':   stk(keys[11], (FF, E), 0.05),
        'b2':   stk(keys[12], (1, E), 0.02),
        'ln2w': 1.0 + stk(keys[13], (1, E), 0.1),
        'ln2b': stk(keys[14], (1, E), 0.05),
    }


def forward(token_ids, params, num_heads):
    S = token_ids.shape[1]
    # Only position S-1 feeds the classifier (the original model's attention
    # mixes across the batch axis per position; all other ops are
    # position-wise), so the encoder stack only needs that slice.
    # TODO(synk): embedding gather stays in plain JAX (data-dependent gather).
    x_last = jnp.take(params['embedding'], token_ids[:, S - 1], axis=0)   # (B, E)
    x_last = x_last + params['pos_enc'][S - 1, :]
    h = encoder_stack(x_last, params, num_heads)                          # (B, E)
    return fc_apply(h, params['fc_w'], params['fc_b'])                    # (B, V)


# --------------------------------------------------------------------------
# pure-JAX full-sequence reference (same math, no last-position trim)
# --------------------------------------------------------------------------
_LAYER_KEYS = ('wqkv', 'bqkv', 'wo', 'bo', 'ln1w', 'ln1b',
               'w1', 'b1', 'w2', 'b2', 'ln2w', 'ln2b')


def _ref_layer(x, lp, H):
    N, L, E = x.shape
    Dh = E // H
    qkv = jnp.einsum('nle,ef->nlf', x, lp['wqkv']) + lp['bqkv']
    q = qkv[..., :E].reshape(N, L, H, Dh)
    k = qkv[..., E:2 * E].reshape(N, L, H, Dh)
    v = qkv[..., 2 * E:].reshape(N, L, H, Dh)
    s = jnp.einsum('nqhd,nkhd->nhqk', q, k) / np.sqrt(Dh)
    p = jax.nn.softmax(s, axis=-1)
    o = jnp.einsum('nhqk,nkhd->nqhd', p, v).reshape(N, L, E)
    mha = jnp.einsum('nle,ef->nlf', o, lp['wo']) + lp['bo']
    h1 = _layer_norm(x + mha, lp['ln1w'], lp['ln1b'])
    ff = jnp.maximum(jnp.einsum('nle,ef->nlf', h1, lp['w1']) + lp['b1'], 0.0)
    ff = jnp.einsum('nlf,fe->nle', ff, lp['w2']) + lp['b2']
    return _layer_norm(h1 + ff, lp['ln2w'], lp['ln2b'])


def ref_forward(token_ids, params, num_heads):
    emb = jnp.take(params['embedding'], token_ids, axis=0)          # (B, S, E)
    h = emb + params['pos_enc'][:token_ids.shape[1], :]
    h = jnp.transpose(h, (1, 0, 2))                                 # (S, B, E)
    for l in range(params['wqkv'].shape[0]):
        lp = {k: params[k][l] for k in _LAYER_KEYS}
        h = _ref_layer(h, lp, num_heads)
    h = jnp.transpose(h, (1, 0, 2))                                 # (B, S, E)
    return jnp.dot(h[:, -1, :], params['fc_w']) + params['fc_b']


# --------------------------------------------------------------------------
if __name__ == "__main__":
    # spec constants: embedding_dim=256, num_heads=16, num_layers=12;
    # vocab / hidden_dim / batch / seq kept small+synthetic.
    B, S = 2, 8
    E, H, FF, LAYERS, VOCAB, MAXLEN = 256, 16, 512, 12, 32, 16

    key = jax.random.PRNGKey(0)
    pkey, xkey = jax.random.split(key)
    params = init_params(pkey, VOCAB, E, FF, LAYERS, MAXLEN)
    x = jax.random.randint(xkey, (B, S), 0, VOCAB, dtype=jnp.int32)

    out = jax.block_until_ready(forward(x, params, H))
    ref = jax.block_until_ready(ref_forward(x, params, H))

    assert out.shape == (B, VOCAB)
    assert bool(jnp.all(jnp.isfinite(out)))
    err = float(jnp.max(jnp.abs(out - ref)))
    assert err < 2e-2, f"kernel/reference mismatch: {err}"

    print("KERNEL_OK")
</pallas_src>

<mosaic_0001>
module attributes {stable_mosaic.version = 11 : i64} {
  func.func @encoder_stack_kernel(%arg0: i32, %arg1: memref<2x256xf32, #tpu.memory_space<vmem>>, %arg2: memref<1x256x768xf32, #tpu.memory_space<vmem>>, %arg3: memref<1x1x768xf32, #tpu.memory_space<vmem>>, %arg4: memref<1x256x256xf32, #tpu.memory_space<vmem>>, %arg5: memref<1x1x256xf32, #tpu.memory_space<vmem>>, %arg6: memref<1x1x256xf32, #tpu.memory_space<vmem>>, %arg7: memref<1x1x256xf32, #tpu.memory_space<vmem>>, %arg8: memref<1x256x512xf32, #tpu.memory_space<vmem>>, %arg9: memref<1x1x512xf32, #tpu.memory_space<vmem>>, %arg10: memref<1x512x256xf32, #tpu.memory_space<vmem>>, %arg11: memref<1x1x256xf32, #tpu.memory_space<vmem>>, %arg12: memref<1x1x256xf32, #tpu.memory_space<vmem>>, %arg13: memref<1x1x256xf32, #tpu.memory_space<vmem>>, %arg14: memref<2x256xf32, #tpu.memory_space<vmem>>) attributes {dimension_semantics = [#tpu.dimension_semantics<arbitrary>], iteration_bounds = array<i64: 12>, scalar_prefetch = 0 : i64, scratch_operands = 0 : i64, tpu.core_type = #tpu.core_type<tc>, window_params = [{pipeline_mode = #tpu.pipeline_mode<synchronous>, transform_indices = @transform_0, window_bounds = array<i64: 2, 256>}, {transform_indices = @transform_1, window_bounds = array<i64: 1, 256, 768>}, {transform_indices = @transform_2, window_bounds = array<i64: 1, 1, 768>}, {transform_indices = @transform_3, window_bounds = array<i64: 1, 256, 256>}, {transform_indices = @transform_4, window_bounds = array<i64: 1, 1, 256>}, {transform_indices = @transform_5, window_bounds = array<i64: 1, 1, 256>}, {transform_indices = @transform_6, window_bounds = array<i64: 1, 1, 256>}, {transform_indices = @transform_7, window_bounds = array<i64: 1, 256, 512>}, {transform_indices = @transform_8, window_bounds = array<i64: 1, 1, 512>}, {transform_indices = @transform_9, window_bounds = array<i64: 1, 512, 256>}, {transform_indices = @transform_10, window_bounds = array<i64: 1, 1, 256>}, {transform_indices = @transform_11, window_bounds = array<i64: 1, 1, 256>}, {transform_indices = @transform_12, window_bounds = array<i64: 1, 1, 256>}, {pipeline_mode = #tpu.pipeline_mode<synchronous>, transform_indices = @transform_13, window_bounds = array<i64: 2, 256>}]} {
    %c0_i32 = arith.constant 0 : i32
    %0 = arith.cmpi eq, %arg0, %c0_i32 : i32
    %1 = arith.extui %0 : i1 to i32
    %c0_i32_0 = arith.constant 0 : i32
    %2 = arith.cmpi ne, %1, %c0_i32_0 : i32
    scf.if %2 {
      %c0_135 = arith.constant 0 : index
      %c0_136 = arith.constant 0 : index
      %380 = vector.load %arg1[%c0_135, %c0_136] : memref<2x256xf32, #tpu.memory_space<vmem>>, vector<2x256xf32>
      %c0_137 = arith.constant 0 : index
      %c0_138 = arith.constant 0 : index
      %381 = vector.load %arg14[%c0_137, %c0_138] : memref<2x256xf32, #tpu.memory_space<vmem>>, vector<2x256xf32>
      tpu.vector_store %arg14[%c0_137, %c0_138], %380 {strides = array<i32>} : memref<2x256xf32, #tpu.memory_space<vmem>>, vector<2x256xf32>,
    } else {
    }
    %c0 = arith.constant 0 : index
    %c0_1 = arith.constant 0 : index
    %3 = vector.load %arg14[%c0, %c0_1] : memref<2x256xf32, #tpu.memory_space<vmem>>, vector<2x256xf32>
    %c0_2 = arith.constant 0 : index
    %c0_3 = arith.constant 0 : index
    %c0_4 = arith.constant 0 : index
    %4 = vector.load %arg2[%c0_2, %c0_3, %c0_4] : memref<1x256x768xf32, #tpu.memory_space<vmem>>, vector<1x256x768xf32>
    %5 = vector.shape_cast %4 : vector<1x256x768xf32> to vector<256x768xf32>
    %cst = arith.constant dense<0.000000e+00> : vector<2x768xf32>
    %6 = tpu.matmul %3, %5, %cst {dimension_numbers = #tpu.dot_dimension_numbers<[1], [0], [0], [1], [0, 0, 1, 1], [], []>} : vector<2x256xf32>, vector<256x768xf32>, vector<2x768xf32> -> vector<2x768xf32>
    %c0_5 = arith.constant 0 : index
    %c0_6 = arith.constant 0 : index
    %c0_7 = arith.constant 0 : index
    %7 = vector.load %arg3[%c0_5, %c0_6, %c0_7] : memref<1x1x768xf32, #tpu.memory_space<vmem>>, vector<1x1x768xf32>
    %8 = vector.shape_cast %7 : vector<1x1x768xf32> to vector<1x768xf32>
    %9 = vector.broadcast %8 : vector<1x768xf32> to vector<2x768xf32>
    %10 = arith.addf %6, %9 : vector<2x768xf32>
    %11 = vector.extract_strided_slice %10 {offsets = [0, 0], sizes = [2, 256], strides = [1, 1]} : vector<2x768xf32> to vector<2x256xf32>
    %cst_8 = arith.constant 2.500000e-01 : f32
    %12 = vector.broadcast %cst_8 : f32 to vector<2x256xf32>
    %13 = arith.mulf %11, %12 : vector<2x256xf32>
    %c0_9 = arith.constant 0 : index
    %c0_10 = arith.constant 0 : index
    %c0_11 = arith.constant 0 : index
    %14 = vector.load %arg4[%c0_9, %c0_10, %c0_11] : memref<1x256x256xf32, #tpu.memory_space<vmem>>, vector<1x256x256xf32>
    %15 = vector.shape_cast %14 : vector<1x256x256xf32> to vector<256x256xf32>
    %cst_12 = arith.constant 0.000000e+00 : f32
    %16 = vector.broadcast %cst_12 : f32 to vector<2x256xf32>
    %17 = vector.extract_strided_slice %13 {offsets = [0, 0], sizes = [2, 16], strides = [1, 1]} : vector<2x256xf32> to vector<2x16xf32>
    %18 = vector.extract_strided_slice %10 {offsets = [0, 256], sizes = [2, 16], strides = [1, 1]} : vector<2x768xf32> to vector<2x16xf32>
    %19 = vector.extract_strided_slice %10 {offsets = [0, 512], sizes = [2, 16], strides = [1, 1]} : vector<2x768xf32> to vector<2x16xf32>
    "tpu.trace_start"() <{level = 10 : i32, message = "qd,kd->qk"}> : () -> ()
    %cst_13 = arith.constant dense<0.000000e+00> : vector<2x2xf32>
    %20 = tpu.matmul %17, %18, %cst_13 {dimension_numbers = #tpu.dot_dimension_numbers<[1], [1], [0], [0], [0, 0, 1, 0], [], []>} : vector<2x16xf32>, vector<2x16xf32>, vector<2x2xf32> -> vector<2x2xf32>
    "tpu.trace_stop"() : () -> ()
    %cst_14 = arith.constant dense<0xFF800000> : vector<2xf32>
    %21 = vector.multi_reduction <maximumf>, %20, %cst_14 [1] : vector<2x2xf32> to vector<2xf32>
    %22 = vector.shape_cast %21 : vector<2xf32> to vector<2x1xf32>
    %23 = vector.broadcast %22 : vector<2x1xf32> to vector<2x2xf32>
    %24 = arith.subf %20, %23 : vector<2x2xf32>
    %25 = math.exp %24 : vector<2x2xf32>
    %cst_15 = arith.constant dense<0.000000e+00> : vector<2xf32>
    %26 = vector.multi_reduction <add>, %25, %cst_15 [1] : vector<2x2xf32> to vector<2xf32>
    %27 = vector.shape_cast %26 : vector<2xf32> to vector<2x1xf32>
    %28 = tpu.reciprocal %27 {approx = true} : vector<2x1xf32> -> vector<2x1xf32>
    %29 = vector.broadcast %28 : vector<2x1xf32> to vector<2x2xf32>
    %30 = arith.mulf %25, %29 : vector<2x2xf32>
    %cst_16 = arith.constant dense<0.000000e+00> : vector<2x16xf32>
    %31 = tpu.matmul %30, %19, %cst_16 {dimension_numbers = #tpu.dot_dimension_numbers<[1], [0], [0], [1], [0, 0, 1, 1], [], []>} : vector<2x2xf32>, vector<2x16xf32>, vector<2x16xf32> -> vector<2x16xf32>
    %32 = vector.extract_strided_slice %15 {offsets = [0, 0], sizes = [16, 256], strides = [1, 1]} : vector<256x256xf32> to vector<16x256xf32>
    %cst_17 = arith.constant dense<0.000000e+00> : vector<2x256xf32>
    %33 = tpu.matmul %31, %32, %cst_17 {dimension_numbers = #tpu.dot_dimension_numbers<[1], [0], [0], [1], [0, 0, 1, 1], [], []>} : vector<2x16xf32>, vector<16x256xf32>, vector<2x256xf32> -> vector<2x256xf32>
    %34 = arith.addf %16, %33 : vector<2x256xf32>
    %35 = vector.extract_strided_slice %13 {offsets = [0, 16], sizes = [2, 16], strides = [1, 1]} : vector<2x256xf32> to vector<2x16xf32>
    %36 = vector.extract_strided_slice %10 {offsets = [0, 272], sizes = [2, 16], strides = [1, 1]} : vector<2x768xf32> to vector<2x16xf32>
    %37 = vector.extract_strided_slice %10 {offsets = [0, 528], sizes = [2, 16], strides = [1, 1]} : vector<2x768xf32> to vector<2x16xf32>
    "tpu.trace_start"() <{level = 10 : i32, message = "qd,kd->qk"}> : () -> ()
    %cst_18 = arith.constant dense<0.000000e+00> : vector<2x2xf32>
    %38 = tpu.matmul %35, %36, %cst_18 {dimension_numbers = #tpu.dot_dimension_numbers<[1], [1], [0], [0], [0, 0, 1, 0], [], []>} : vector<2x16xf32>, vector<2x16xf32>, vector<2x2xf32> -> vector<2x2xf32>
    "tpu.trace_stop"() : () -> ()
    %cst_19 = arith.constant dense<0xFF800000> : vector<2xf32>
    %39 = vector.multi_reduction <maximumf>, %38, %cst_19 [1] : vector<2x2xf32> to vector<2xf32>
    %40 = vector.shape_cast %39 : vector<2xf32> to vector<2x1xf32>
    %41 = vector.broadcast %40 : vector<2x1xf32> to vector<2x2xf32>
    %42 = arith.subf %38, %41 : vector<2x2xf32>
    %43 = math.exp %42 : vector<2x2xf32>
    %cst_20 = arith.constant dense<0.000000e+00> : vector<2xf32>
    %44 = vector.multi_reduction <add>, %43, %cst_20 [1] : vector<2x2xf32> to vector<2xf32>
    %45 = vector.shape_cast %44 : vector<2xf32> to vector<2x1xf32>
    %46 = tpu.reciprocal %45 {approx = true} : vector<2x1xf32> -> vector<2x1xf32>
    %47 = vector.broadcast %46 : vector<2x1xf32> to vector<2x2xf32>
    %48 = arith.mulf %43, %47 : vector<2x2xf32>
    %cst_21 = arith.constant dense<0.000000e+00> : vector<2x16xf32>
    %49 = tpu.matmul %48, %37, %cst_21 {dimension_numbers = #tpu.dot_dimension_numbers<[1], [0], [0], [1], [0, 0, 1, 1], [], []>} : vector<2x2xf32>, vector<2x16xf32>, vector<2x16xf32> -> vector<2x16xf32>
    %50 = vector.extract_strided_slice %15 {offsets = [16, 0], sizes = [16, 256], strides = [1, 1]} : vector<256x256xf32> to vector<16x256xf32>
    %cst_22 = arith.constant dense<0.000000e+00> : vector<2x256xf32>
    %51 = tpu.matmul %49, %50, %cst_22 {dimension_numbers = #tpu.dot_dimension_numbers<[1], [0], [0], [1], [0, 0, 1, 1], [], []>} : vector<2x16xf32>, vector<16x256xf32>, vector<2x256xf32> -> vector<2x256xf32>
    %52 = arith.addf %34, %51 : vector<2x256xf32>
    %53 = vector.extract_strided_slice %13 {offsets = [0, 32], sizes = [2, 16], strides = [1, 1]} : vector<2x256xf32> to vector<2x16xf32>
    %54 = vector.extract_strided_slice %10 {offsets = [0, 288], sizes = [2, 16], strides = [1, 1]} : vector<2x768xf32> to vector<2x16xf32>
    %55 = vector.extract_strided_slice %10 {offsets = [0, 544], sizes = [2, 16], strides = [1, 1]} : vector<2x768xf32> to vector<2x16xf32>
    "tpu.trace_start"() <{level = 10 : i32, message = "qd,kd->qk"}> : () -> ()
    %cst_23 = arith.constant dense<0.000000e+00> : vector<2x2xf32>
    %56 = tpu.matmul %53, %54, %cst_23 {dimension_numbers = #tpu.dot_dimension_numbers<[1], [1], [0], [0], [0, 0, 1, 0], [], []>} : vector<2x16xf32>, vector<2x16xf32>, vector<2x2xf32> -> vector<2x2xf32>
    "tpu.trace_stop"() : () -> ()
    %cst_24 = arith.constant dense<0xFF800000> : vector<2xf32>
    %57 = vector.multi_reduction <maximumf>, %56, %cst_24 [1] : vector<2x2xf32> to vector<2xf32>
    %58 = vector.shape_cast %57 : vector<2xf32> to vector<2x1xf32>
    %59 = vector.broadcast %58 : vector<2x1xf32> to vector<2x2xf32>
    %60 = arith.subf %56, %59 : vector<2x2xf32>
    %61 = math.exp %60 : vector<2x2xf32>
    %cst_25 = arith.constant dense<0.000000e+00> : vector<2xf32>
    %62 = vector.multi_reduction <add>, %61, %cst_25 [1] : vector<2x2xf32> to vector<2xf32>
    %63 = vector.shape_cast %62 : vector<2xf32> to vector<2x1xf32>
    %64 = tpu.reciprocal %63 {approx = true} : vector<2x1xf32> -> vector<2x1xf32>
    %65 = vector.broadcast %64 : vector<2x1xf32> to vector<2x2xf32>
    %66 = arith.mulf %61, %65 : vector<2x2xf32>
    %cst_26 = arith.constant dense<0.000000e+00> : vector<2x16xf32>
    %67 = tpu.matmul %66, %55, %cst_26 {dimension_numbers = #tpu.dot_dimension_numbers<[1], [0], [0], [1], [0, 0, 1, 1], [], []>} : vector<2x2xf32>, vector<2x16xf32>, vector<2x16xf32> -> vector<2x16xf32>
    %68 = vector.extract_strided_slice %15 {offsets = [32, 0], sizes = [16, 256], strides = [1, 1]} : vector<256x256xf32> to vector<16x256xf32>
    %cst_27 = arith.constant dense<0.000000e+00> : vector<2x256xf32>
    %69 = tpu.matmul %67, %68, %cst_27 {dimension_numbers = #tpu.dot_dimension_numbers<[1], [0], [0], [1], [0, 0, 1, 1], [], []>} : vector<2x16xf32>, vector<16x256xf32>, vector<2x256xf32> -> vector<2x256xf32>
    %70 = arith.addf %52, %69 : vector<2x256xf32>
    %71 = vector.extract_strided_slice %13 {offsets = [0, 48], sizes = [2, 16], strides = [1, 1]} : vector<2x256xf32> to vector<2x16xf32>
    %72 = vector.extract_strided_slice %10 {offsets = [0, 304], sizes = [2, 16], strides = [1, 1]} : vector<2x768xf32> to vector<2x16xf32>
    %73 = vector.extract_strided_slice %10 {offsets = [0, 560], sizes = [2, 16], strides = [1, 1]} : vector<2x768xf32> to vector<2x16xf32>
    "tpu.trace_start"() <{level = 10 : i32, message = "qd,kd->qk"}> : () -> ()
    %cst_28 = arith.constant dense<0.000000e+00> : vector<2x2xf32>
    %74 = tpu.matmul %71, %72, %cst_28 {dimension_numbers = #tpu.dot_dimension_numbers<[1], [1], [0], [0], [0, 0, 1, 0], [], []>} : vector<2x16xf32>, vector<2x16xf32>, vector<2x2xf32> -> vector<2x2xf32>
    "tpu.trace_stop"() : () -> ()
    %cst_29 = arith.constant dense<0xFF800000> : vector<2xf32>
    %75 = vector.multi_reduction <maximumf>, %74, %cst_29 [1] : vector<2x2xf32> to vector<2xf32>
    %76 = vector.shape_cast %75 : vector<2xf32> to vector<2x1xf32>
    %77 = vector.broadcast %76 : vector<2x1xf32> to vector<2x2xf32>
    %78 = arith.subf %74, %77 : vector<2x2xf32>
    %79 = math.exp %78 : vector<2x2xf32>
    %cst_30 = arith.constant dense<0.000000e+00> : vector<2xf32>
    %80 = vector.multi_reduction <add>, %79, %cst_30 [1] : vector<2x2xf32> to vector<2xf32>
    %81 = vector.shape_cast %80 : vector<2xf32> to vector<2x1xf32>
    %82 = tpu.reciprocal %81 {approx = true} : vector<2x1xf32> -> vector<2x1xf32>
    %83 = vector.broadcast %82 : vector<2x1xf32> to vector<2x2xf32>
    %84 = arith.mulf %79, %83 : vector<2x2xf32>
    %cst_31 = arith.constant dense<0.000000e+00> : vector<2x16xf32>
    %85 = tpu.matmul %84, %73, %cst_31 {dimension_numbers = #tpu.dot_dimension_numbers<[1], [0], [0], [1], [0, 0, 1, 1], [], []>} : vector<2x2xf32>, vector<2x16xf32>, vector<2x16xf32> -> vector<2x16xf32>
    %86 = vector.extract_strided_slice %15 {offsets = [48, 0], sizes = [16, 256], strides = [1, 1]} : vector<256x256xf32> to vector<16x256xf32>
    %cst_32 = arith.constant dense<0.000000e+00> : vector<2x256xf32>
    %87 = tpu.matmul %85, %86, %cst_32 {dimension_numbers = #tpu.dot_dimension_numbers<[1], [0], [0], [1], [0, 0, 1, 1], [], []>} : vector<2x16xf32>, vector<16x256xf32>, vector<2x256xf32> -> vector<2x256xf32>
    %88 = arith.addf %70, %87 : vector<2x256xf32>
    %89 = vector.extract_strided_slice %13 {offsets = [0, 64], sizes = [2, 16], strides = [1, 1]} : vector<2x256xf32> to vector<2x16xf32>
    %90 = vector.extract_strided_slice %10 {offsets = [0, 320], sizes = [2, 16], strides = [1, 1]} : vector<2x768xf32> to vector<2x16xf32>
    %91 = vector.extract_strided_slice %10 {offsets = [0, 576], sizes = [2, 16], strides = [1, 1]} : vector<2x768xf32> to vector<2x16xf32>
    "tpu.trace_start"() <{level = 10 : i32, message = "qd,kd->qk"}> : () -> ()
    %cst_33 = arith.constant dense<0.000000e+00> : vector<2x2xf32>
    %92 = tpu.matmul %89, %90, %cst_33 {dimension_numbers = #tpu.dot_dimension_numbers<[1], [1], [0], [0], [0, 0, 1, 0], [], []>} : vector<2x16xf32>, vector<2x16xf32>, vector<2x2xf32> -> vector<2x2xf32>
    "tpu.trace_stop"() : () -> ()
    %cst_34 = arith.constant dense<0xFF800000> : vector<2xf32>
    %93 = vector.multi_reduction <maximumf>, %92, %cst_34 [1] : vector<2x2xf32> to vector<2xf32>
    %94 = vector.shape_cast %93 : vector<2xf32> to vector<2x1xf32>
    %95 = vector.broadcast %94 : vector<2x1xf32> to vector<2x2xf32>
    %96 = arith.subf %92, %95 : vector<2x2xf32>
    %97 = math.exp %96 : vector<2x2xf32>
    %cst_35 = arith.constant dense<0.000000e+00> : vector<2xf32>
    %98 = vector.multi_reduction <add>, %97, %cst_35 [1] : vector<2x2xf32> to vector<2xf32>
    %99 = vector.shape_cast %98 : vector<2xf32> to vector<2x1xf32>
    %100 = tpu.reciprocal %99 {approx = true} : vector<2x1xf32> -> vector<2x1xf32>
    %101 = vector.broadcast %100 : vector<2x1xf32> to vector<2x2xf32>
    %102 = arith.mulf %97, %101 : vector<2x2xf32>
    %cst_36 = arith.constant dense<0.000000e+00> : vector<2x16xf32>
    %103 = tpu.matmul %102, %91, %cst_36 {dimension_numbers = #tpu.dot_dimension_numbers<[1], [0], [0], [1], [0, 0, 1, 1], [], []>} : vector<2x2xf32>, vector<2x16xf32>, vector<2x16xf32> -> vector<2x16xf32>
    %104 = vector.extract_strided_slice %15 {offsets = [64, 0], sizes = [16, 256], strides = [1, 1]} : vector<256x256xf32> to vector<16x256xf32>
    %cst_37 = arith.constant dense<0.000000e+00> : vector<2x256xf32>
    %105 = tpu.matmul %103, %104, %cst_37 {dimension_numbers = #tpu.dot_dimension_numbers<[1], [0], [0], [1], [0, 0, 1, 1], [], []>} : vector<2x16xf32>, vector<16x256xf32>, vector<2x256xf32> -> vector<2x256xf32>
    %106 = arith.addf %88, %105 : vector<2x256xf32>
    %107 = vector.extract_strided_slice %13 {offsets = [0, 80], sizes = [2, 16], strides = [1, 1]} : vector<2x256xf32> to vector<2x16xf32>
    %108 = vector.extract_strided_slice %10 {offsets = [0, 336], sizes = [2, 16], strides = [1, 1]} : vector<2x768xf32> to vector<2x16xf32>
    %109 = vector.extract_strided_slice %10 {offsets = [0, 592], sizes = [2, 16], strides = [1, 1]} : vector<2x768xf32> to vector<2x16xf32>
    "tpu.trace_start"() <{level = 10 : i32, message = "qd,kd->qk"}> : () -> ()
    %cst_38 = arith.constant dense<0.000000e+00> : vector<2x2xf32>
    %110 = tpu.matmul %107, %108, %cst_38 {dimension_numbers = #tpu.dot_dimension_numbers<[1], [1], [0], [0], [0, 0, 1, 0], [], []>} : vector<2x16xf32>, vector<2x16xf32>, vector<2x2xf32> -> vector<2x2xf32>
    "tpu.trace_stop"() : () -> ()
    %cst_39 = arith.constant dense<0xFF800000> : vector<2xf32>
    %111 = vector.multi_reduction <maximumf>, %110, %cst_39 [1] : vector<2x2xf32> to vector<2xf32>
    %112 = vector.shape_cast %111 : vector<2xf32> to vector<2x1xf32>
    %113 = vector.broadcast %112 : vector<2x1xf32> to vector<2x2xf32>
    %114 = arith.subf %110, %113 : vector<2x2xf32>
    %115 = math.exp %114 : vector<2x2xf32>
    %cst_40 = arith.constant dense<0.000000e+00> : vector<2xf32>
    %116 = vector.multi_reduction <add>, %115, %cst_40 [1] : vector<2x2xf32> to vector<2xf32>
    %117 = vector.shape_cast %116 : vector<2xf32> to vector<2x1xf32>
    %118 = tpu.reciprocal %117 {approx = true} : vector<2x1xf32> -> vector<2x1xf32>
    %119 = vector.broadcast %118 : vector<2x1xf32> to vector<2x2xf32>
    %120 = arith.mulf %115, %119 : vector<2x2xf32>
    %cst_41 = arith.constant dense<0.000000e+00> : vector<2x16xf32>
    %121 = tpu.matmul %120, %109, %cst_41 {dimension_numbers = #tpu.dot_dimension_numbers<[1], [0], [0], [1], [0, 0, 1, 1], [], []>} : vector<2x2xf32>, vector<2x16xf32>, vector<2x16xf32> -> vector<2x16xf32>
    %122 = vector.extract_strided_slice %15 {offsets = [80, 0], sizes = [16, 256], strides = [1, 1]} : vector<256x256xf32> to vector<16x256xf32>
    %cst_42 = arith.constant dense<0.000000e+00> : vector<2x256xf32>
    %123 = tpu.matmul %121, %122, %cst_42 {dimension_numbers = #tpu.dot_dimension_numbers<[1], [0], [0], [1], [0, 0, 1, 1], [], []>} : vector<2x16xf32>, vector<16x256xf32>, vector<2x256xf32> -> vector<2x256xf32>
    %124 = arith.addf %106, %123 : vector<2x256xf32>
    %125 = vector.extract_strided_slice %13 {offsets = [0, 96], sizes = [2, 16], strides = [1, 1]} : vector<2x256xf32> to vector<2x16xf32>
    %126 = vector.extract_strided_slice %10 {offsets = [0, 352], sizes = [2, 16], strides = [1, 1]} : vector<2x768xf32> to vector<2x16xf32>
    %127 = vector.extract_strided_slice %10 {offsets = [0, 608], sizes = [2, 16], strides = [1, 1]} : vector<2x768xf32> to vector<2x16xf32>
    "tpu.trace_start"() <{level = 10 : i32, message = "qd,kd->qk"}> : () -> ()
    %cst_43 = arith.constant dense<0.000000e+00> : vector<2x2xf32>
    %128 = tpu.matmul %125, %126, %cst_43 {dimension_numbers = #tpu.dot_dimension_numbers<[1], [1], [0], [0], [0, 0, 1, 0], [], []>} : vector<2x16xf32>, vector<2x16xf32>, vector<2x2xf32> -> vector<2x2xf32>
    "tpu.trace_stop"() : () -> ()
    %cst_44 = arith.constant dense<0xFF800000> : vector<2xf32>
    %129 = vector.multi_reduction <maximumf>, %128, %cst_44 [1] : vector<2x2xf32> to vector<2xf32>
    %130 = vector.shape_cast %129 : vector<2xf32> to vector<2x1xf32>
    %131 = vector.broadcast %130 : vector<2x1xf32> to vector<2x2xf32>
    %132 = arith.subf %128, %131 : vector<2x2xf32>
    %133 = math.exp %132 : vector<2x2xf32>
    %cst_45 = arith.constant dense<0.000000e+00> : vector<2xf32>
    %134 = vector.multi_reduction <add>, %133, %cst_45 [1] : vector<2x2xf32> to vector<2xf32>
    %135 = vector.shape_cast %134 : vector<2xf32> to vector<2x1xf32>
    %136 = tpu.reciprocal %135 {approx = true} : vector<2x1xf32> -> vector<2x1xf32>
    %137 = vector.broadcast %136 : vector<2x1xf32> to vector<2x2xf32>
    %138 = arith.mulf %133, %137 : vector<2x2xf32>
    %cst_46 = arith.constant dense<0.000000e+00> : vector<2x16xf32>
    %139 = tpu.matmul %138, %127, %cst_46 {dimension_numbers = #tpu.dot_dimension_numbers<[1], [0], [0], [1], [0, 0, 1, 1], [], []>} : vector<2x2xf32>, vector<2x16xf32>, vector<2x16xf32> -> vector<2x16xf32>
    %140 = vector.extract_strided_slice %15 {offsets = [96, 0], sizes = [16, 256], strides = [1, 1]} : vector<256x256xf32> to vector<16x256xf32>
    %cst_47 = arith.constant dense<0.000000e+00> : vector<2x256xf32>
    %141 = tpu.matmul %139, %140, %cst_47 {dimension_numbers = #tpu.dot_dimension_numbers<[1], [0], [0], [1], [0, 0, 1, 1], [], []>} : vector<2x16xf32>, vector<16x256xf32>, vector<2x256xf32> -> vector<2x256xf32>
    %142 = arith.addf %124, %141 : vector<2x256xf32>
    %143 = vector.extract_strided_slice %13 {offsets = [0, 112], sizes = [2, 16], strides = [1, 1]} : vector<2x256xf32> to vector<2x16xf32>
    %144 = vector.extract_strided_slice %10 {offsets = [0, 368], sizes = [2, 16], strides = [1, 1]} : vector<2x768xf32> to vector<2x16xf32>
    %145 = vector.extract_strided_slice %10 {offsets = [0, 624], sizes = [2, 16], strides = [1, 1]} : vector<2x768xf32> to vector<2x16xf32>
    "tpu.trace_start"() <{level = 10 : i32, message = "qd,kd->qk"}> : () -> ()
    %cst_48 = arith.constant dense<0.000000e+00> : vector<2x2xf32>
    %146 = tpu.matmul %143, %144, %cst_48 {dimension_numbers = #tpu.dot_dimension_numbers<[1], [1], [0], [0], [0, 0, 1, 0], [], []>} : vector<2x16xf32>, vector<2x16xf32>, vector<2x2xf32> -> vector<2x2xf32>
    "tpu.trace_stop"() : () -> ()
    %cst_49 = arith.constant dense<0xFF800000> : vector<2xf32>
    %147 = vector.multi_reduction <maximumf>, %146, %cst_49 [1] : vector<2x2xf32> to vector<2xf32>
    %148 = vector.shape_cast %147 : vector<2xf32> to vector<2x1xf32>
    %149 = vector.broadcast %148 : vector<2x1xf32> to vector<2x2xf32>
    %150 = arith.subf %146, %149 : vector<2x2xf32>
    %151 = math.exp %150 : vector<2x2xf32>
    %cst_50 = arith.constant dense<0.000000e+00> : vector<2xf32>
    %152 = vector.multi_reduction <add>, %151, %cst_50 [1] : vector<2x2xf32> to vector<2xf32>
    %153 = vector.shape_cast %152 : vector<2xf32> to vector<2x1xf32>
    %154 = tpu.reciprocal %153 {approx = true} : vector<2x1xf32> -> vector<2x1xf32>
    %155 = vector.broadcast %154 : vector<2x1xf32> to vector<2x2xf32>
    %156 = arith.mulf %151, %155 : vector<2x2xf32>
    %cst_51 = arith.constant dense<0.000000e+00> : vector<2x16xf32>
    %157 = tpu.matmul %156, %145, %cst_51 {dimension_numbers = #tpu.dot_dimension_numbers<[1], [0], [0], [1], [0, 0, 1, 1], [], []>} : vector<2x2xf32>, vector<2x16xf32>, vector<2x16xf32> -> vector<2x16xf32>
    %158 = vector.extract_strided_slice %15 {offsets = [112, 0], sizes = [16, 256], strides = [1, 1]} : vector<256x256xf32> to vector<16x256xf32>
    %cst_52 = arith.constant dense<0.000000e+00> : vector<2x256xf32>
    %159 = tpu.matmul %157, %158, %cst_52 {dimension_numbers = #tpu.dot_dimension_numbers<[1], [0], [0], [1], [0, 0, 1, 1], [], []>} : vector<2x16xf32>, vector<16x256xf32>, vector<2x256xf32> -> vector<2x256xf32>
    %160 = arith.addf %142, %159 : vector<2x256xf32>
    %161 = vector.extract_strided_slice %13 {offsets = [0, 128], sizes = [2, 16], strides = [1, 1]} : vector<2x256xf32> to vector<2x16xf32>
    %162 = vector.extract_strided_slice %10 {offsets = [0, 384], sizes = [2, 16], strides = [1, 1]} : vector<2x768xf32> to vector<2x16xf32>
    %163 = vector.extract_strided_slice %10 {offsets = [0, 640], sizes = [2, 16], strides = [1, 1]} : vector<2x768xf32> to vector<2x16xf32>
    "tpu.trace_start"() <{level = 10 : i32, message = "qd,kd->qk"}> : () -> ()
    %cst_53 = arith.constant dense<0.000000e+00> : vector<2x2xf32>
    %164 = tpu.matmul %161, %162, %cst_53 {dimension_numbers = #tpu.dot_dimension_numbers<[1], [1], [0], [0], [0, 0, 1, 0], [], []>} : vector<2x16xf32>, vector<2x16xf32>, vector<2x2xf32> -> vector<2x2xf32>
    "tpu.trace_stop"() : () -> ()
    %cst_54 = arith.constant dense<0xFF800000> : vector<2xf32>
    %165 = vector.multi_reduction <maximumf>, %164, %cst_54 [1] : vector<2x2xf32> to vector<2xf32>
    %166 = vector.shape_cast %165 : vector<2xf32> to vector<2x1xf32>
    %167 = vector.broadcast %166 : vector<2x1xf32> to vector<2x2xf32>
    %168 = arith.subf %164, %167 : vector<2x2xf32>
    %169 = math.exp %168 : vector<2x2xf32>
    %cst_55 = arith.constant dense<0.000000e+00> : vector<2xf32>
    %170 = vector.multi_reduction <add>, %169, %cst_55 [1] : vector<2x2xf32> to vector<2xf32>
    %171 = vector.shape_cast %170 : vector<2xf32> to vector<2x1xf32>
    %172 = tpu.reciprocal %171 {approx = true} : vector<2x1xf32> -> vector<2x1xf32>
    %173 = vector.broadcast %172 : vector<2x1xf32> to vector<2x2xf32>
    %174 = arith.mulf %169, %173 : vector<2x2xf32>
    %cst_56 = arith.constant dense<0.000000e+00> : vector<2x16xf32>
    %175 = tpu.matmul %174, %163, %cst_56 {dimension_numbers = #tpu.dot_dimension_numbers<[1], [0], [0], [1], [0, 0, 1, 1], [], []>} : vector<2x2xf32>, vector<2x16xf32>, vector<2x16xf32> -> vector<2x16xf32>
    %176 = vector.extract_strided_slice %15 {offsets = [128, 0], sizes = [16, 256], strides = [1, 1]} : vector<256x256xf32> to vector<16x256xf32>
    %cst_57 = arith.constant dense<0.000000e+00> : vector<2x256xf32>
    %177 = tpu.matmul %175, %176, %cst_57 {dimension_numbers = #tpu.dot_dimension_numbers<[1], [0], [0], [1], [0, 0, 1, 1], [], []>} : vector<2x16xf32>, vector<16x256xf32>, vector<2x256xf32> -> vector<2x256xf32>
    %178 = arith.addf %160, %177 : vector<2x256xf32>
    %179 = vector.extract_strided_slice %13 {offsets = [0, 144], sizes = [2, 16], strides = [1, 1]} : vector<2x256xf32> to vector<2x16xf32>
    %180 = vector.extract_strided_slice %10 {offsets = [0, 400], sizes = [2, 16], strides = [1, 1]} : vector<2x768xf32> to vector<2x16xf32>
    %181 = vector.extract_strided_slice %10 {offsets = [0, 656], sizes = [2, 16], strides = [1, 1]} : vector<2x768xf32> to vector<2x16xf32>
    "tpu.trace_start"() <{level = 10 : i32, message = "qd,kd->qk"}> : () -> ()
    %cst_58 = arith.constant dense<0.000000e+00> : vector<2x2xf32>
    %182 = tpu.matmul %179, %180, %cst_58 {dimension_numbers = #tpu.dot_dimension_numbers<[1], [1], [0], [0], [0, 0, 1, 0], [], []>} : vector<2x16xf32>, vector<2x16xf32>, vector<2x2xf32> -> vector<2x2xf32>
    "tpu.trace_stop"() : () -> ()
    %cst_59 = arith.constant dense<0xFF800000> : vector<2xf32>
    %183 = vector.multi_reduction <maximumf>, %182, %cst_59 [1] : vector<2x2xf32> to vector<2xf32>
    %184 = vector.shape_cast %183 : vector<2xf32> to vector<2x1xf32>
    %185 = vector.broadcast %184 : vector<2x1xf32> to vector<2x2xf32>
    %186 = arith.subf %182, %185 : vector<2x2xf32>
    %187 = math.exp %186 : vector<2x2xf32>
    %cst_60 = arith.constant dense<0.000000e+00> : vector<2xf32>
    %188 = vector.multi_reduction <add>, %187, %cst_60 [1] : vector<2x2xf32> to vector<2xf32>
    %189 = vector.shape_cast %188 : vector<2xf32> to vector<2x1xf32>
    %190 = tpu.reciprocal %189 {approx = true} : vector<2x1xf32> -> vector<2x1xf32>
    %191 = vector.broadcast %190 : vector<2x1xf32> to vector<2x2xf32>
    %192 = arith.mulf %187, %191 : vector<2x2xf32>
    %cst_61 = arith.constant dense<0.000000e+00> : vector<2x16xf32>
    %193 = tpu.matmul %192, %181, %cst_61 {dimension_numbers = #tpu.dot_dimension_numbers<[1], [0], [0], [1], [0, 0, 1, 1], [], []>} : vector<2x2xf32>, vector<2x16xf32>, vector<2x16xf32> -> vector<2x16xf32>
    %194 = vector.extract_strided_slice %15 {offsets = [144, 0], sizes = [16, 256], strides = [1, 1]} : vector<256x256xf32> to vector<16x256xf32>
    %cst_62 = arith.constant dense<0.000000e+00> : vector<2x256xf32>
    %195 = tpu.matmul %193, %194, %cst_62 {dimension_numbers = #tpu.dot_dimension_numbers<[1], [0], [0], [1], [0, 0, 1, 1], [], []>} : vector<2x16xf32>, vector<16x256xf32>, vector<2x256xf32> -> vector<2x256xf32>
    %196 = arith.addf %178, %195 : vector<2x256xf32>
    %197 = vector.extract_strided_slice %13 {offsets = [0, 160], sizes = [2, 16], strides = [1, 1]} : vector<2x256xf32> to vector<2x16xf32>
    %198 = vector.extract_strided_slice %10 {offsets = [0, 416], sizes = [2, 16], strides = [1, 1]} : vector<2x768xf32> to vector<2x16xf32>
    %199 = vector.extract_strided_slice %10 {offsets = [0, 672], sizes = [2, 16], strides = [1, 1]} : vector<2x768xf32> to vector<2x16xf32>
    "tpu.trace_start"() <{level = 10 : i32, message = "qd,kd->qk"}> : () -> ()
    %cst_63 = arith.constant dense<0.000000e+00> : vector<2x2xf32>
    %200 = tpu.matmul %197, %198, %cst_63 {dimension_numbers = #tpu.dot_dimension_numbers<[1], [1], [0], [0], [0, 0, 1, 0], [], []>} : vector<2x16xf32>, vector<2x16xf32>, vector<2x2xf32> -> vector<2x2xf32>
    "tpu.trace_stop"() : () -> ()
    %cst_64 = arith.constant dense<0xFF800000> : vector<2xf32>
    %201 = vector.multi_reduction <maximumf>, %200, %cst_64 [1] : vector<2x2xf32> to vector<2xf32>
    %202 = vector.shape_cast %201 : vector<2xf32> to vector<2x1xf32>
    %203 = vector.broadcast %202 : vector<2x1xf32> to vector<2x2xf32>
    %204 = arith.subf %200, %203 : vector<2x2xf32>
    %205 = math.exp %204 : vector<2x2xf32>
    %cst_65 = arith.constant dense<0.000000e+00> : vector<2xf32>
    %206 = vector.multi_reduction <add>, %205, %cst_65 [1] : vector<2x2xf32> to vector<2xf32>
    %207 = vector.shape_cast %206 : vector<2xf32> to vector<2x1xf32>
    %208 = tpu.reciprocal %207 {approx = true} : vector<2x1xf32> -> vector<2x1xf32>
    %209 = vector.broadcast %208 : vector<2x1xf32> to vector<2x2xf32>
    %210 = arith.mulf %205, %209 : vector<2x2xf32>
    %cst_66 = arith.constant dense<0.000000e+00> : vector<2x16xf32>
    %211 = tpu.matmul %210, %199, %cst_66 {dimension_numbers = #tpu.dot_dimension_numbers<[1], [0], [0], [1], [0, 0, 1, 1], [], []>} : vector<2x2xf32>, vector<2x16xf32>, vector<2x16xf32> -> vector<2x16xf32>
    %212 = vector.extract_strided_slice %15 {offsets = [160, 0], sizes = [16, 256], strides = [1, 1]} : vector<256x256xf32> to vector<16x256xf32>
    %cst_67 = arith.constant dense<0.000000e+00> : vector<2x256xf32>
    %213 = tpu.matmul %211, %212, %cst_67 {dimension_numbers = #tpu.dot_dimension_numbers<[1], [0], [0], [1], [0, 0, 1, 1], [], []>} : vector<2x16xf32>, vector<16x256xf32>, vector<2x256xf32> -> vector<2x256xf32>
    %214 = arith.addf %196, %213 : vector<2x256xf32>
    %215 = vector.extract_strided_slice %13 {offsets = [0, 176], sizes = [2, 16], strides = [1, 1]} : vector<2x256xf32> to vector<2x16xf32>
    %216 = vector.extract_strided_slice %10 {offsets = [0, 432], sizes = [2, 16], strides = [1, 1]} : vector<2x768xf32> to vector<2x16xf32>
    %217 = vector.extract_strided_slice %10 {offsets = [0, 688], sizes = [2, 16], strides = [1, 1]} : vector<2x768xf32> to vector<2x16xf32>
    "tpu.trace_start"() <{level = 10 : i32, message = "qd,kd->qk"}> : () -> ()
    %cst_68 = arith.constant dense<0.000000e+00> : vector<2x2xf32>
    %218 = tpu.matmul %215, %216, %cst_68 {dimension_numbers = #tpu.dot_dimension_numbers<[1], [1], [0], [0], [0, 0, 1, 0], [], []>} : vector<2x16xf32>, vector<2x16xf32>, vector<2x2xf32> -> vector<2x2xf32>
    "tpu.trace_stop"() : () -> ()
    %cst_69 = arith.constant dense<0xFF800000> : vector<2xf32>
    %219 = vector.multi_reduction <maximumf>, %218, %cst_69 [1] : vector<2x2xf32> to vector<2xf32>
    %220 = vector.shape_cast %219 : vector<2xf32> to vector<2x1xf32>
    %221 = vector.broadcast %220 : vector<2x1xf32> to vector<2x2xf32>
    %222 = arith.subf %218, %221 : vector<2x2xf32>
    %223 = math.exp %222 : vector<2x2xf32>
    %cst_70 = arith.constant dense<0.000000e+00> : vector<2xf32>
    %224 = vector.multi_reduction <add>, %223, %cst_70 [1] : vector<2x2xf32> to vector<2xf32>
    %225 = vector.shape_cast %224 : vector<2xf32> to vector<2x1xf32>
    %226 = tpu.reciprocal %225 {approx = true} : vector<2x1xf32> -> vector<2x1xf32>
    %227 = vector.broadcast %226 : vector<2x1xf32> to vector<2x2xf32>
    %228 = arith.mulf %223, %227 : vector<2x2xf32>
    %cst_71 = arith.constant dense<0.000000e+00> : vector<2x16xf32>
    %229 = tpu.matmul %228, %217, %cst_71 {dimension_numbers = #tpu.dot_dimension_numbers<[1], [0], [0], [1], [0, 0, 1, 1], [], []>} : vector<2x2xf32>, vector<2x16xf32>, vector<2x16xf32> -> vector<2x16xf32>
    %230 = vector.extract_strided_slice %15 {offsets = [176, 0], sizes = [16, 256], strides = [1, 1]} : vector<256x256xf32> to vector<16x256xf32>
    %cst_72 = arith.constant dense<0.000000e+00> : vector<2x256xf32>
    %231 = tpu.matmul %229, %230, %cst_72 {dimension_numbers = #tpu.dot_dimension_numbers<[1], [0], [0], [1], [0, 0, 1, 1], [], []>} : vector<2x16xf32>, vector<16x256xf32>, vector<2x256xf32> -> vector<2x256xf32>
    %232 = arith.addf %214, %231 : vector<2x256xf32>
    %233 = vector.extract_strided_slice %13 {offsets = [0, 192], sizes = [2, 16], strides = [1, 1]} : vector<2x256xf32> to vector<2x16xf32>
    %234 = vector.extract_strided_slice %10 {offsets = [0, 448], sizes = [2, 16], strides = [1, 1]} : vector<2x768xf32> to vector<2x16xf32>
    %235 = vector.extract_strided_slice %10 {offsets = [0, 704], sizes = [2, 16], strides = [1, 1]} : vector<2x768xf32> to vector<2x16xf32>
    "tpu.trace_start"() <{level = 10 : i32, message = "qd,kd->qk"}> : () -> ()
    %cst_73 = arith.constant dense<0.000000e+00> : vector<2x2xf32>
    %236 = tpu.matmul %233, %234, %cst_73 {dimension_numbers = #tpu.dot_dimension_numbers<[1], [1], [0], [0], [0, 0, 1, 0], [], []>} : vector<2x16xf32>, vector<2x16xf32>, vector<2x2xf32> -> vector<2x2xf32>
    "tpu.trace_stop"() : () -> ()
    %cst_74 = arith.constant dense<0xFF800000> : vector<2xf32>
    %237 = vector.multi_reduction <maximumf>, %236, %cst_74 [1] : vector<2x2xf32> to vector<2xf32>
    %238 = vector.shape_cast %237 : vector<2xf32> to vector<2x1xf32>
    %239 = vector.broadcast %238 : vector<2x1xf32> to vector<2x2xf32>
    %240 = arith.subf %236, %239 : vector<2x2xf32>
    %241 = math.exp %240 : vector<2x2xf32>
    %cst_75 = arith.constant dense<0.000000e+00> : vector<2xf32>
    %242 = vector.multi_reduction <add>, %241, %cst_75 [1] : vector<2x2xf32> to vector<2xf32>
    %243 = vector.shape_cast %242 : vector<2xf32> to vector<2x1xf32>
    %244 = tpu.reciprocal %243 {approx = true} : vector<2x1xf32> -> vector<2x1xf32>
    %245 = vector.broadcast %244 : vector<2x1xf32> to vector<2x2xf32>
    %246 = arith.mulf %241, %245 : vector<2x2xf32>
    %cst_76 = arith.constant dense<0.000000e+00> : vector<2x16xf32>
    %247 = tpu.matmul %246, %235, %cst_76 {dimension_numbers = #tpu.dot_dimension_numbers<[1], [0], [0], [1], [0, 0, 1, 1], [], []>} : vector<2x2xf32>, vector<2x16xf32>, vector<2x16xf32> -> vector<2x16xf32>
    %248 = vector.extract_strided_slice %15 {offsets = [192, 0], sizes = [16, 256], strides = [1, 1]} : vector<256x256xf32> to vector<16x256xf32>
    %cst_77 = arith.constant dense<0.000000e+00> : vector<2x256xf32>
    %249 = tpu.matmul %247, %248, %cst_77 {dimension_numbers = #tpu.dot_dimension_numbers<[1], [0], [0], [1], [0, 0, 1, 1], [], []>} : vector<2x16xf32>, vector<16x256xf32>, vector<2x256xf32> -> vector<2x256xf32>
    %250 = arith.addf %232, %249 : vector<2x256xf32>
    %251 = vector.extract_strided_slice %13 {offsets = [0, 208], sizes = [2, 16], strides = [1, 1]} : vector<2x256xf32> to vector<2x16xf32>
    %252 = vector.extract_strided_slice %10 {offsets = [0, 464], sizes = [2, 16], strides = [1, 1]} : vector<2x768xf32> to vector<2x16xf32>
    %253 = vector.extract_strided_slice %10 {offsets = [0, 720], sizes = [2, 16], strides = [1, 1]} : vector<2x768xf32> to vector<2x16xf32>
    "tpu.trace_start"() <{level = 10 : i32, message = "qd,kd->qk"}> : () -> ()
    %cst_78 = arith.constant dense<0.000000e+00> : vector<2x2xf32>
    %254 = tpu.matmul %251, %252, %cst_78 {dimension_numbers = #tpu.dot_dimension_numbers<[1], [1], [0], [0], [0, 0, 1, 0], [], []>} : vector<2x16xf32>, vector<2x16xf32>, vector<2x2xf32> -> vector<2x2xf32>
    "tpu.trace_stop"() : () -> ()
    %cst_79 = arith.constant dense<0xFF800000> : vector<2xf32>
    %255 = vector.multi_reduction <maximumf>, %254, %cst_79 [1] : vector<2x2xf32> to vector<2xf32>
    %256 = vector.shape_cast %255 : vector<2xf32> to vector<2x1xf32>
    %257 = vector.broadcast %256 : vector<2x1xf32> to vector<2x2xf32>
    %258 = arith.subf %254, %257 : vector<2x2xf32>
    %259 = math.exp %258 : vector<2x2xf32>
    %cst_80 = arith.constant dense<0.000000e+00> : vector<2xf32>
    %260 = vector.multi_reduction <add>, %259, %cst_80 [1] : vector<2x2xf32> to vector<2xf32>
    %261 = vector.shape_cast %260 : vector<2xf32> to vector<2x1xf32>
    %262 = tpu.reciprocal %261 {approx = true} : vector<2x1xf32> -> vector<2x1xf32>
    %263 = vector.broadcast %262 : vector<2x1xf32> to vector<2x2xf32>
    %264 = arith.mulf %259, %263 : vector<2x2xf32>
    %cst_81 = arith.constant dense<0.000000e+00> : vector<2x16xf32>
    %265 = tpu.matmul %264, %253, %cst_81 {dimension_numbers = #tpu.dot_dimension_numbers<[1], [0], [0], [1], [0, 0, 1, 1], [], []>} : vector<2x2xf32>, vector<2x16xf32>, vector<2x16xf32> -> vector<2x16xf32>
    %266 = vector.extract_strided_slice %15 {offsets = [208, 0], sizes = [16, 256], strides = [1, 1]} : vector<256x256xf32> to vector<16x256xf32>
    %cst_82 = arith.constant dense<0.000000e+00> : vector<2x256xf32>
    %267 = tpu.matmul %265, %266, %cst_82 {dimension_numbers = #tpu.dot_dimension_numbers<[1], [0], [0], [1], [0, 0, 1, 1], [], []>} : vector<2x16xf32>, vector<16x256xf32>, vector<2x256xf32> -> vector<2x256xf32>
    %268 = arith.addf %250, %267 : vector<2x256xf32>
    %269 = vector.extract_strided_slice %13 {offsets = [0, 224], sizes = [2, 16], strides = [1, 1]} : vector<2x256xf32> to vector<2x16xf32>
    %270 = vector.extract_strided_slice %10 {offsets = [0, 480], sizes = [2, 16], strides = [1, 1]} : vector<2x768xf32> to vector<2x16xf32>
    %271 = vector.extract_strided_slice %10 {offsets = [0, 736], sizes = [2, 16], strides = [1, 1]} : vector<2x768xf32> to vector<2x16xf32>
    "tpu.trace_start"() <{level = 10 : i32, message = "qd,kd->qk"}> : () -> ()
    %cst_83 = arith.constant dense<0.000000e+00> : vector<2x2xf32>
    %272 = tpu.matmul %269, %270, %cst_83 {dimension_numbers = #tpu.dot_dimension_numbers<[1], [1], [0], [0], [0, 0, 1, 0], [], []>} : vector<2x16xf32>, vector<2x16xf32>, vector<2x2xf32> -> vector<2x2xf32>
    "tpu.trace_stop"() : () -> ()
    %cst_84 = arith.constant dense<0xFF800000> : vector<2xf32>
    %273 = vector.multi_reduction <maximumf>, %272, %cst_84 [1] : vector<2x2xf32> to vector<2xf32>
    %274 = vector.shape_cast %273 : vector<2xf32> to vector<2x1xf32>
    %275 = vector.broadcast %274 : vector<2x1xf32> to vector<2x2xf32>
    %276 = arith.subf %272, %275 : vector<2x2xf32>
    %277 = math.exp %276 : vector<2x2xf32>
    %cst_85 = arith.constant dense<0.000000e+00> : vector<2xf32>
    %278 = vector.multi_reduction <add>, %277, %cst_85 [1] : vector<2x2xf32> to vector<2xf32>
    %279 = vector.shape_cast %278 : vector<2xf32> to vector<2x1xf32>
    %280 = tpu.reciprocal %279 {approx = true} : vector<2x1xf32> -> vector<2x1xf32>
    %281 = vector.broadcast %280 : vector<2x1xf32> to vector<2x2xf32>
    %282 = arith.mulf %277, %281 : vector<2x2xf32>
    %cst_86 = arith.constant dense<0.000000e+00> : vector<2x16xf32>
    %283 = tpu.matmul %282, %271, %cst_86 {dimension_numbers = #tpu.dot_dimension_numbers<[1], [0], [0], [1], [0, 0, 1, 1], [], []>} : vector<2x2xf32>, vector<2x16xf32>, vector<2x16xf32> -> vector<2x16xf32>
    %284 = vector.extract_strided_slice %15 {offsets = [224, 0], sizes = [16, 256], strides = [1, 1]} : vector<256x256xf32> to vector<16x256xf32>
    %cst_87 = arith.constant dense<0.000000e+00> : vector<2x256xf32>
    %285 = tpu.matmul %283, %284, %cst_87 {dimension_numbers = #tpu.dot_dimension_numbers<[1], [0], [0], [1], [0, 0, 1, 1], [], []>} : vector<2x16xf32>, vector<16x256xf32>, vector<2x256xf32> -> vector<2x256xf32>
    %286 = arith.addf %268, %285 : vector<2x256xf32>
    %287 = vector.extract_strided_slice %13 {offsets = [0, 240], sizes = [2, 16], strides = [1, 1]} : vector<2x256xf32> to vector<2x16xf32>
    %288 = vector.extract_strided_slice %10 {offsets = [0, 496], sizes = [2, 16], strides = [1, 1]} : vector<2x768xf32> to vector<2x16xf32>
    %289 = vector.extract_strided_slice %10 {offsets = [0, 752], sizes = [2, 16], strides = [1, 1]} : vector<2x768xf32> to vector<2x16xf32>
    "tpu.trace_start"() <{level = 10 : i32, message = "qd,kd->qk"}> : () -> ()
    %cst_88 = arith.constant dense<0.000000e+00> : vector<2x2xf32>
    %290 = tpu.matmul %287, %288, %cst_88 {dimension_numbers = #tpu.dot_dimension_numbers<[1], [1], [0], [0], [0, 0, 1, 0], [], []>} : vector<2x16xf32>, vector<2x16xf32>, vector<2x2xf32> -> vector<2x2xf32>
    "tpu.trace_stop"() : () -> ()
    %cst_89 = arith.constant dense<0xFF800000> : vector<2xf32>
    %291 = vector.multi_reduction <maximumf>, %290, %cst_89 [1] : vector<2x2xf32> to vector<2xf32>
    %292 = vector.shape_cast %291 : vector<2xf32> to vector<2x1xf32>
    %293 = vector.broadcast %292 : vector<2x1xf32> to vector<2x2xf32>
    %294 = arith.subf %290, %293 : vector<2x2xf32>
    %295 = math.exp %294 : vector<2x2xf32>
    %cst_90 = arith.constant dense<0.000000e+00> : vector<2xf32>
    %296 = vector.multi_reduction <add>, %295, %cst_90 [1] : vector<2x2xf32> to vector<2xf32>
    %297 = vector.shape_cast %296 : vector<2xf32> to vector<2x1xf32>
    %298 = tpu.reciprocal %297 {approx = true} : vector<2x1xf32> -> vector<2x1xf32>
    %299 = vector.broadcast %298 : vector<2x1xf32> to vector<2x2xf32>
    %300 = arith.mulf %295, %299 : vector<2x2xf32>
    %cst_91 = arith.constant dense<0.000000e+00> : vector<2x16xf32>
    %301 = tpu.matmul %300, %289, %cst_91 {dimension_numbers = #tpu.dot_dimension_numbers<[1], [0], [0], [1], [0, 0, 1, 1], [], []>} : vector<2x2xf32>, vector<2x16xf32>, vector<2x16xf32> -> vector<2x16xf32>
    %302 = vector.extract_strided_slice %15 {offsets = [240, 0], sizes = [16, 256], strides = [1, 1]} : vector<256x256xf32> to vector<16x256xf32>
    %cst_92 = arith.constant dense<0.000000e+00> : vector<2x256xf32>
    %303 = tpu.matmul %301, %302, %cst_92 {dimension_numbers = #tpu.dot_dimension_numbers<[1], [0], [0], [1], [0, 0, 1, 1], [], []>} : vector<2x16xf32>, vector<16x256xf32>, vector<2x256xf32> -> vector<2x256xf32>
    %304 = arith.addf %286, %303 : vector<2x256xf32>
    %c0_93 = arith.constant 0 : index
    %c0_94 = arith.constant 0 : index
    %c0_95 = arith.constant 0 : index
    %305 = vector.load %arg5[%c0_93, %c0_94, %c0_95] : memref<1x1x256xf32, #tpu.memory_space<vmem>>, vector<1x1x256xf32>
    %306 = vector.shape_cast %305 : vector<1x1x256xf32> to vector<1x256xf32>
    %307 = vector.broadcast %306 : vector<1x256xf32> to vector<2x256xf32>
    %308 = arith.addf %304, %307 : vector<2x256xf32>
    %309 = arith.addf %3, %308 : vector<2x256xf32>
    %c0_96 = arith.constant 0 : index
    %c0_97 = arith.constant 0 : index
    %c0_98 = arith.constant 0 : index
    %310 = vector.load %arg6[%c0_96, %c0_97, %c0_98] : memref<1x1x256xf32, #tpu.memory_space<vmem>>, vector<1x1x256xf32>
    %311 = vector.shape_cast %310 : vector<1x1x256xf32> to vector<1x256xf32>
    %c0_99 = arith.constant 0 : index
    %c0_100 = arith.constant 0 : index
    %c0_101 = arith.constant 0 : index
    %312 = vector.load %arg7[%c0_99, %c0_100, %c0_101] : memref<1x1x256xf32, #tpu.memory_space<vmem>>, vector<1x1x256xf32>
    %313 = vector.shape_cast %312 : vector<1x1x256xf32> to vector<1x256xf32>
    %cst_102 = arith.constant dense<0.000000e+00> : vector<2xf32>
    %314 = vector.multi_reduction <add>, %309, %cst_102 [1] : vector<2x256xf32> to vector<2xf32>
    %315 = vector.shape_cast %314 : vector<2xf32> to vector<2x1xf32>
    %cst_103 = arith.constant 2.560000e+02 : f32
    %316 = vector.broadcast %cst_103 : f32 to vector<2x1xf32>
    %317 = arith.divf %315, %316 : vector<2x1xf32>
    %318 = vector.broadcast %317 : vector<2x1xf32> to vector<2x256xf32>
    %319 = arith.subf %309, %318 : vector<2x256xf32>
    %320 = arith.mulf %319, %319 : vector<2x256xf32>
    %cst_104 = arith.constant dense<0.000000e+00> : vector<2xf32>
    %321 = vector.multi_reduction <add>, %320, %cst_104 [1] : vector<2x256xf32> to vector<2xf32>
    %322 = vector.shape_cast %321 : vector<2xf32> to vector<2x1xf32>
    %cst_105 = arith.constant 2.560000e+02 : f32
    %323 = vector.broadcast %cst_105 : f32 to vector<2x1xf32>
    %324 = arith.divf %322, %323 : vector<2x1xf32>
    %325 = vector.broadcast %317 : vector<2x1xf32> to vector<2x256xf32>
    %326 = arith.subf %309, %325 : vector<2x256xf32>
    %cst_106 = arith.constant 9.99999974E-6 : f32
    %327 = vector.broadcast %cst_106 : f32 to vector<2x1xf32>
    %328 = arith.addf %324, %327 : vector<2x1xf32>
    %329 = math.rsqrt %328 : vector<2x1xf32>
    %330 = vector.broadcast %329 : vector<2x1xf32> to vector<2x256xf32>
    %331 = arith.mulf %326, %330 : vector<2x256xf32>
    %332 = vector.broadcast %311 : vector<1x256xf32> to vector<2x256xf32>
    %333 = arith.mulf %331, %332 : vector<2x256xf32>
    %334 = vector.broadcast %313 : vector<1x256xf32> to vector<2x256xf32>
    %335 = arith.addf %333, %334 : vector<2x256xf32>
    %c0_107 = arith.constant 0 : index
    %c0_108 = arith.constant 0 : index
    %c0_109 = arith.constant 0 : index
    %336 = vector.load %arg8[%c0_107, %c0_108, %c0_109] : memref<1x256x512xf32, #tpu.memory_space<vmem>>, vector<1x256x512xf32>
    %337 = vector.shape_cast %336 : vector<1x256x512xf32> to vector<256x512xf32>
    %cst_110 = arith.constant dense<0.000000e+00> : vector<2x512xf32>
    %338 = tpu.matmul %335, %337, %cst_110 {dimension_numbers = #tpu.dot_dimension_numbers<[1], [0], [0], [1], [0, 0, 1, 1], [], []>} : vector<2x256xf32>, vector<256x512xf32>, vector<2x512xf32> -> vector<2x512xf32>
    %c0_111 = arith.constant 0 : index
    %c0_112 = arith.constant 0 : index
    %c0_113 = arith.constant 0 : index
    %339 = vector.load %arg9[%c0_111, %c0_112, %c0_113] : memref<1x1x512xf32, #tpu.memory_space<vmem>>, vector<1x1x512xf32>
    %340 = vector.shape_cast %339 : vector<1x1x512xf32> to vector<1x512xf32>
    %341 = vector.broadcast %340 : vector<1x512xf32> to vector<2x512xf32>
    %342 = arith.addf %338, %341 : vector<2x512xf32>
    %cst_114 = arith.constant 0.000000e+00 : f32
    %343 = vector.broadcast %cst_114 : f32 to vector<2x512xf32>
    %344 = arith.maximumf %342, %343 : vector<2x512xf32>
    %c0_115 = arith.constant 0 : index
    %c0_116 = arith.constant 0 : index
    %c0_117 = arith.constant 0 : index
    %345 = vector.load %arg10[%c0_115, %c0_116, %c0_117] : memref<1x512x256xf32, #tpu.memory_space<vmem>>, vector<1x512x256xf32>
    %346 = vector.shape_cast %345 : vector<1x512x256xf32> to vector<512x256xf32>
    %cst_118 = arith.constant dense<0.000000e+00> : vector<2x256xf32>
    %347 = tpu.matmul %344, %346, %cst_118 {dimension_numbers = #tpu.dot_dimension_numbers<[1], [0], [0], [1], [0, 0, 1, 1], [], []>} : vector<2x512xf32>, vector<512x256xf32>, vector<2x256xf32> -> vector<2x256xf32>
    %c0_119 = arith.constant 0 : index
    %c0_120 = arith.constant 0 : index
    %c0_121 = arith.constant 0 : index
    %348 = vector.load %arg11[%c0_119, %c0_120, %c0_121] : memref<1x1x256xf32, #tpu.memory_space<vmem>>, vector<1x1x256xf32>
    %349 = vector.shape_cast %348 : vector<1x1x256xf32> to vector<1x256xf32>
    %350 = vector.broadcast %349 : vector<1x256xf32> to vector<2x256xf32>
    %351 = arith.addf %347, %350 : vector<2x256xf32>
    %352 = arith.addf %335, %351 : vector<2x256xf32>
    %c0_122 = arith.constant 0 : index
    %c0_123 = arith.constant 0 : index
    %c0_124 = arith.constant 0 : index
    %353 = vector.load %arg12[%c0_122, %c0_123, %c0_124] : memref<1x1x256xf32, #tpu.memory_space<vmem>>, vector<1x1x256xf32>
    %354 = vector.shape_cast %353 : vector<1x1x256xf32> to vector<1x256xf32>
    %c0_125 = arith.constant 0 : index
    %c0_126 = arith.constant 0 : index
    %c0_127 = arith.constant 0 : index
    %355 = vector.load %arg13[%c0_125, %c0_126, %c0_127] : memref<1x1x256xf32, #tpu.memory_space<vmem>>, vector<1x1x256xf32>
    %356 = vector.shape_cast %355 : vector<1x1x256xf32> to vector<1x256xf32>
    %cst_128 = arith.constant dense<0.000000e+00> : vector<2xf32>
    %357 = vector.multi_reduction <add>, %352, %cst_128 [1] : vector<2x256xf32> to vector<2xf32>
    %358 = vector.shape_cast %357 : vector<2xf32> to vector<2x1xf32>
    %cst_129 = arith.constant 2.560000e+02 : f32
    %359 = vector.broadcast %cst_129 : f32 to vector<2x1xf32>
    %360 = arith.divf %358, %359 : vector<2x1xf32>
    %361 = vector.broadcast %360 : vector<2x1xf32> to vector<2x256xf32>
    %362 = arith.subf %352, %361 : vector<2x256xf32>
    %363 = arith.mulf %362, %362 : vector<2x256xf32>
    %cst_130 = arith.constant dense<0.000000e+00> : vector<2xf32>
    %364 = vector.multi_reduction <add>, %363, %cst_130 [1] : vector<2x256xf32> to vector<2xf32>
    %365 = vector.shape_cast %364 : vector<2xf32> to vector<2x1xf32>
    %cst_131 = arith.constant 2.560000e+02 : f32
    %366 = vector.broadcast %cst_131 : f32 to vector<2x1xf32>
    %367 = arith.divf %365, %366 : vector<2x1xf32>
    %368 = vector.broadcast %360 : vector<2x1xf32> to vector<2x256xf32>
    %369 = arith.subf %352, %368 : vector<2x256xf32>
    %cst_132 = arith.constant 9.99999974E-6 : f32
    %370 = vector.broadcast %cst_132 : f32 to vector<2x1xf32>
    %371 = arith.addf %367, %370 : vector<2x1xf32>
    %372 = math.rsqrt %371 : vector<2x1xf32>
    %373 = vector.broadcast %372 : vector<2x1xf32> to vector<2x256xf32>
    %374 = arith.mulf %369, %373 : vector<2x256xf32>
    %375 = vector.broadcast %354 : vector<1x256xf32> to vector<2x256xf32>
    %376 = arith.mulf %374, %375 : vector<2x256xf32>
    %377 = vector.broadcast %356 : vector<1x256xf32> to vector<2x256xf32>
    %378 = arith.addf %376, %377 : vector<2x256xf32>
    %c0_133 = arith.constant 0 : index
    %c0_134 = arith.constant 0 : index
    %379 = vector.load %arg14[%c0_133, %c0_134] : memref<2x256xf32, #tpu.memory_space<vmem>>, vector<2x256xf32>
    tpu.vector_store %arg14[%c0_133, %c0_134], %378 {strides = array<i32>} : memref<2x256xf32, #tpu.memory_space<vmem>>, vector<2x256xf32>,
    return
  }
  func.func @transform_0(%arg0: i32) -> (i32, i32) {
    %c0_i32 = arith.constant 0 : i32
    %c0_i32_0 = arith.constant 0 : i32
    %c0_i32_1 = arith.constant 0 : i32
    return %c0_i32, %c0_i32_0 : i32, i32
  }
  func.func @transform_1(%arg0: i32) -> (i32, i32, i32) {
    %c0_i32 = arith.constant 0 : i32
    %c0_i32_0 = arith.constant 0 : i32
    %c0_i32_1 = arith.constant 0 : i32
    return %arg0, %c0_i32, %c0_i32_0 : i32, i32, i32
  }
  func.func @transform_2(%arg0: i32) -> (i32, i32, i32) {
    %c0_i32 = arith.constant 0 : i32
    %c0_i32_0 = arith.constant 0 : i32
    %c0_i32_1 = arith.constant 0 : i32
    return %arg0, %c0_i32, %c0_i32_0 : i32, i32, i32
  }
  func.func @transform_3(%arg0: i32) -> (i32, i32, i32) {
    %c0_i32 = arith.constant 0 : i32
    %c0_i32_0 = arith.constant 0 : i32
    %c0_i32_1 = arith.constant 0 : i32
    return %arg0, %c0_i32, %c0_i32_0 : i32, i32, i32
  }
  func.func @transform_4(%arg0: i32) -> (i32, i32, i32) {
    %c0_i32 = arith.constant 0 : i32
    %c0_i32_0 = arith.constant 0 : i32
    %c0_i32_1 = arith.constant 0 : i32
    return %arg0, %c0_i32, %c0_i32_0 : i32, i32, i32
  }
  func.func @transform_5(%arg0: i32) -> (i32, i32, i32) {
    %c0_i32 = arith.constant 0 : i32
    %c0_i32_0 = arith.constant 0 : i32
    %c0_i32_1 = arith.constant 0 : i32
    return %arg0, %c0_i32, %c0_i32_0 : i32, i32, i32
  }
  func.func @transform_6(%arg0: i32) -> (i32, i32, i32) {
    %c0_i32 = arith.constant 0 : i32
    %c0_i32_0 = arith.constant 0 : i32
    %c0_i32_1 = arith.constant 0 : i32
    return %arg0, %c0_i32, %c0_i32_0 : i32, i32, i32
  }
  func.func @transform_7(%arg0: i32) -> (i32, i32, i32) {
    %c0_i32 = arith.constant 0 : i32
    %c0_i32_0 = arith.constant 0 : i32
    %c0_i32_1 = arith.constant 0 : i32
    return %arg0, %c0_i32, %c0_i32_0 : i32, i32, i32
  }
  func.func @transform_8(%arg0: i32) -> (i32, i32, i32) {
    %c0_i32 = arith.constant 0 : i32
    %c0_i32_0 = arith.constant 0 : i32
    %c0_i32_1 = arith.constant 0 : i32
    return %arg0, %c0_i32, %c0_i32_0 : i32, i32, i32
  }
  func.func @transform_9(%arg0: i32) -> (i32, i32, i32) {
    %c0_i32 = arith.constant 0 : i32
    %c0_i32_0 = arith.constant 0 : i32
    %c0_i32_1 = arith.constant 0 : i32
    return %arg0, %c0_i32, %c0_i32_0 : i32, i32, i32
  }
  func.func @transform_10(%arg0: i32) -> (i32, i32, i32) {
    %c0_i32 = arith.constant 0 : i32
    %c0_i32_0 = arith.constant 0 : i32
    %c0_i32_1 = arith.constant 0 : i32
    return %arg0, %c0_i32, %c0_i32_0 : i32, i32, i32
  }
  func.func @transform_11(%arg0: i32) -> (i32, i32, i32) {
    %c0_i32 = arith.constant 0 : i32
    %c0_i32_0 = arith.constant 0 : i32
    %c0_i32_1 = arith.constant 0 : i32
    return %arg0, %c0_i32, %c0_i32_0 : i32, i32, i32
  }
  func.func @transform_12(%arg0: i32) -> (i32, i32, i32) {
    %c0_i32 = arith.constant 0 : i32
    %c0_i32_0 = arith.constant 0 : i32
    %c0_i32_1 = arith.constant 0 : i32
    return %arg0, %c0_i32, %c0_i32_0 : i32, i32, i32
  }
  func.func @transform_13(%arg0: i32) -> (i32, i32) {
    %c0_i32 = arith.constant 0 : i32
    %c0_i32_0 = arith.constant 0 : i32
    %c0_i32_1 = arith.constant 0 : i32
    return %c0_i32, %c0_i32_0 : i32, i32
  }
}

</mosaic_0001>

<bundles_post_ra>
// kernel: tpu_custom_call.1
= control target key start
LH: loop header
LB: loop body
LE: loop exit
PB: predicated region body
PF: predicated region fallthrough
CT: control target
= control target key end

     0   :  { %s9634_s0 = inlined_call_operand.hbm [shape: f32[2,256], index: 0, kind: input, shape index: {}]   ;;  %s9635_s1 = inlined_call_operand.hbm [shape: f32[12,256,768], index: 1, kind: input, shape index: {}]   ;;  %s9636_s2 = inlined_call_operand.hbm [shape: f32[12,1,768], index: 2, kind: input, shape index: {}]   ;;  %s9637_s3 = inlined_call_operand.hbm [shape: f32[12,256,256], index: 3, kind: input, shape index: {}]   ;;  %s9638_s4 = inlined_call_operand.hbm [shape: f32[12,1,256], index: 4, kind: input, shape index: {}]   ;;  %s9639_s5 = inlined_call_operand.hbm [shape: f32[12,1,256], index: 5, kind: input, shape index: {}]   ;;  %s9640_s6 = inlined_call_operand.hbm [shape: f32[12,1,256], index: 6, kind: input, shape index: {}]   ;;  %s9641_s7 = inlined_call_operand.hbm [shape: f32[12,256,512], index: 7, kind: input, shape index: {}]   ;;  %s9642_s8 = inlined_call_operand.hbm [shape: f32[12,1,512], index: 8, kind: input, shape index: {}]   ;;  %s9643_s9 = inlined_call_operand.hbm [shape: f32[12,512,256], index: 9, kind: input, shape index: {}]   ;;  %s9644_s10 = inlined_call_operand.hbm [shape: f32[12,1,256], index: 10, kind: input, shape index: {}]   ;;  %s9645_s11 = inlined_call_operand.hbm [shape: f32[12,1,256], index: 11, kind: input, shape index: {}]   ;;  %s9646_s12 = inlined_call_operand.hbm [shape: f32[12,1,256], index: 12, kind: input, shape index: {}]   ;;  %s9647_s13 = inlined_call_operand.hbm [shape: f32[2,256], index: 13, kind: output, shape index: {}]  }
   0x1   :  { %9669 = sst [smem:[#allocation35_spill]] %s9635_s1 }
   0x2   :  { %9670 = sst [smem:[#allocation36_spill]] %s9637_s3 }
   0x3   :  { %9671 = sst [smem:[#allocation37_spill]] %s9639_s5 }
   0x4   :  { %9672 = sst [smem:[#allocation38_spill]] %s9641_s7 }
   0x5   :  { %9673 = sst [smem:[#allocation39_spill]] %s9642_s8 }
   0x6   :  { %9674 = sst [smem:[#allocation40_spill]] %s9644_s10 }
   0x7   :  { %9675 = sst [smem:[#allocation41_spill]] %s9646_s12 }
   0x8   :  { %9676 = sst [smem:[#allocation42_spill]] %s9647_s13 }
   0x9   :  { %18 = vsyncpa [#allocation3], 0 }
   0xa   :  { %19 = vsyncpa [#allocation6], 0 }
   0xb   :  { %21 = vsyncpa [#allocation6 + $0x1], 0 }
   0xc   :  { %22 = vsyncpa [#allocation9], 0 }
   0xd   :  { %24 = vsyncpa [#allocation9 + $0x1], 0 }
   0xe   :  { %25 = vsyncpa [#allocation12], 0 }
   0xf   :  { %27 = vsyncpa [#allocation12 + $0x1], 0 }
  0x10   :  { %28 = vsyncpa [#allocation15], 0 }
  0x11   :  { %30 = vsyncpa [#allocation15 + $0x1], 0 }
  0x12   :  { %31 = vsyncpa [#allocation18], 0 }
  0x13   :  { %33 = vsyncpa [#allocation18 + $0x1], 0 }
  0x14   :  { %34 = vsyncpa [#allocation21], 0 }
  0x15   :  { %36 = vsyncpa [#allocation21 + $0x1], 0 }
  0x16   :  { %37 = vsyncpa [#allocation4], 0  ;;  %s8077_s25 = smov 0   ;;  %s8079_s26 = smov 0  }
  0x17   :  { %s8081_s27 = smov 0   ;;  %s8083_s28 = smov 0  }
  0x18 LB: > { %9677 = sst [smem:[#allocation32_spill]] %s7970_s27  ;;  %s8098_s29 = sadd.s32 1, %s7974_s28   ;;  %s7974_s28 = sphi %s8083_s28, %s9715_s28   ;;  %s7970_s27 = sphi %s8081_s27, %s9717_s27   ;;  %s7966_s26 = sphi %s8079_s26, %s9719_s26   ;;  %s7962_s25 = sphi %s8077_s25, %s9718_s25  }
  0x19   : > { %9678 = sst [smem:[#allocation33_spill]] %s8098_s29  ;;  %s71_s30 = sadd.s32 1, %s7970_s27 }
  0x1a   : > { %s68_s14 = ssub.s32 %s7974_s28, %s8098_s29  ;;  %p78_p0 = scmp.ne.s32.totalorder %s7970_s27, %s7966_s26 }
  0x1b   : > { %p69_p1 = scmp.eq.s32.totalorder %s68_s14, 0  ;;  %p79_p2 = scmp.eq.s32.totalorder %s7974_s28, 0 }
  0x1c   : > { %p7373_p3 = scmp.lt.s32.totalorder %s7974_s28, 12  ;;  %s8111_s16 = sand.u32 1, %s7974_s28  }
  0x1d   : > { %s8108_s15 = scalar_select %p69_p1, %s7970_s27, %s71_s30  }
  0x1e   : > { %p80_p4 = por %p79_p2, %p78_p0  ;;  %s8114_s17 = sand.u32 1, %s7970_s27  }
  0x1f   : > { %9679 = sst [smem:[#allocation34_spill]] %s8108_s15  ;;  %s7293_s18 = smul.u32 1536, %s8114_s17 }
  0x20   : > { %p8117_p5 = pnand %p7373_p3, %p80_p4  ;;  %s7294_s20 = smul.u32 24576, %s7974_s28 }
  0x21   : > { %s9681_s1 = sld [smem:[#allocation35_spill]]  ;;  %s430_s24 = scalar_lea.vmem [#allocation5], %s7293_s18 }
  0x22   : > { %s9680_s19 = scalar_select %p8117_p5, 1, 0 }
  0x23   : > { %s437_s30 = sshll.u32 %s430_s24, 4  ;;  %p8134_p7 = pneg %p8117_p5  ;;  %s8127_s30 = int_to_ptr.vmem [resolvable:$true] %s437_s30 }
  0x25   : > { %s9682_s27 = scalar_select %p8134_p7, 1, 0 }
  0x27   : > { %s8125_s23 = scalar_lea.hbm %s9681_s1, %s7294_s20  ;;  %s7503_s22 = scalar_lea.hbm %s9681_s1, 294912 }
  0x28   : > { %s7498_s15 = scalar_lea.hbm %s8125_s23, 24576  ;;  %p7504_p10 = scmp.lt.u32.totalorder %s8125_s23, %s9681_s1 }
  0x29   : > { %p7499_p6 = scmp.ne.s32.totalorder %s8125_s23, %s7498_s15  ;;  %p7505_p11 = scmp.lt.u32.totalorder %s7503_s22, %s7498_s15 }
  0x2a   : > { %p7507_p13 = scmp.lt.u32.totalorder %s7498_s15, %s8125_s23 }
  0x2b   : > { %p7501_p8 = pnand %p8134_p7, %p7499_p6  ;;  %p7506_p12 = por %p7505_p11, %p7504_p10 }
  0x2d   : > { %p7502_p9 = pneg %p7501_p8  ;;  %p7508_p0 = por %p7507_p13, %p7506_p12 }
  0x2f   : > { %p7509_p1 = pnand %p7508_p0, %p7502_p9 }
  0x31   : > { %7512 = shalt.err (!%p7509_p1)
}
  0x32   : > { %s7513_s14 = scalar_lea.vmem %s8127_s30, 24576  ;;  %s7976_s20 = smov [#allocation5]  }
  0x33   : > { %p7514_p2 = scmp.ne.s32.totalorder %s8127_s30, %s7513_s14  ;;  %s7518_s21 = sshll.u32 %s7976_s20, 4  ;;  %s7519_s21 = int_to_ptr.vmem [resolvable:$false] %s7518_s21 }
  0x34   : > { %s7520_s18 = scalar_lea.vmem %s7519_s21, 49152  ;;  %p7521_p6 = scmp.lt.s32.totalorder %s8127_s30, %s7519_s21 }
  0x35   : > { %p7516_p3 = pnand %p7514_p2, %p8134_p7  ;;  %p7522_p8 = scmp.lt.s32.totalorder %s7520_s18, %s7513_s14 }
  0x37   : > { %p7517_p4 = pneg %p7516_p3  ;;  %p7523_p10 = por %p7522_p8, %p7521_p6 }
  0x39   : > { %p7524_p11 = pnand %p7523_p10, %p7517_p4 }
  0x3b   : > { %7527 = shalt.err (!%p7524_p11)
}
  0x3c   : > { %s7977_s15 = smov 768   ;;  %s7978_s22 = smov 48  }
  0x3d   : > { %s9683_s24 = scalar_lea.sflag [#allocation6], %s8111_s16  ;;  %s6386_s20 = sshll.u32 %s8114_s17, 9 }
  0x3e   : > { %7338 = dma.hbm_to_vmem [thread:$0]  (!%p8117_p5), %s8125_s23, 24576, %s8127_s30, %s9683_s24, %s7977_s15, %s7977_s15, %s7978_s22  }
  0x3f   : > { %s6513_s21 = sshll.u32 %s7974_s28, 13  ;;  %s9684_s3 = sld [smem:[#allocation36_spill]] }
  0x40   : > { %s470_s29 = scalar_lea.vmem [#allocation8], %s6386_s20  ;;  %s8169_s12 = sshll.u32 %s8114_s17, 1 }
  0x41   : > { %s477_s13 = sshll.u32 %s470_s29, 4  ;;  %s9655_s10 = scalar_lea.sflag [#allocation9], %s8111_s16  ;;  %s8166_s13 = int_to_ptr.vmem [resolvable:$true] %s477_s13 }
  0x45   : > { %s8164_s1 = scalar_lea.hbm %s9684_s3, %s6513_s21  ;;  %s7533_s15 = scalar_lea.hbm %s9684_s3, 98304 }
  0x46   : > { %s7528_s8 = scalar_lea.hbm %s8164_s1, 8192  ;;  %p7534_p0 = scmp.lt.u32.totalorder %s8164_s1, %s9684_s3 }
  0x47   : > { %p7529_p9 = scmp.ne.s32.totalorder %s8164_s1, %s7528_s8  ;;  %p7535_p1 = scmp.lt.u32.totalorder %s7533_s15, %s7528_s8 }
  0x48   : > { %p7537_p3 = scmp.lt.u32.totalorder %s7528_s8, %s8164_s1 }
  0x49   : > { %p7531_p12 = pnand %p7529_p9, %p8134_p7  ;;  %p7536_p2 = por %p7535_p1, %p7534_p0 }
  0x4b   : > { %p7532_p13 = pneg %p7531_p12  ;;  %p7538_p4 = por %p7537_p3, %p7536_p2 }
  0x4d   : > { %p7539_p6 = pnand %p7538_p4, %p7532_p13 }
  0x4f   : > { %7542 = shalt.err (!%p7539_p6)
}
  0x50   : > { %s7543_s29 = scalar_lea.vmem %s8166_s13, 8192  ;;  %s7979_s20 = smov [#allocation8]  }
  0x51   : > { %p7544_p8 = scmp.ne.s32.totalorder %s8166_s13, %s7543_s29  ;;  %s7548_s21 = sshll.u32 %s7979_s20, 4  ;;  %s7549_s21 = int_to_ptr.vmem [resolvable:$false] %s7548_s21 }
  0x52   : > { %s7550_s14 = scalar_lea.vmem %s7549_s21, 16384  ;;  %p7551_p9 = scmp.lt.s32.totalorder %s8166_s13, %s7549_s21 }
  0x53   : > { %p7546_p10 = pnand %p7544_p8, %p8134_p7  ;;  %p7552_p12 = scmp.lt.s32.totalorder %s7550_s14, %s7543_s29 }
  0x55   : > { %p7547_p11 = pneg %p7546_p10  ;;  %p7553_p0 = por %p7552_p12, %p7551_p9 }
  0x57   : > { %p7554_p1 = pnand %p7553_p0, %p7547_p11 }
  0x59   : > { %7557 = shalt.err (!%p7554_p1)
}
  0x5a   : > { %s9656_s8 = smov 256   ;;  %s9658_s18 = smov 16  }
  0x5b   : > { %7344 = dma.hbm_to_vmem [thread:$0]  (!%p8117_p5), %s8164_s1, 8192, %s8166_s13, %s9655_s10, %s9656_s8, %s9656_s8, %s9658_s18  }
  0x5c   : > { %s8199_s23 = sshll.u32 %s7974_s28, 5  ;;  %s9685_s5 = sld [smem:[#allocation37_spill]] }
  0x5d   : > { %s510_s24 = scalar_lea.vmem [#allocation11], %s8169_s12  ;;  %s6398_s20 = sshll.u32 %s8114_s17, 10 }
  0x5e   : > { %s518_s29 = sshll.u32 %s510_s24, 4  ;;  %s9657_s21 = scalar_lea.sflag [#allocation12], %s8111_s16  ;;  %s8208_s29 = int_to_ptr.vmem [resolvable:$true] %s518_s29 }
  0x62   : > { %s8205_s22 = scalar_lea.hbm %s9685_s5, %s8199_s23  ;;  %s7563_s30 = scalar_lea.hbm %s9685_s5, 384 }
  0x63   : > { %s7558_s14 = scalar_lea.hbm %s8205_s22, 32  ;;  %p7564_p4 = scmp.lt.u32.totalorder %s8205_s22, %s9685_s5 }
  0x64   : > { %p7559_p13 = scmp.ne.s32.totalorder %s8205_s22, %s7558_s14  ;;  %p7565_p6 = scmp.lt.u32.totalorder %s7563_s30, %s7558_s14 }
  0x65   : > { %p7567_p10 = scmp.lt.u32.totalorder %s7558_s14, %s8205_s22 }
  0x66   : > { %p7561_p2 = pnand %p7559_p13, %p8134_p7  ;;  %p7566_p8 = por %p7565_p6, %p7564_p4 }
  0x68   : > { %p7562_p3 = pneg %p7561_p2  ;;  %p7568_p11 = por %p7567_p10, %p7566_p8 }
  0x6a   : > { %p7569_p9 = pnand %p7568_p11, %p7562_p3 }
  0x6c   : > { %7572 = shalt.err (!%p7569_p9)
}
  0x6d   : > { %s7573_s24 = scalar_lea.vmem %s8208_s29, 32  ;;  %s7982_s1 = smov [#allocation11]  }
  0x6e   : > { %p7574_p12 = scmp.ne.s32.totalorder %s8208_s29, %s7573_s24  ;;  %s7578_s13 = sshll.u32 %s7982_s1, 4  ;;  %s7579_s13 = int_to_ptr.vmem [resolvable:$false] %s7578_s13 }
  0x6f   : > { %s7580_s10 = scalar_lea.vmem %s7579_s13, 64  ;;  %p7581_p13 = scmp.lt.s32.totalorder %s8208_s29, %s7579_s13 }
  0x70   : > { %p7576_p0 = pnand %p7574_p12, %p8134_p7  ;;  %p7582_p2 = scmp.lt.s32.totalorder %s7580_s10, %s7573_s24 }
  0x72   : > { %p7577_p1 = pneg %p7576_p0  ;;  %p7583_p4 = por %p7582_p2, %p7581_p13 }
  0x74   : > { %p7584_p6 = pnand %p7583_p4, %p7577_p1 }
  0x76   : > { %7587 = shalt.err (!%p7584_p6)
}
  0x77   : > { %7350 = dma.hbm_to_vmem [thread:$0]  (!%p8117_p5), %s8205_s22, 32, %s8208_s29, %s9657_s21  }
  0x78   : > { %s6517_s14 = sshll.u32 %s7974_s28, 14  ;;  %s9686_s7 = sld [smem:[#allocation38_spill]] }
  0x79   : > { %s548_s1 = scalar_lea.vmem [#allocation14], %s6398_s20  ;;  %s9663_s10 = scalar_lea.sflag [#allocation15], %s8111_s16 }
  0x7a   : > { %s555_s13 = sshll.u32 %s548_s1, 4  ;;  %s8245_s13 = int_to_ptr.vmem [resolvable:$true] %s555_s13 }
  0x7e   : > { %s8241_s24 = scalar_lea.hbm %s9686_s7, %s6517_s14  ;;  %s7593_s30 = scalar_lea.hbm %s9686_s7, 196608 }
  0x7f   : > { %s7588_s8 = scalar_lea.hbm %s8241_s24, 16384  ;;  %p7594_p11 = scmp.lt.u32.totalorder %s8241_s24, %s9686_s7 }
  0x80   : > { %p7589_p3 = scmp.ne.s32.totalorder %s8241_s24, %s7588_s8  ;;  %p7595_p9 = scmp.lt.u32.totalorder %s7593_s30, %s7588_s8 }
  0x81   : > { %p7597_p0 = scmp.lt.u32.totalorder %s7588_s8, %s8241_s24 }
  0x82   : > { %p7591_p8 = pnand %p7589_p3, %p8134_p7  ;;  %p7596_p12 = por %p7595_p9, %p7594_p11 }
  0x84   : > { %p7592_p10 = pneg %p7591_p8  ;;  %p7598_p1 = por %p7597_p0, %p7596_p12 }
  0x86   : > { %p7599_p13 = pnand %p7598_p1, %p7592_p10 }
  0x88   : > { %7602 = shalt.err (!%p7599_p13)
}
  0x89   : > { %s7603_s1 = scalar_lea.vmem %s8245_s13, 16384  ;;  %s7983_s22 = smov [#allocation14]  }
  0x8a   : > { %p7604_p2 = scmp.ne.s32.totalorder %s8245_s13, %s7603_s1  ;;  %s7608_s29 = sshll.u32 %s7983_s22, 4  ;;  %s7609_s29 = int_to_ptr.vmem [resolvable:$false] %s7608_s29 }
  0x8b   : > { %s7610_s21 = scalar_lea.vmem %s7609_s29, 32768  ;;  %p7611_p3 = scmp.lt.s32.totalorder %s8245_s13, %s7609_s29 }
  0x8c   : > { %p7606_p4 = pnand %p7604_p2, %p8134_p7  ;;  %p7612_p8 = scmp.lt.s32.totalorder %s7610_s21, %s7603_s1 }
  0x8e   : > { %p7607_p6 = pneg %p7606_p4  ;;  %p7613_p11 = por %p7612_p8, %p7611_p3 }
  0x90   : > { %p7614_p9 = pnand %p7613_p11, %p7607_p6 }
  0x92   : > { %7617 = shalt.err (!%p7614_p9)
}
  0x93   : > { %s7984_s8 = smov 512   ;;  %s7985_s30 = smov 32  }
  0x94   : > { %7356 = dma.hbm_to_vmem [thread:$0]  (!%p8117_p5), %s8241_s24, 16384, %s8245_s13, %s9663_s10, %s7984_s8, %s7984_s8, %s7985_s30  }
  0x95   : > { %s8276_s1 = scalar_lea.hbm %s9643_s9, %s6517_s14  ;;  %s588_s29 = scalar_lea.vmem [#allocation17], %s6398_s20 }
  0x96   : > { %s595_s21 = sshll.u32 %s588_s29, 4  ;;  %s9662_s18 = scalar_lea.sflag [#allocation18], %s8111_s16  ;;  %s8280_s21 = int_to_ptr.vmem [resolvable:$true] %s595_s21 }
  0x97   : > { %s7618_s3 = scalar_lea.hbm %s8276_s1, 16384  ;;  %s7623_s14 = scalar_lea.hbm %s9643_s9, 196608 }
  0x98   : > { %p7619_p10 = scmp.ne.s32.totalorder %s8276_s1, %s7618_s3  ;;  %p7624_p1 = scmp.lt.u32.totalorder %s8276_s1, %s9643_s9 }
  0x99   : > { %p7625_p13 = scmp.lt.u32.totalorder %s7623_s14, %s7618_s3  ;;  %p7627_p4 = scmp.lt.u32.totalorder %s7618_s3, %s8276_s1 }
  0x9a   : > { %p7621_p12 = pnand %p7619_p10, %p8134_p7 }
  0x9b   : > { %p7626_p2 = por %p7625_p13, %p7624_p1 }
  0x9c   : > { %p7622_p0 = pneg %p7621_p12 }
  0x9d   : > { %p7628_p6 = por %p7627_p4, %p7626_p2 }
  0x9f   : > { %p7629_p3 = pnand %p7628_p6, %p7622_p0 }
  0xa1   : > { %7632 = shalt.err (!%p7629_p3)
}
  0xa2   : > { %s7633_s20 = scalar_lea.vmem %s8280_s21, 16384  ;;  %s7986_s15 = smov [#allocation17]  }
  0xa3   : > { %p7634_p8 = scmp.ne.s32.totalorder %s8280_s21, %s7633_s20  ;;  %s7638_s22 = sshll.u32 %s7986_s15, 4  ;;  %s7639_s22 = int_to_ptr.vmem [resolvable:$false] %s7638_s22 }
  0xa4   : > { %s7640_s29 = scalar_lea.vmem %s7639_s22, 32768  ;;  %p7641_p10 = scmp.lt.s32.totalorder %s8280_s21, %s7639_s22 }
  0xa5   : > { %p7636_p11 = pnand %p7634_p8, %p8134_p7  ;;  %p7642_p12 = scmp.lt.s32.totalorder %s7640_s29, %s7633_s20 }
  0xa7   : > { %p7637_p9 = pneg %p7636_p11  ;;  %p7643_p1 = por %p7642_p12, %p7641_p10 }
  0xa9   : > { %p7644_p13 = pnand %p7643_p1, %p7637_p9 }
  0xab   : > { %7647 = shalt.err (!%p7644_p13)
}
  0xac   : > { %s9687_s3 = smov 16   ;;  %s9688_s24 = smov 256  }
  0xad   : > { %7362 = dma.hbm_to_vmem [thread:$0]  (!%p8117_p5), %s8276_s1, 16384, %s8280_s21, %s9662_s18, %s9688_s24, %s9688_s24, %s9687_s3  }
  0xae   : > { %s8313_s8 = scalar_lea.hbm %s9645_s11, %s8199_s23  ;;  %s628_s30 = scalar_lea.vmem [#allocation20], %s8169_s12 }
  0xaf   : > { %s636_s20 = sshll.u32 %s628_s30, 4  ;;  %s9661_s15 = scalar_lea.sflag [#allocation21], %s8111_s16  ;;  %s637_s20 = int_to_ptr.vmem [resolvable:$true] %s636_s20 }
  0xb0   : > { %s7648_s22 = scalar_lea.hbm %s8313_s8, 32  ;;  %s7653_s21 = scalar_lea.hbm %s9645_s11, 384 }
  0xb1   : > { %p7649_p0 = scmp.ne.s32.totalorder %s8313_s8, %s7648_s22  ;;  %p7654_p6 = scmp.lt.u32.totalorder %s8313_s8, %s9645_s11 }
  0xb2   : > { %p7655_p3 = scmp.lt.u32.totalorder %s7653_s21, %s7648_s22  ;;  %p7657_p11 = scmp.lt.u32.totalorder %s7648_s22, %s8313_s8 }
  0xb3   : > { %p7651_p2 = pnand %p7649_p0, %p8134_p7 }
  0xb4   : > { %p7656_p8 = por %p7655_p3, %p7654_p6 }
  0xb5   : > { %p7652_p4 = pneg %p7651_p2 }
  0xb6   : > { %p7658_p9 = por %p7657_p11, %p7656_p8 }
  0xb8   : > { %p7659_p10 = pnand %p7658_p9, %p7652_p4 }
  0xba   : > { %7662 = shalt.err (!%p7659_p10)
}
  0xbb   : > { %s7663_s13 = scalar_lea.vmem %s637_s20, 32  ;;  %s7987_s14 = smov [#allocation20]  }
  0xbc   : > { %p7664_p12 = scmp.ne.s32.totalorder %s637_s20, %s7663_s13  ;;  %s7668_s30 = sshll.u32 %s7987_s14, 4  ;;  %s7669_s30 = int_to_ptr.vmem [resolvable:$false] %s7668_s30 }
  0xbd   : > { %s7670_s29 = scalar_lea.vmem %s7669_s30, 64  ;;  %p7671_p0 = scmp.lt.s32.totalorder %s637_s20, %s7669_s30 }
  0xbe   : > { %p7666_p1 = pnand %p7664_p12, %p8134_p7  ;;  %p7672_p2 = scmp.lt.s32.totalorder %s7670_s29, %s7663_s13 }
  0xc0   : > { %p7667_p13 = pneg %p7666_p1  ;;  %p7673_p5 = por %p7672_p2, %p7671_p0 }
  0xc2   : > { %p7674_p3 = pnand %p7673_p5, %p7667_p13 }
  0xc4   : > { %7677 = shalt.err (!%p7674_p3)
}
  0xc5   : > { %p9689_p6 = scmp.ne.s32.totalorder %s9680_s19, 0  ;;  %s8337_s22 = sadd.s32 4294967295, %s7974_s28  }
  0xc6   : > { %p84_p5 = scmp.ne.s32.totalorder %s7966_s26, %s7962_s25  ;;  %p9664_p4 = scmp.eq.s32.totalorder %s8337_s22, 0 }
  0xc7   : > { %7368 = dma.hbm_to_vmem [thread:$0]  (!%p9689_p6), %s8313_s8, 32, %s637_s20, %s9661_s15  }
  0xc8   : > { %p6381_p8 = scmp.ge.s32.totalorder %s7974_s28, 1  ;;  %p402_p11 = scmp.lt.s32.totalorder %s7974_s28, 13 }
  0xc9   : > { %p8346_p9 = por %p9664_p4, %p84_p5  ;;  %s7988_s8 = smov [#allocation2]  }
  0xca   : > { %p8351_p12 = pnand %p6381_p8, %p402_p11  ;;  %s415_s20 = sshll.u32 %s7988_s8, 4  ;;  %s416_s20 = int_to_ptr.vmem [resolvable:$true] %s415_s20 }
  0xcb   : > { %s9690_s1 = scalar_select %p8346_p9, 1, 0 }
  0xcc   : > { %s9691_s21 = scalar_select %p8351_p12, 1, 0 }
  0xcd   : > { %s7295_s3 = smul.u32 6, %s8114_s17  ;;  %p7331_p1 = pneg %p8351_p12 }
  0xce   : > { %s7296_s25 = smul.u32 96, %s7974_s28  ;;  %s7678_s10 = scalar_lea.hbm %s9634_s0, 64 }
  0xcf   : > { %p8361_p13 = pnand %p7331_p1, %p9664_p4  ;;  %s451_s13 = scalar_lea.vmem [#allocation7], %s7295_s3 }
  0xd0   : > { %s459_s14 = sshll.u32 %s451_s13, 4  ;;  %s8368_s15 = scalar_lea.hbm %s9636_s2, %s7296_s25  ;;  %s8370_s14 = int_to_ptr.vmem [resolvable:$true] %s459_s14 }
  0xd1   : > { %p7679_p0 = scmp.ne.s32.totalorder %s9634_s0, %s7678_s10  ;;  %p7680_p2 = pneg %p8361_p13 }
  0xd2   : > { %p7685_p8 = scmp.lt.u32.totalorder %s7678_s10, %s9634_s0 }
  0xd3   : > { %p7681_p3 = pnand %p7680_p2, %p7679_p0 }
  0xd5   : > { %p7682_p5 = pneg %p7681_p3 }
  0xd7   : > { %p7687_p11 = pnand %p7685_p8, %p7682_p5 }
  0xd9   : > { %7690 = shalt.err (!%p7687_p11)
}
  0xda   : > { %s7691_s25 = scalar_lea.vmem %s416_s20, 64  ;;  %p7699_p9 = scmp.lt.s32.totalorder %s416_s20, %s416_s20 }
  0xdb   : > { %p7692_p1 = scmp.ne.s32.totalorder %s416_s20, %s7691_s25  ;;  %p7700_p12 = scmp.lt.s32.totalorder %s7691_s25, %s7691_s25 }
  0xdd   : > { %p7694_p10 = pnand %p7692_p1, %p7680_p2  ;;  %p7701_p6 = por %p7700_p12, %p7699_p9 }
  0xdf   : > { %p7695_p4 = pneg %p7694_p10 }
  0xe1   : > { %p7702_p7 = pnand %p7701_p6, %p7695_p4 }
  0xe3   : > { %7705 = shalt.err (!%p7702_p7)
}
  0xe4   : > { %7334 = dma.hbm_to_vmem [thread:$0]  (!%p8361_p13), %s9634_s0, 64, %s416_s20, [#allocation3]  }
  0xe5   : > { %s7706_s18 = scalar_lea.hbm %s8368_s15, 96  ;;  %p9693_p2 = scmp.ne.s32.totalorder %s9682_s27, 0 }
  0xe6   : > { %p7707_p0 = scmp.ne.s32.totalorder %s8368_s15, %s7706_s18  ;;  %s7711_s29 = scalar_lea.hbm %s9636_s2, 1152 }
  0xe7   : > { %p7712_p7 = scmp.lt.u32.totalorder %s8368_s15, %s9636_s2  ;;  %p7713_p6 = scmp.lt.u32.totalorder %s7711_s29, %s7706_s18 }
  0xe8   : > { %p7709_p10 = pnand %p7707_p0, %p9693_p2  ;;  %p7715_p9 = scmp.lt.u32.totalorder %s7706_s18, %s8368_s15 }
  0xe9   : > { %p7714_p4 = por %p7713_p6, %p7712_p7 }
  0xea   : > { %p7710_p3 = pneg %p7709_p10 }
  0xeb   : > { %p7716_p12 = por %p7715_p9, %p7714_p4 }
  0xed   : > { %p7717_p5 = pnand %p7716_p12, %p7710_p3 }
  0xef   : > { %7720 = shalt.err (!%p7717_p5)
}
  0xf0   : > { %s7721_s20 = scalar_lea.vmem %s8370_s14, 96  ;;  %s7989_s3 = smov [#allocation7]  }
  0xf1   : > { %p7722_p13 = scmp.ne.s32.totalorder %s8370_s14, %s7721_s20  ;;  %s7726_s13 = sshll.u32 %s7989_s3, 4  ;;  %s7727_s13 = int_to_ptr.vmem [resolvable:$false] %s7726_s13 }
  0xf2   : > { %s7728_s25 = scalar_lea.vmem %s7727_s13, 192  ;;  %p7729_p1 = scmp.lt.s32.totalorder %s8370_s14, %s7727_s13 }
  0xf3   : > { %p7724_p8 = pnand %p7722_p13, %p9693_p2  ;;  %p7730_p0 = scmp.lt.s32.totalorder %s7728_s25, %s7721_s20 }
  0xf5   : > { %p7725_p11 = pneg %p7724_p8  ;;  %p7731_p10 = por %p7730_p0, %p7729_p1 }
  0xf7   : > { %p7732_p7 = pnand %p7731_p10, %p7725_p11 }
  0xf9   : > { %7735 = shalt.err (!%p7732_p7)
}
  0xfa   : > { %p9694_p3 = scmp.ne.s32.totalorder %s9680_s19, 0  ;;  %s9695_s5 = scalar_lea.sflag [#allocation6], %s8111_s16 }
  0xfb   : > { %s8415_s10 = scalar_lea.hbm %s9638_s4, %s8199_s23  ;;  %s491_s30 = scalar_lea.vmem [#allocation10], %s8169_s12 }
  0xfc   : > { %7341 = dma.hbm_to_vmem [thread:$0]  (!%p9694_p3), %s8368_s15, 96, %s8370_s14, %s9695_s5  }
  0xfd   : > { %s499_s29 = sshll.u32 %s491_s30, 4  ;;  %s7736_s8 = scalar_lea.hbm %s8415_s10, 32  ;;  %s500_s29 = int_to_ptr.vmem [resolvable:$true] %s499_s29 }
  0xfe   : > { %p7737_p6 = scmp.ne.s32.totalorder %s8415_s10, %s7736_s8  ;;  %s7741_s15 = scalar_lea.hbm %s9638_s4, 384 }
  0xff   : > { %p7742_p12 = scmp.lt.u32.totalorder %s8415_s10, %s9638_s4  ;;  %p7743_p5 = scmp.lt.u32.totalorder %s7741_s15, %s7736_s8 }
 0x100   : > { %p7739_p4 = pnand %p7737_p6, %p9693_p2  ;;  %p7745_p8 = scmp.lt.u32.totalorder %s7736_s8, %s8415_s10 }
 0x101   : > { %p7744_p13 = por %p7743_p5, %p7742_p12 }
 0x102   : > { %p7740_p9 = pneg %p7739_p4 }
 0x103   : > { %p7746_p11 = por %p7745_p8, %p7744_p13 }
 0x105   : > { %p7747_p1 = pnand %p7746_p11, %p7740_p9 }
 0x107   : > { %7750 = shalt.err (!%p7747_p1)
}
 0x108   : > { %s7751_s13 = scalar_lea.vmem %s500_s29, 32  ;;  %s7990_s25 = smov [#allocation10]  }
 0x109   : > { %p7752_p0 = scmp.ne.s32.totalorder %s500_s29, %s7751_s13  ;;  %s7756_s5 = sshll.u32 %s7990_s25, 4  ;;  %s7757_s5 = int_to_ptr.vmem [resolvable:$false] %s7756_s5 }
 0x10a   : > { %s7758_s7 = scalar_lea.vmem %s7757_s5, 64  ;;  %p7759_p6 = scmp.lt.s32.totalorder %s500_s29, %s7757_s5 }
 0x10b   : > { %p7754_p10 = pnand %p7752_p0, %p9693_p2  ;;  %p7760_p4 = scmp.lt.s32.totalorder %s7758_s7, %s7751_s13 }
 0x10d   : > { %p7755_p7 = pneg %p7754_p10  ;;  %p7761_p3 = por %p7760_p4, %p7759_p6 }
 0x10f   : > { %p7762_p5 = pnand %p7761_p3, %p7755_p7 }
 0x111   : > { %7765 = shalt.err (!%p7762_p5)
}
 0x112   : > { %p9696_p12 = scmp.ne.s32.totalorder %s9680_s19, 0  ;;  %s9697_s18 = scalar_lea.sflag [#allocation9], %s8111_s16 }
 0x113   : > { %s8441_s24 = scalar_lea.hbm %s9640_s6, %s8199_s23  ;;  %s529_s20 = scalar_lea.vmem [#allocation13], %s8169_s12 }
 0x114   : > { %7347 = dma.hbm_to_vmem [thread:$0]  (!%p9696_p12), %s8415_s10, 32, %s500_s29, %s9697_s18  }
 0x115   : > { %s537_s15 = sshll.u32 %s529_s20, 4  ;;  %s6401_s14 = sshll.u32 %s8114_s17, 2  ;;  %s538_s15 = int_to_ptr.vmem [resolvable:$true] %s537_s15 }
 0x116   : > { %s7766_s3 = scalar_lea.hbm %s8441_s24, 32  ;;  %s7771_s29 = scalar_lea.hbm %s9640_s6, 384 }
 0x117   : > { %p7767_p3 = scmp.ne.s32.totalorder %s8441_s24, %s7766_s3  ;;  %p7772_p8 = scmp.lt.u32.totalorder %s8441_s24, %s9640_s6 }
 0x118   : > { %p7773_p11 = scmp.lt.u32.totalorder %s7771_s29, %s7766_s3  ;;  %p7775_p0 = scmp.lt.u32.totalorder %s7766_s3, %s8441_s24 }
 0x119   : > { %p7769_p9 = pnand %p7767_p3, %p9693_p2 }
 0x11a   : > { %p7774_p1 = por %p7773_p11, %p7772_p8 }
 0x11b   : > { %p7770_p13 = pneg %p7769_p9 }
 0x11c   : > { %p7776_p10 = por %p7775_p0, %p7774_p1 }
 0x11e   : > { %p7777_p7 = pnand %p7776_p10, %p7770_p13 }
 0x120   : > { %7780 = shalt.err (!%p7777_p7)
}
 0x121   : > { %s7781_s7 = scalar_lea.vmem %s538_s15, 32  ;;  %s7991_s18 = smov [#allocation13]  }
 0x122   : > { %p7782_p6 = scmp.ne.s32.totalorder %s538_s15, %s7781_s7  ;;  %s7786_s30 = sshll.u32 %s7991_s18, 4  ;;  %s7787_s30 = int_to_ptr.vmem [resolvable:$false] %s7786_s30 }
 0x123   : > { %s7788_s8 = scalar_lea.vmem %s7787_s30, 64  ;;  %p7789_p3 = scmp.lt.s32.totalorder %s538_s15, %s7787_s30 }
 0x124   : > { %p7784_p4 = pnand %p7782_p6, %p9693_p2  ;;  %p7790_p9 = scmp.lt.s32.totalorder %s7788_s8, %s7781_s7 }
 0x126   : > { %p7785_p5 = pneg %p7784_p4  ;;  %p7791_p12 = por %p7790_p9, %p7789_p3 }
 0x128   : > { %p7792_p8 = pnand %p7791_p12, %p7785_p5 }
 0x12a   : > { %7795 = shalt.err (!%p7792_p8)
}
 0x12b   : > { %p9698_p11 = scmp.ne.s32.totalorder %s9680_s19, 0  ;;  %s9699_s20 = scalar_lea.sflag [#allocation12], %s8111_s16 }
 0x12c   : > { %s6518_s3 = sshll.u32 %s7974_s28, 6  ;;  %s9700_s29 = sld [smem:[#allocation39_spill]] }
 0x12d   : > { %7353 = dma.hbm_to_vmem [thread:$0]  (!%p9698_p11), %s8441_s24, 32, %s538_s15, %s9699_s20  }
 0x12e   : > { %s569_s5 = scalar_lea.vmem [#allocation16], %s6401_s14 }
 0x12f   : > { %s577_s7 = sshll.u32 %s569_s5, 4  ;;  %s578_s7 = int_to_ptr.vmem [resolvable:$true] %s577_s7 }
 0x132   : > { %s8468_s25 = scalar_lea.hbm %s9700_s29, %s6518_s3  ;;  %s7801_s15 = scalar_lea.hbm %s9700_s29, 768 }
 0x133   : > { %s7796_s18 = scalar_lea.hbm %s8468_s25, 64  ;;  %p7802_p0 = scmp.lt.u32.totalorder %s8468_s25, %s9700_s29 }
 0x134   : > { %p7797_p12 = scmp.ne.s32.totalorder %s8468_s25, %s7796_s18  ;;  %p7803_p10 = scmp.lt.u32.totalorder %s7801_s15, %s7796_s18 }
 0x135   : > { %p7805_p6 = scmp.lt.u32.totalorder %s7796_s18, %s8468_s25 }
 0x136   : > { %p7799_p13 = pnand %p7797_p12, %p9693_p2  ;;  %p7804_p7 = por %p7803_p10, %p7802_p0 }
 0x138   : > { %p7800_p1 = pneg %p7799_p13  ;;  %p7806_p4 = por %p7805_p6, %p7804_p7 }
 0x13a   : > { %p7807_p5 = pnand %p7806_p4, %p7800_p1 }
 0x13c   : > { %7810 = shalt.err (!%p7807_p5)
}
 0x13d   : > { %s7811_s17 = scalar_lea.vmem %s578_s7, 64  ;;  %s7992_s14 = smov [#allocation16]  }
 0x13e   : > { %p7812_p3 = scmp.ne.s32.totalorder %s578_s7, %s7811_s17  ;;  %s7816_s20 = sshll.u32 %s7992_s14, 4  ;;  %s7817_s20 = int_to_ptr.vmem [resolvable:$false] %s7816_s20 }
 0x13f   : > { %s7818_s3 = scalar_lea.vmem %s7817_s20, 128  ;;  %p7819_p12 = scmp.lt.s32.totalorder %s578_s7, %s7817_s20 }
 0x140   : > { %p7814_p9 = pnand %p7812_p3, %p9693_p2  ;;  %p7820_p13 = scmp.lt.s32.totalorder %s7818_s3, %s7811_s17 }
 0x142   : > { %p7815_p8 = pneg %p7814_p9  ;;  %p7821_p11 = por %p7820_p13, %p7819_p12 }
 0x144   : > { %p7822_p0 = pnand %p7821_p11, %p7815_p8 }
 0x146   : > { %7825 = shalt.err (!%p7822_p0)
}
 0x147   : > { %p9701_p10 = scmp.ne.s32.totalorder %s9680_s19, 0  ;;  %s9702_s13 = scalar_lea.sflag [#allocation15], %s8111_s16 }
 0x148   : > { %s9703_s18 = sld [smem:[#allocation40_spill]]  ;;  %s609_s28 = scalar_lea.vmem [#allocation19], %s8169_s12 }
 0x149   : > { %7359 = dma.hbm_to_vmem [thread:$0]  (!%p9701_p10), %s8468_s25, 64, %s578_s7, %s9702_s13  }
 0x14a   : > { %s617_s15 = sshll.u32 %s609_s28, 4  ;;  %s618_s15 = int_to_ptr.vmem [resolvable:$true] %s617_s15 }
 0x14e   : > { %s8495_s24 = scalar_lea.hbm %s9703_s18, %s8199_s23  ;;  %s7831_s25 = scalar_lea.hbm %s9703_s18, 384 }
 0x14f   : > { %s7826_s30 = scalar_lea.hbm %s8495_s24, 32  ;;  %p7832_p6 = scmp.lt.u32.totalorder %s8495_s24, %s9703_s18 }
 0x150   : > { %p7827_p11 = scmp.ne.s32.totalorder %s8495_s24, %s7826_s30  ;;  %p7833_p4 = scmp.lt.u32.totalorder %s7831_s25, %s7826_s30 }
 0x151   : > { %p7835_p3 = scmp.lt.u32.totalorder %s7826_s30, %s8495_s24 }
 0x152   : > { %p7829_p1 = pnand %p7827_p11, %p9693_p2  ;;  %p7834_p5 = por %p7833_p4, %p7832_p6 }
 0x154   : > { %p7830_p7 = pneg %p7829_p1  ;;  %p7836_p9 = por %p7835_p3, %p7834_p5 }
 0x156   : > { %p7837_p8 = pnand %p7836_p9, %p7830_p7 }
 0x158   : > { %7840 = shalt.err (!%p7837_p8)
}
 0x159   : > { %s7841_s20 = scalar_lea.vmem %s618_s15, 32  ;;  %s7993_s3 = smov [#allocation19]  }
 0x15a   : > { %p7842_p12 = scmp.ne.s32.totalorder %s618_s15, %s7841_s20  ;;  %s7846_s13 = sshll.u32 %s7993_s3, 4  ;;  %s7847_s13 = int_to_ptr.vmem [resolvable:$false] %s7846_s13 }
 0x15b   : > { %s7848_s10 = scalar_lea.vmem %s7847_s13, 64  ;;  %p7849_p11 = scmp.lt.s32.totalorder %s618_s15, %s7847_s13 }
 0x15c   : > { %p7844_p13 = pnand %p7842_p12, %p9693_p2  ;;  %p7850_p1 = scmp.lt.s32.totalorder %s7848_s10, %s7841_s20 }
 0x15e   : > { %p7845_p0 = pneg %p7844_p13  ;;  %p7851_p10 = por %p7850_p1, %p7849_p11 }
 0x160   : > { %p7852_p4 = pnand %p7851_p10, %p7845_p0 }
 0x162   : > { %7855 = shalt.err (!%p7852_p4)
}
 0x163   : > { %p9704_p6 = scmp.ne.s32.totalorder %s9680_s19, 0  ;;  %s9705_s5 = scalar_lea.sflag [#allocation18], %s8111_s16 }
 0x164   : > { %s9706_s8 = sld [smem:[#allocation41_spill]]  ;;  %s647_s25 = scalar_lea.vmem [#allocation22], %s8169_s12 }
 0x165   : > { %7365 = dma.hbm_to_vmem [thread:$0]  (!%p9704_p6), %s8495_s24, 32, %s618_s15, %s9705_s5  }
 0x166   : > { %s655_s7 = sshll.u32 %s647_s25, 4  ;;  %s656_s7 = int_to_ptr.vmem [resolvable:$true] %s655_s7 }
 0x16a   : > { %s8521_s17 = scalar_lea.hbm %s9706_s8, %s8199_s23  ;;  %s7861_s24 = scalar_lea.hbm %s9706_s8, 384 }
 0x16b   : > { %s7856_s14 = scalar_lea.hbm %s8521_s17, 32  ;;  %p7862_p3 = scmp.lt.u32.totalorder %s8521_s17, %s9706_s8 }
 0x16c   : > { %p7857_p10 = scmp.ne.s32.totalorder %s8521_s17, %s7856_s14  ;;  %p7863_p9 = scmp.lt.u32.totalorder %s7861_s24, %s7856_s14 }
 0x16d   : > { %p7865_p12 = scmp.lt.u32.totalorder %s7856_s14, %s8521_s17 }
 0x16e   : > { %p7859_p7 = pnand %p7857_p10, %p9693_p2  ;;  %p7864_p8 = por %p7863_p9, %p7862_p3 }
 0x170   : > { %p7860_p5 = pneg %p7859_p7  ;;  %p7866_p13 = por %p7865_p12, %p7864_p8 }
 0x172   : > { %p7867_p0 = pnand %p7866_p13, %p7860_p5 }
 0x174   : > { %7870 = shalt.err (!%p7867_p0)
}
 0x175   : > { %s7871_s12 = scalar_lea.vmem %s656_s7, 32  ;;  %s7994_s23 = smov [#allocation22]  }
 0x176   : > { %p7872_p11 = scmp.ne.s32.totalorder %s656_s7, %s7871_s12  ;;  %s7876_s10 = sshll.u32 %s7994_s23, 4  ;;  %s7877_s10 = int_to_ptr.vmem [resolvable:$false] %s7876_s10 }
 0x177   : > { %s7878_s5 = scalar_lea.vmem %s7877_s10, 64  ;;  %p7879_p10 = scmp.lt.s32.totalorder %s656_s7, %s7877_s10 }
 0x178   : > { %p7874_p1 = pnand %p7872_p11, %p9693_p2  ;;  %p7880_p7 = scmp.lt.s32.totalorder %s7878_s5, %s7871_s12 }
 0x17a   : > { %p7875_p4 = pneg %p7874_p1  ;;  %p7881_p6 = por %p7880_p7, %p7879_p10 }
 0x17c   : > { %p7882_p3 = pnand %p7881_p6, %p7875_p4 }
 0x17e   : > { %7885 = shalt.err (!%p7882_p3)
}
 0x17f   : > { %p9707_p9 = scmp.ne.s32.totalorder %s9680_s19, 0  ;;  %s9708_s28 = scalar_lea.sflag [#allocation21], %s8111_s16 }
 0x180   : > { %p9709_p5 = scmp.ne.s32.totalorder %s9691_s21, 0 }
 0x181   : > { %7371 = dma.hbm_to_vmem [thread:$0]  (!%p9707_p9), %s8521_s17, 32, %s656_s7, %s9708_s28  }
 0x182   : > { %664 = sbr.rel (%p9709_p5) target bundleno = 9099 (0x238b), region = 72  ;;  %p9710_p2 = scmp.eq.s32.totalorder (!%p9709_p5), %s8337_s22, 0 }
 0x189   : > { %7929 = dma.done.wait (%p9710_p2), [#allocation3], 64   ;;  %p9711_p8 = pmov %p9710_p2 }
 0x18a   : > { %s8550_s27 = sand.u32 1, %s8337_s22   ;;  %s672_s19 = sand.u32 1, %s7966_s26  }
 0x18b   : > { %7931 = vsyncadd (%p9711_p8), [#allocation3], 4294967232  ;;  %s7297_s30 = smul.u32 1536, %s672_s19  ;;  %s671_s16 = scalar_lea.sflag [#allocation6], %s8550_s27 }
 0x18c   : > { %p9712_p6 = scmp.ne.s32.totalorder %s9690_s1, 0 }
 0x18d   : > { %s8554_s25 = scalar_lea.vmem [#allocation5], %s7297_s30 }
 0x18e   : > { %7933 = dma.done.wait (%p9712_p6), %s671_s16, 24672  }
 0x18f   : > { %7935 = vsyncadd (%p9712_p6), %s671_s16, 4294942624  ;;  %s7298_s21 = smul.u32 6, %s672_s19  ;;  %s6418_s17 = sshll.u32 %s672_s19, 9 }
 0x190   : > { %s689_s14 = scalar_lea.sflag [#allocation9], %s8550_s27  ;;  %s8563_s20 = scalar_lea.vmem [#allocation8], %s6418_s17 }
 0x191   : > { %s8560_s7 = scalar_lea.vmem [#allocation7], %s7298_s21 }
 0x192   : > { %7937 = dma.done.wait (%p9712_p6), %s689_s14, 8224  }
 0x193   : > { %7939 = vsyncadd (%p9712_p6), %s689_s14, 4294959072  ;;  %s8569_s3 = sshll.u32 %s672_s19, 1  ;;  %s707_s15 = scalar_lea.sflag [#allocation12], %s8550_s27 }
 0x194   : > { %s701_s24 = scalar_lea.vmem [#allocation10], %s8569_s3  ;;  %s710_s13 = scalar_lea.vmem [#allocation11], %s8569_s3 }
 0x195   : > { %7941 = dma.done.wait (%p9712_p6), %s707_s15, 64  }
 0x196   : > { %7943 = vsyncadd (%p9712_p6), %s707_s15, 4294967232  ;;  %s6422_s12 = sshll.u32 %s672_s19, 10  ;;  %s719_s23 = scalar_lea.vmem [#allocation13], %s8569_s3 }
 0x197   : > { %s725_s10 = scalar_lea.sflag [#allocation15], %s8550_s27  ;;  %s8580_s5 = scalar_lea.vmem [#allocation14], %s6422_s12 }
 0x198   : > { %7945 = dma.done.wait (%p9712_p6), %s725_s10, 16448  }
 0x199   : > { %7947 = vsyncadd (%p9712_p6), %s725_s10, 4294950848  ;;  %s6423_s28 = sshll.u32 %s672_s19, 2  ;;  %s743_s16 = scalar_lea.sflag [#allocation18], %s8550_s27 }
 0x19a   : > { %s8586_s30 = scalar_lea.vmem [#allocation16], %s6423_s28  ;;  %s8589_s21 = scalar_lea.vmem [#allocation17], %s6422_s12 }
 0x19b   : > { %7949 = dma.done.wait (%p9712_p6), %s743_s16, 16416  }
 0x19c   : > { %7951 = vsyncadd (%p9712_p6), %s743_s16, 4294950880  ;;  %s755_s17 = scalar_lea.vmem [#allocation19], %s8569_s3  ;;  %s761_s14 = scalar_lea.sflag [#allocation21], %s8550_s27 }
 0x19d   : > { %s764_s15 = scalar_lea.vmem [#allocation20], %s8569_s3 }
 0x19e   : > { %7953 = dma.done.wait (%p9712_p6), %s761_s14, 64  }
 0x19f   : > { %7955 = vsyncadd (%p9712_p6), %s761_s14, 4294967232  ;;  %s773_s19 = scalar_lea.vmem [#allocation22], %s8569_s3  ;;  %p9713_p12 = scmp.ne.s32.totalorder %s8337_s22, 0 }
 0x1a0   : > { %v870_v0 = vld [vmem:[#allocation2] sm:$0xf] (!%p9713_p12) }
 0x1a1   : > { %869 = sbr.rel (%p9713_p12) target bundleno = 424 (0x1a8), region = 128  ;;  %871 = vst [vmem:[#allocation23] sm:$0xf] (!%p9713_p12), %v870_v0 }
 0x1a8 PF: > { %v874_v1 = vld [vmem:[%s8554_s25 + $0x8] sm:$0xff]  ;;  %v880_v2 = vld [vmem:[%s8554_s25 + $0x38] sm:$0xff]  ;;  %v873_v3 = vld [vmem:[%s8554_s25] sm:$0xff]  ;;  %v1067_v26 = vlaneseq  ;;  %v7995_v27 = vmov 1983009808   ;;  %vm7997_vm0 = vmmov 0  }
 0x1a9   : > { %v6747_v4 = vpack.c.bf16 %v880_v2, %v874_v1  ;;  %v879_v5 = vld [vmem:[%s8554_s25 + $0x30] sm:$0xff]  ;;  %v886_v6 = vld [vmem:[%s8554_s25 + $0x68] sm:$0xff]  ;;  %v892_v7 = vld [vmem:[%s8554_s25 + $0x98] sm:$0xff]  ;;  %v1099_v28 = vunpack.c.l.s4 %v7995_v27  ;;  %vm1387_vm1 = vcmask 130048   ;;  %s7998_s1 = smov 112   ;;  %vm1464_vm2 = vcmask 9216  }
 0x1aa   : > { %v6749_v8 = vpack.c.bf16 %v879_v5, %v873_v3  ;;  %v6751_v9 = vpack.c.bf16 %v892_v7, %v886_v6  ;;  %v885_v10 = vld [vmem:[%s8554_s25 + $0x60] sm:$0xff]  ;;  %v891_v11 = vld [vmem:[%s8554_s25 + $0x90] sm:$0xff]  ;;  %v898_v12 = vld [vmem:[%s8554_s25 + $0xc8] sm:$0xff]  ;;  %v8627_v35 = vshrl.u32 %v1067_v26, 7  ;;  %vm1480_vm3 = vcmask 1041408   ;;  %s7999_s27 = smov 96  }
 0x1ab   : > { %6748 = vmatprep.subr.bf16.mxu1 %v6747_v4  ;;  %v904_v13 = vld [vmem:[%s8554_s25 + $0xf8] sm:$0xff]  ;;  %v6753_v14 = vpack.c.bf16 %v891_v11, %v885_v10  ;;  %v897_v16 = vld [vmem:[%s8554_s25 + $0xc0] sm:$0xff]  ;;  %v903_v17 = vld [vmem:[%s8554_s25 + $0xf0] sm:$0xff]  ;;  %v1100_v36 = vunpack.c.0.s8 %v1099_v28  ;;  %vm1476_vm4 = vcmask 15360   ;;  %s8002_s12 = smov 48   ;;  %s8003_s10 = smov 32  }
 0x1ac   : > { %6750 = vmatpush1.bf16.msra.mxu1 %v6749_v8  ;;  %v6755_v15 = vpack.c.bf16 %v904_v13, %v898_v12  ;;  %v910_v18 = vld [vmem:[%s8554_s25 + $0x128] sm:$0xff]  ;;  %v916_v19 = vld [vmem:[%s8554_s25 + $0x158] sm:$0xff]  ;;  %v6757_v20 = vpack.c.bf16 %v903_v17, %v897_v16  ;;  %v909_v22 = vld [vmem:[%s8554_s25 + $0x120] sm:$0xff]  ;;  %s8004_s28 = smov 16   ;;  %p7375_p13 = scmp.eq.s32.totalorder %s8337_s22, 11 }
 0x1ad   : > { %6752 = vmatprep.subr.bf16.mxu1 %v6751_v9  ;;  %v6759_v21 = vpack.c.bf16 %v916_v19, %v910_v18  ;;  %v915_v23 = vld [vmem:[%s8554_s25 + $0x150] sm:$0xff]  ;;  %v922_v24 = vld [vmem:[%s8554_s25 + $0x188] sm:$0xff]  ;;  %v928_v25 = vld [vmem:[%s8554_s25 + $0x1b8] sm:$0xff]  ;;  %v8634_v43 = vsub.s32 %v1100_v36, %v8627_v35 }
 0x1ae   : > { %v6761_v29 = vpack.c.bf16 %v915_v23, %v909_v22  ;;  %v6763_v30 = vpack.c.bf16 %v928_v25, %v922_v24  ;;  %v921_v31 = vld [vmem:[%s8554_s25 + $0x180] sm:$0xff]  ;;  %v927_v32 = vld [vmem:[%s8554_s25 + $0x1b0] sm:$0xff]  ;;  %v934_v33 = vld [vmem:[%s8554_s25 + $0x1e8] sm:$0xff] }
 0x1af   : > { %v940_v34 = vld [vmem:[%s8554_s25 + $0x218] sm:$0xff]  ;;  %v6765_v37 = vpack.c.bf16 %v927_v32, %v921_v31  ;;  %v933_v39 = vld [vmem:[%s8554_s25 + $0x1e0] sm:$0xff]  ;;  %v939_v40 = vld [vmem:[%s8554_s25 + $0x210] sm:$0xff] }
 0x1b0   : > { %6754 = vmatpush1.bf16.msra.mxu1 %v6753_v14  ;;  %v6767_v38 = vpack.c.bf16 %v940_v34, %v934_v33  ;;  %v946_v41 = vld [vmem:[%s8554_s25 + $0x248] sm:$0xff]  ;;  %v952_v42 = vld [vmem:[%s8554_s25 + $0x278] sm:$0xff]  ;;  %v6769_v44 = vpack.c.bf16 %v939_v40, %v933_v39  ;;  %v945_v46 = vld [vmem:[%s8554_s25 + $0x240] sm:$0xff] }
 0x1b1   : > { %6756 = vmatprep.subr.bf16.mxu1 %v6755_v15  ;;  %v6771_v45 = vpack.c.bf16 %v952_v42, %v946_v41  ;;  %v951_v47 = vld [vmem:[%s8554_s25 + $0x270] sm:$0xff]  ;;  %v8638_v48 = vld.sshfl [vmem:[#allocation23] sm:$0x33 pattern:$0x76325410]  ;;  %v964_v50 = vld [vmem:[%s8554_s25 + $0x2d8] sm:$0xff] }
 0x1b2   : > { %v958_v49 = vld [vmem:[%s8554_s25 + $0x2a8] sm:$0xff]  ;;  %v6773_v51 = vpack.c.bf16 %v951_v47, %v945_v46  ;;  %v8644_v52 = vcombine.high %v8638_v48, %v8638_v48  ;;  %v957_v54 = vld [vmem:[%s8554_s25 + $0x2a0] sm:$0xff]  ;;  %v963_v55 = vld [vmem:[%s8554_s25 + $0x2d0] sm:$0xff] }
 0x1b3   : > { %v6775_v53 = vpack.c.bf16 %v964_v50, %v958_v49  ;;  %v970_v56 = vld [vmem:[%s8554_s25 + $0x308] sm:$0xff]  ;;  %v976_v57 = vld [vmem:[%s8554_s25 + $0x338] sm:$0xff]  ;;  %v6777_v58 = vpack.c.bf16 %v963_v55, %v957_v54  ;;  %v969_v60 = vld [vmem:[%s8554_s25 + $0x300] sm:$0xff] }
 0x1b4   : > { %6758 = vmatpush1.bf16.msra.mxu1 %v6757_v20  ;;  %1172 = vmatprep.mubr.f32.mxu1 %v8644_v52  ;;  %v6779_v59 = vpack.c.bf16 %v976_v57, %v970_v56  ;;  %v975_v61 = vld [vmem:[%s8554_s25 + $0x330] sm:$0xff]  ;;  %v982_v62 = vld [vmem:[%s8554_s25 + $0x368] sm:$0xff]  ;;  %v988_v63 = vld [vmem:[%s8554_s25 + $0x398] sm:$0xff] }
 0x1b5   : > { %6760 = vmatprep.subr.bf16.mxu1 %v6759_v21  ;;  %1314 = vmatprep.mubr.f32.mxu0 %v8644_v52  ;;  %v6781_v0 = vpack.c.bf16 %v975_v61, %v969_v60  ;;  %v6783_v1 = vpack.c.bf16 %v988_v63, %v982_v62  ;;  %v981_v2 = vld [vmem:[%s8554_s25 + $0x360] sm:$0xff]  ;;  %v987_v3 = vld [vmem:[%s8554_s25 + $0x390] sm:$0xff]  ;;  %v994_v4 = vld [vmem:[%s8554_s25 + $0x3c8] sm:$0xff] }
 0x1b6   : > { %v1000_v5 = vld [vmem:[%s8554_s25 + $0x3f8] sm:$0xff]  ;;  %v6785_v6 = vpack.c.bf16 %v987_v3, %v981_v2  ;;  %v993_v8 = vld [vmem:[%s8554_s25 + $0x3c0] sm:$0xff]  ;;  %v999_v9 = vld [vmem:[%s8554_s25 + $0x3f0] sm:$0xff] }
 0x1b7   : > { %v6787_v7 = vpack.c.bf16 %v1000_v5, %v994_v4  ;;  %v1006_v10 = vld [vmem:[%s8554_s25 + $0x428] sm:$0xff]  ;;  %v1012_v11 = vld [vmem:[%s8554_s25 + $0x458] sm:$0xff]  ;;  %v6789_v12 = vpack.c.bf16 %v999_v9, %v993_v8  ;;  %v1005_v14 = vld [vmem:[%s8554_s25 + $0x420] sm:$0xff] }
 0x1b8   : > { %6762 = vmatpush1.bf16.msra.mxu1 %v6761_v29  ;;  %v6791_v13 = vpack.c.bf16 %v1012_v11, %v1006_v10  ;;  %v1011_v15 = vld [vmem:[%s8554_s25 + $0x450] sm:$0xff]  ;;  %v1018_v16 = vld [vmem:[%s8554_s25 + $0x488] sm:$0xff]  ;;  %v1024_v17 = vld [vmem:[%s8554_s25 + $0x4b8] sm:$0xff] }
 0x1b9   : > { %6764 = vmatprep.subr.bf16.mxu1 %v6763_v30  ;;  %v6793_v18 = vpack.c.bf16 %v1011_v15, %v1005_v14  ;;  %v6795_v19 = vpack.c.bf16 %v1024_v17, %v1018_v16  ;;  %v1017_v20 = vld [vmem:[%s8554_s25 + $0x480] sm:$0xff]  ;;  %v1023_v21 = vld [vmem:[%s8554_s25 + $0x4b0] sm:$0xff]  ;;  %v1030_v22 = vld [vmem:[%s8554_s25 + $0x4e8] sm:$0xff] }
 0x1ba   : > { %v1036_v23 = vld [vmem:[%s8554_s25 + $0x518] sm:$0xff]  ;;  %v6797_v24 = vpack.c.bf16 %v1023_v21, %v1017_v20  ;;  %v1029_v26 = vld [vmem:[%s8554_s25 + $0x4e0] sm:$0xff]  ;;  %v1035_v27 = vld [vmem:[%s8554_s25 + $0x510] sm:$0xff] }
 0x1bb   : > { %v6799_v25 = vpack.c.bf16 %v1036_v23, %v1030_v22  ;;  %v1042_v28 = vld [vmem:[%s8554_s25 + $0x548] sm:$0xff]  ;;  %v1048_v29 = vld [vmem:[%s8554_s25 + $0x578] sm:$0xff]  ;;  %v6801_v30 = vpack.c.bf16 %v1035_v27, %v1029_v26  ;;  %v1041_v32 = vld [vmem:[%s8554_s25 + $0x540] sm:$0xff] }
 0x1bc   : > { %6766 = vmatpush1.bf16.msra.mxu1 %v6765_v37  ;;  %v6803_v31 = vpack.c.bf16 %v1048_v29, %v1042_v28  ;;  %v1047_v33 = vld [vmem:[%s8554_s25 + $0x570] sm:$0xff]  ;;  %v1054_v34 = vld [vmem:[%s8554_s25 + $0x5a8] sm:$0xff]  ;;  %v1060_v36 = vld [vmem:[%s8554_s25 + $0x5d8] sm:$0xff] }
 0x1bd   : > { %6768 = vmatprep.subr.bf16.mxu1 %v6767_v38  ;;  %v6805_v37 = vpack.c.bf16 %v1047_v33, %v1041_v32  ;;  %v6807_v38 = vpack.c.bf16 %v1060_v36, %v1054_v34  ;;  %v1053_v39 = vld [vmem:[%s8554_s25 + $0x5a0] sm:$0xff]  ;;  %v1059_v40 = vld [vmem:[%s8554_s25 + $0x5d0] sm:$0xff]  ;;  %v876_v41 = vld [vmem:[%s8554_s25 + $0x18] sm:$0xff] }
 0x1be   : > { %v882_v42 = vld [vmem:[%s8554_s25 + $0x48] sm:$0xff]  ;;  %v875_v46 = vld [vmem:[%s8554_s25 + $0x10] sm:$0xff]  ;;  %v881_v47 = vld [vmem:[%s8554_s25 + $0x40] sm:$0xff] }
 0x1bf   : > { %v888_v49 = vld [vmem:[%s8554_s25 + $0x78] sm:$0xff]  ;;  %v894_v50 = vld [vmem:[%s8554_s25 + $0xa8] sm:$0xff]  ;;  %v887_v54 = vld [vmem:[%s8554_s25 + $0x70] sm:$0xff] }
 0x1c0   : > { %6770 = vmatpush1.bf16.msra.mxu1 %v6769_v44  ;;  %v6809_v44 = vpack.c.bf16 %v1059_v40, %v1053_v39  ;;  %v893_v55 = vld [vmem:[%s8554_s25 + $0xa0] sm:$0xff]  ;;  %v900_v56 = vld [vmem:[%s8554_s25 + $0xd8] sm:$0xff]  ;;  %v906_v57 = vld [vmem:[%s8554_s25 + $0x108] sm:$0xff] }
 0x1c1   : > { %6772 = vmatprep.subr.bf16.mxu1 %v6771_v45  ;;  %v6811_v45 = vpack.c.bf16 %v882_v42, %v876_v41  ;;  %v899_v60 = vld [vmem:[%s8554_s25 + $0xd0] sm:$0xff]  ;;  %v905_v61 = vld [vmem:[%s8554_s25 + $0x100] sm:$0xff]  ;;  %v912_v62 = vld [vmem:[%s8554_s25 + $0x138] sm:$0xff] }
 0x1c2   : > { %v918_v63 = vld [vmem:[%s8554_s25 + $0x168] sm:$0xff]  ;;  %v911_v2 = vld [vmem:[%s8554_s25 + $0x130] sm:$0xff]  ;;  %v917_v3 = vld [vmem:[%s8554_s25 + $0x160] sm:$0xff] }
 0x1c3   : > { %v924_v4 = vld [vmem:[%s8554_s25 + $0x198] sm:$0xff]  ;;  %v6825_v5 = vpack.c.bf16 %v917_v3, %v911_v2  ;;  %v929_v8 = vld [vmem:[%s8554_s25 + $0x1c0] sm:$0xff]  ;;  %v942_v10 = vld [vmem:[%s8554_s25 + $0x228] sm:$0xff] }
 0x1c4   : > { %6774 = vmatpush1.bf16.msra.mxu1 %v6773_v51  ;;  %v6813_v51 = vpack.c.bf16 %v881_v47, %v875_v46  ;;  %v936_v9 = vld [vmem:[%s8554_s25 + $0x1f8] sm:$0xff]  ;;  %v941_v14 = vld [vmem:[%s8554_s25 + $0x220] sm:$0xff]  ;;  %v954_v16 = vld [vmem:[%s8554_s25 + $0x288] sm:$0xff] }
 0x1c5   : > { %6776 = vmatprep.subr.bf16.mxu1 %v6775_v53  ;;  %v6815_v53 = vpack.c.bf16 %v894_v50, %v888_v49  ;;  %v948_v15 = vld [vmem:[%s8554_s25 + $0x258] sm:$0xff]  ;;  %v953_v20 = vld [vmem:[%s8554_s25 + $0x280] sm:$0xff]  ;;  %v966_v22 = vld [vmem:[%s8554_s25 + $0x2e8] sm:$0xff] }
 0x1c6   : > { %v960_v21 = vld [vmem:[%s8554_s25 + $0x2b8] sm:$0xff]  ;;  %v965_v26 = vld [vmem:[%s8554_s25 + $0x2e0] sm:$0xff]  ;;  %v978_v28 = vld [vmem:[%s8554_s25 + $0x348] sm:$0xff] }
 0x1c7   : > { %v972_v27 = vld [vmem:[%s8554_s25 + $0x318] sm:$0xff]  ;;  %v977_v32 = vld [vmem:[%s8554_s25 + $0x340] sm:$0xff]  ;;  %v990_v34 = vld [vmem:[%s8554_s25 + $0x3a8] sm:$0xff] }
 0x1c8   : > { %6778 = vmatpush1.bf16.msra.mxu1 %v6777_v58  ;;  %v6817_v58 = vpack.c.bf16 %v893_v55, %v887_v54  ;;  %v984_v33 = vld [vmem:[%s8554_s25 + $0x378] sm:$0xff]  ;;  %v989_v39 = vld [vmem:[%s8554_s25 + $0x3a0] sm:$0xff]  ;;  %v1002_v41 = vld [vmem:[%s8554_s25 + $0x408] sm:$0xff] }
 0x1c9   : > { %6780 = vmatprep.subr.bf16.mxu1 %v6779_v59  ;;  %v6819_v59 = vpack.c.bf16 %v906_v57, %v900_v56  ;;  %v996_v40 = vld [vmem:[%s8554_s25 + $0x3d8] sm:$0xff]  ;;  %v1001_v46 = vld [vmem:[%s8554_s25 + $0x400] sm:$0xff]  ;;  %v1014_v49 = vld [vmem:[%s8554_s25 + $0x468] sm:$0xff] }
 0x1ca   : > { %v1008_v47 = vld [vmem:[%s8554_s25 + $0x438] sm:$0xff]  ;;  %v1013_v54 = vld [vmem:[%s8554_s25 + $0x460] sm:$0xff]  ;;  %v1026_v56 = vld [vmem:[%s8554_s25 + $0x4c8] sm:$0xff] }
 0x1cb   : > { %v1020_v55 = vld [vmem:[%s8554_s25 + $0x498] sm:$0xff]  ;;  %v1037_v2 = vld [vmem:[%s8554_s25 + $0x520] sm:$0xff] }
 0x1cc   : > { %6782 = vmatpush1.bf16.msra.mxu1 %v6781_v0  ;;  %v6821_v0 = vpack.c.bf16 %v905_v61, %v899_v60  ;;  %v1025_v60 = vld [vmem:[%s8554_s25 + $0x4c0] sm:$0xff]  ;;  %v1032_v61 = vld [vmem:[%s8554_s25 + $0x4f8] sm:$0xff] }
 0x1cd   : > { %6784 = vmatprep.subr.bf16.mxu1 %v6783_v1  ;;  %v6823_v1 = vpack.c.bf16 %v918_v63, %v912_v62  ;;  %v1038_v62 = vld [vmem:[%s8554_s25 + $0x528] sm:$0xff]  ;;  %v1044_v3 = vld [vmem:[%s8554_s25 + $0x558] sm:$0xff] }
 0x1d0   : > { %6786 = vmatpush1.bf16.msra.mxu1 %v6785_v6 }
 0x1d1   : > { %6788 = vmatprep.subr.bf16.mxu1 %v6787_v7  ;;  %v923_v7 = vld [vmem:[%s8554_s25 + $0x190] sm:$0xff] }
 0x1d2   : > { %v6829_v11 = vpack.c.bf16 %v929_v8, %v923_v7  ;;  %v1049_v7 = vld [vmem:[%s8554_s25 + $0x580] sm:$0xff]  ;;  %v1056_v8 = vld [vmem:[%s8554_s25 + $0x5b8] sm:$0xff] }
 0x1d4   : > { %6790 = vmatpush1.bf16.msra.mxu1 %v6789_v12  ;;  %v6831_v12 = vpack.c.bf16 %v942_v10, %v936_v9  ;;  %v1062_v9 = vld [vmem:[%s8554_s25 + $0x5e8] sm:$0xff] }
 0x1d5   : > { %6792 = vmatprep.subr.bf16.mxu1 %v6791_v13  ;;  %v935_v13 = vld [vmem:[%s8554_s25 + $0x1f0] sm:$0xff] }
 0x1d6   : > { %v6833_v17 = vpack.c.bf16 %v941_v14, %v935_v13  ;;  %v1061_v13 = vld [vmem:[%s8554_s25 + $0x5e0] sm:$0xff] }
 0x1d8   : > { %6794 = vmatpush1.bf16.msra.mxu1 %v6793_v18  ;;  %v6835_v18 = vpack.c.bf16 %v954_v16, %v948_v15  ;;  %v7996_v15 = vmov 0.0  }
 0x1d9   : > { %6796 = vmatprep.subr.bf16.mxu1 %v6795_v19  ;;  %v947_v19 = vld [vmem:[%s8554_s25 + $0x250] sm:$0xff] }
 0x1da   : > { %v6837_v23 = vpack.c.bf16 %v953_v20, %v947_v19  ;;  %v8758_v19 = vld [vmem:[%s8560_s7] sm:$0x3f]  ;;  %v1077_v20 = vsub.s32 2, %v8627_v35  ;;  %s8001_s7 = smov 64  }
 0x1dc   : > { %6798 = vmatpush1.bf16.msra.mxu1 %v6797_v24  ;;  %v6839_v24 = vpack.c.bf16 %v966_v22, %v960_v21  ;;  %v1078_v22 = vrot.slane %v8758_v19, %v1077_v20 }
 0x1dd   : > { %6800 = vmatprep.subr.bf16.mxu1 %v6799_v25  ;;  %v959_v25 = vld [vmem:[%s8554_s25 + $0x2b0] sm:$0xff] }
 0x1de   : > { %v6841_v29 = vpack.c.bf16 %v965_v26, %v959_v25 }
 0x1e0   : > { %6802 = vmatpush1.bf16.msra.mxu1 %v6801_v30  ;;  %v6843_v30 = vpack.c.bf16 %v978_v28, %v972_v27  ;;  %v878_v28 = vld [vmem:[%s8554_s25 + $0x28] sm:$0xff] }
 0x1e1   : > { %6804 = vmatprep.subr.bf16.mxu1 %v6803_v31  ;;  %v971_v31 = vld [vmem:[%s8554_s25 + $0x310] sm:$0xff] }
 0x1e2   : > { %v6845_v36 = vpack.c.bf16 %v977_v32, %v971_v31  ;;  %v883_v32 = vld [vmem:[%s8554_s25 + $0x50] sm:$0xff] }
 0x1e4   : > { %6806 = vmatpush1.bf16.msra.mxu1 %v6805_v37  ;;  %v6847_v37 = vpack.c.bf16 %v990_v34, %v984_v33  ;;  %v890_v33 = vld [vmem:[%s8554_s25 + $0x88] sm:$0xff]  ;;  %v896_v34 = vld [vmem:[%s8554_s25 + $0xb8] sm:$0xff] }
 0x1e5   : > { %6808 = vmatprep.subr.bf16.mxu1 %v6807_v38  ;;  %v983_v38 = vld [vmem:[%s8554_s25 + $0x370] sm:$0xff] }
 0x1e6   : > { %v6849_v42 = vpack.c.bf16 %v989_v39, %v983_v38  ;;  %v889_v38 = vld [vmem:[%s8554_s25 + $0x80] sm:$0xff]  ;;  %v895_v39 = vld [vmem:[%s8554_s25 + $0xb0] sm:$0xff] }
 0x1e8   : > { %6810 = vmatpush1.bf16.msra.mxu1 %v6809_v44  ;;  %v6851_v44 = vpack.c.bf16 %v1002_v41, %v996_v40  ;;  %v902_v40 = vld [vmem:[%s8554_s25 + $0xe8] sm:$0xff]  ;;  %v908_v41 = vld [vmem:[%s8554_s25 + $0x118] sm:$0xff] }
 0x1e9   : > { %6812 = vmatprep.subr.bf16.mxu1 %v6811_v45  ;;  %v995_v45 = vld [vmem:[%s8554_s25 + $0x3d0] sm:$0xff] }
 0x1ea   : > { %v6853_v50 = vpack.c.bf16 %v1001_v46, %v995_v45  ;;  %v901_v45 = vld [vmem:[%s8554_s25 + $0xe0] sm:$0xff]  ;;  %v907_v46 = vld [vmem:[%s8554_s25 + $0x110] sm:$0xff] }
 0x1eb   : > { %1173 = vmatmul.mubr.f32.vlgmr.msra.gmra.mrb[0].mxu1 %v8638_v48 }
 0x1ec   : > { %6814 = vmatpush1.bf16.msra.mxu1 %v6813_v51  ;;  %1243 = vmatprep.mubr.f32.mxu1 %v8644_v52  ;;  %v930_v52 = vld [vmem:[%s8554_s25 + $0x1c8] sm:$0xff]  ;;  %v6855_v51 = vpack.c.bf16 %v1014_v49, %v1008_v47  ;;  %v920_v49 = vld [vmem:[%s8554_s25 + $0x178] sm:$0xff] }
 0x1ed   : > { %6816 = vmatprep.subr.bf16.mxu1 %v6815_v53  ;;  %v6827_v6 = vpack.c.bf16 %v930_v52, %v924_v4  ;;  %v1007_v53 = vld [vmem:[%s8554_s25 + $0x430] sm:$0xff]  ;;  %v1050_v4 = vld [vmem:[%s8554_s25 + $0x588] sm:$0xff] }
 0x1ee   : > { %v6857_v57 = vpack.c.bf16 %v1013_v54, %v1007_v53  ;;  %v914_v47 = vld [vmem:[%s8554_s25 + $0x148] sm:$0xff]  ;;  %v913_v53 = vld [vmem:[%s8554_s25 + $0x140] sm:$0xff]  ;;  %v919_v54 = vld [vmem:[%s8554_s25 + $0x170] sm:$0xff] }
 0x1f0   : > { %6818 = vmatpush1.bf16.msra.mxu1 %v6817_v58  ;;  %v6859_v58 = vpack.c.bf16 %v1026_v56, %v1020_v55  ;;  %v926_v55 = vld [vmem:[%s8554_s25 + $0x1a8] sm:$0xff]  ;;  %v932_v56 = vld [vmem:[%s8554_s25 + $0x1d8] sm:$0xff] }
 0x1f1   : > { %6820 = vmatprep.subr.bf16.mxu1 %v6819_v59  ;;  %v1019_v59 = vld [vmem:[%s8554_s25 + $0x490] sm:$0xff] }
 0x1f2   : > { %v6861_v63 = vpack.c.bf16 %v1025_v60, %v1019_v59  ;;  %v925_v59 = vld [vmem:[%s8554_s25 + $0x1a0] sm:$0xff]  ;;  %v931_v60 = vld [vmem:[%s8554_s25 + $0x1d0] sm:$0xff] }
 0x1f4   : > { %6822 = vmatpush1.bf16.msra.mxu1 %v6821_v0  ;;  %v6863_v0 = vpack.c.bf16 %v1038_v62, %v1032_v61  ;;  %v938_v61 = vld [vmem:[%s8554_s25 + $0x208] sm:$0xff]  ;;  %v944_v62 = vld [vmem:[%s8554_s25 + $0x238] sm:$0xff] }
 0x1f5   : > { %6824 = vmatprep.subr.bf16.mxu1 %v6823_v1  ;;  %v1031_v1 = vld [vmem:[%s8554_s25 + $0x4f0] sm:$0xff] }
 0x1f6   : > { %v6865_v52 = vpack.c.bf16 %v1037_v2, %v1031_v1  ;;  %v937_v1 = vld [vmem:[%s8554_s25 + $0x200] sm:$0xff]  ;;  %v943_v2 = vld [vmem:[%s8554_s25 + $0x230] sm:$0xff] }
 0x1f8   : > { %6826 = vmatpush1.bf16.msra.mxu1 %v6825_v5  ;;  %v6867_v5 = vpack.c.bf16 %v1050_v4, %v1044_v3  ;;  %v950_v3 = vld [vmem:[%s8554_s25 + $0x268] sm:$0xff]  ;;  %v956_v4 = vld [vmem:[%s8554_s25 + $0x298] sm:$0xff] }
 0x1f9   : > { %6828 = vmatprep.subr.bf16.mxu1 %v6827_v6  ;;  %v1043_v6 = vld [vmem:[%s8554_s25 + $0x550] sm:$0xff] }
 0x1fa   : > { %v6869_v10 = vpack.c.bf16 %v1049_v7, %v1043_v6  ;;  %v949_v6 = vld [vmem:[%s8554_s25 + $0x260] sm:$0xff]  ;;  %v955_v7 = vld [vmem:[%s8554_s25 + $0x290] sm:$0xff] }
 0x1fc   : > { %6830 = vmatpush1.bf16.msra.mxu1 %v6829_v11  ;;  %v6871_v11 = vpack.c.bf16 %v1062_v9, %v1056_v8  ;;  %v962_v8 = vld [vmem:[%s8554_s25 + $0x2c8] sm:$0xff]  ;;  %v968_v9 = vld [vmem:[%s8554_s25 + $0x2f8] sm:$0xff] }
 0x1fd   : > { %6832 = vmatprep.subr.bf16.mxu1 %v6831_v12  ;;  %v1055_v12 = vld [vmem:[%s8554_s25 + $0x5b0] sm:$0xff] }
 0x1fe   : > { %v6873_v14 = vpack.c.bf16 %v1061_v13, %v1055_v12  ;;  %v961_v12 = vld [vmem:[%s8554_s25 + $0x2c0] sm:$0xff]  ;;  %v967_v13 = vld [vmem:[%s8554_s25 + $0x2f0] sm:$0xff] }
 0x200   : > { %6834 = vmatpush1.bf16.msra.mxu1 %v6833_v17 }
 0x201   : > { %6836 = vmatprep.subr.bf16.mxu1 %v6835_v18  ;;  %v8755_v18 = vsub.s32 0, %v8627_v35 }
 0x203   : > { %v1070_v21 = vrot.slane %v8758_v19, %v8755_v18 }
 0x204   : > { %6838 = vmatpush1.bf16.msra.mxu1 %v6837_v23 }
 0x205   : > { %6840 = vmatprep.subr.bf16.mxu1 %v6839_v24 }
 0x208   : > { %6842 = vmatpush1.bf16.msra.mxu1 %v6841_v29  ;;  %v884_v29 = vld [vmem:[%s8554_s25 + $0x58] sm:$0xff] }
 0x209   : > { %6844 = vmatprep.subr.bf16.mxu1 %v6843_v30  ;;  %v877_v30 = vld [vmem:[%s8554_s25 + $0x20] sm:$0xff]  ;;  %v6875_v31 = vpack.c.bf16 %v884_v29, %v878_v28  ;;  %v986_v28 = vld [vmem:[%s8554_s25 + $0x388] sm:$0xff]  ;;  %v992_v29 = vld [vmem:[%s8554_s25 + $0x3b8] sm:$0xff] }
 0x20b   : > { %6876 = vmatprep.subr.bf16.mxu0 %v6875_v31  ;;  %v6911_v31 = vpack.c.bf16 %v992_v29, %v986_v28 }
 0x20c   : > { %6846 = vmatpush1.bf16.msra.mxu1 %v6845_v36  ;;  %v6877_v36 = vpack.c.bf16 %v883_v32, %v877_v30  ;;  %v985_v32 = vld [vmem:[%s8554_s25 + $0x380] sm:$0xff] }
 0x20d   : > { %6848 = vmatprep.subr.bf16.mxu1 %v6847_v37  ;;  %v6879_v37 = vpack.c.bf16 %v896_v34, %v890_v33  ;;  %v991_v33 = vld [vmem:[%s8554_s25 + $0x3b0] sm:$0xff]  ;;  %v998_v34 = vld [vmem:[%s8554_s25 + $0x3e8] sm:$0xff] }
 0x20e   : > { %6878 = vmatpush1.bf16.msra.mxu0 %v6877_v36  ;;  %v1004_v36 = vld [vmem:[%s8554_s25 + $0x418] sm:$0xff] }
 0x20f   : > { %6880 = vmatprep.subr.bf16.mxu0 %v6879_v37  ;;  %v6913_v37 = vpack.c.bf16 %v991_v33, %v985_v32 }
 0x210   : > { %6850 = vmatpush1.bf16.msra.mxu1 %v6849_v42  ;;  %v6881_v42 = vpack.c.bf16 %v895_v39, %v889_v38  ;;  %v6915_v38 = vpack.c.bf16 %v1004_v36, %v998_v34  ;;  %v997_v39 = vld [vmem:[%s8554_s25 + $0x3e0] sm:$0xff] }
 0x211   : > { %6852 = vmatprep.subr.bf16.mxu1 %v6851_v44  ;;  %v6883_v44 = vpack.c.bf16 %v908_v41, %v902_v40  ;;  %v1003_v40 = vld [vmem:[%s8554_s25 + $0x410] sm:$0xff]  ;;  %v1010_v41 = vld [vmem:[%s8554_s25 + $0x448] sm:$0xff] }
 0x212   : > { %6882 = vmatpush1.bf16.msra.mxu0 %v6881_v42  ;;  %v1016_v42 = vld [vmem:[%s8554_s25 + $0x478] sm:$0xff] }
 0x213   : > { %6884 = vmatprep.subr.bf16.mxu0 %v6883_v44  ;;  %v6917_v44 = vpack.c.bf16 %v1003_v40, %v997_v39 }
 0x214   : > { %6854 = vmatpush1.bf16.msra.mxu1 %v6853_v50  ;;  %v6885_v50 = vpack.c.bf16 %v907_v46, %v901_v45  ;;  %v6919_v45 = vpack.c.bf16 %v1016_v42, %v1010_v41  ;;  %v1009_v46 = vld [vmem:[%s8554_s25 + $0x440] sm:$0xff] }
 0x215   : > { %6856 = vmatprep.subr.bf16.mxu1 %v6855_v51  ;;  %v6887_v51 = vpack.c.bf16 %v920_v49, %v914_v47  ;;  %v1015_v47 = vld [vmem:[%s8554_s25 + $0x470] sm:$0xff]  ;;  %v1022_v49 = vld [vmem:[%s8554_s25 + $0x4a8] sm:$0xff] }
 0x216   : > { %6886 = vmatpush1.bf16.msra.mxu0 %v6885_v50  ;;  %v1028_v50 = vld [vmem:[%s8554_s25 + $0x4d8] sm:$0xff] }
 0x217   : > { %6888 = vmatprep.subr.bf16.mxu0 %v6887_v51  ;;  %v6921_v51 = vpack.c.bf16 %v1015_v47, %v1009_v46 }
 0x218   : > { %6858 = vmatpush1.bf16.msra.mxu1 %v6857_v57  ;;  %v6889_v57 = vpack.c.bf16 %v919_v54, %v913_v53  ;;  %v6923_v53 = vpack.c.bf16 %v1028_v50, %v1022_v49  ;;  %v1021_v54 = vld [vmem:[%s8554_s25 + $0x4a0] sm:$0xff]  ;;  %v1328_v49 = vld [vmem:[%s8563_s20 + $0x28] sm:$0xff] }
 0x219   : > { %6860 = vmatprep.subr.bf16.mxu1 %v6859_v58  ;;  %v6891_v58 = vpack.c.bf16 %v932_v56, %v926_v55  ;;  %v1027_v55 = vld [vmem:[%s8554_s25 + $0x4d0] sm:$0xff]  ;;  %v1034_v56 = vld [vmem:[%s8554_s25 + $0x508] sm:$0xff] }
 0x21a   : > { %6890 = vmatpush1.bf16.msra.mxu0 %v6889_v57  ;;  %v1040_v57 = vld [vmem:[%s8554_s25 + $0x538] sm:$0xff]  ;;  %v1330_v50 = vld [vmem:[%s8563_s20 + $0x38] sm:$0xff] }
 0x21b   : > { %6892 = vmatprep.subr.bf16.mxu0 %v6891_v58  ;;  %v6925_v58 = vpack.c.bf16 %v1027_v55, %v1021_v54  ;;  %v1327_v54 = vld [vmem:[%s8563_s20 + $0x20] sm:$0xff]  ;;  %v1329_v55 = vld [vmem:[%s8563_s20 + $0x30] sm:$0xff] }
 0x21c   : > { %6862 = vmatpush1.bf16.msra.mxu1 %v6861_v63  ;;  %v6893_v63 = vpack.c.bf16 %v931_v60, %v925_v59  ;;  %v6927_v59 = vpack.c.bf16 %v1040_v57, %v1034_v56  ;;  %v1033_v60 = vld [vmem:[%s8554_s25 + $0x500] sm:$0xff]  ;;  %v6941_v57 = vpack.c.bf16 %v1329_v55, %v1327_v54 }
 0x21d   : > { %6864 = vmatprep.subr.bf16.mxu1 %v6863_v0  ;;  %v6895_v0 = vpack.c.bf16 %v944_v62, %v938_v61  ;;  %v1039_v61 = vld [vmem:[%s8554_s25 + $0x530] sm:$0xff]  ;;  %v1046_v62 = vld [vmem:[%s8554_s25 + $0x568] sm:$0xff] }
 0x21e   : > { %6894 = vmatpush1.bf16.msra.mxu0 %v6893_v63  ;;  %v1052_v63 = vld [vmem:[%s8554_s25 + $0x598] sm:$0xff] }
 0x21f   : > { %6896 = vmatprep.subr.bf16.mxu0 %v6895_v0  ;;  %v6929_v0 = vpack.c.bf16 %v1039_v61, %v1033_v60  ;;  %v1326_v60 = vld [vmem:[%s8563_s20 + $0x18] sm:$0xff] }
 0x220   : > { %6866 = vmatpush1.bf16.msra.mxu1 %v6865_v52  ;;  %v6897_v52 = vpack.c.bf16 %v943_v2, %v937_v1  ;;  %v6931_v1 = vpack.c.bf16 %v1052_v63, %v1046_v62  ;;  %v1045_v2 = vld [vmem:[%s8554_s25 + $0x560] sm:$0xff]  ;;  %v1323_v62 = vld [vmem:[%s8563_s20] sm:$0xff] }
 0x221   : > { %6868 = vmatprep.subr.bf16.mxu1 %v6867_v5  ;;  %v6899_v5 = vpack.c.bf16 %v956_v4, %v950_v3  ;;  %v1051_v3 = vld [vmem:[%s8554_s25 + $0x590] sm:$0xff]  ;;  %v1058_v4 = vld [vmem:[%s8554_s25 + $0x5c8] sm:$0xff]  ;;  %v1325_v63 = vld [vmem:[%s8563_s20 + $0x10] sm:$0xff] }
 0x222   : > { %6898 = vmatpush1.bf16.msra.mxu0 %v6897_v52  ;;  %v1064_v52 = vld [vmem:[%s8554_s25 + $0x5f8] sm:$0xff] }
 0x223   : > { %6900 = vmatprep.subr.bf16.mxu0 %v6899_v5  ;;  %v6933_v5 = vpack.c.bf16 %v1051_v3, %v1045_v2 }
 0x224   : > { %6870 = vmatpush1.bf16.msra.mxu1 %v6869_v10  ;;  %v6901_v10 = vpack.c.bf16 %v955_v7, %v949_v6  ;;  %v6935_v6 = vpack.c.bf16 %v1064_v52, %v1058_v4  ;;  %v1057_v7 = vld [vmem:[%s8554_s25 + $0x5c0] sm:$0xff] }
 0x225   : > { %6872 = vmatprep.subr.bf16.mxu1 %v6871_v11  ;;  %v6903_v11 = vpack.c.bf16 %v968_v9, %v962_v8  ;;  %v1063_v8 = vld [vmem:[%s8554_s25 + $0x5f0] sm:$0xff] }
 0x226   : > { %6902 = vmatpush1.bf16.msra.mxu0 %v6901_v10  ;;  %v6937_v9 = vpack.c.bf16 %v1063_v8, %v1057_v7 }
 0x227   : > { %6904 = vmatprep.subr.bf16.mxu0 %v6903_v11 }
 0x228   : > { %6874 = vmatpush1.bf16.msra.mxu1 %v6873_v14  ;;  %v974_v14 = vld [vmem:[%s8554_s25 + $0x328] sm:$0xff] }
 0x229   : > { %6587 = vmatprep.subr.mxu1 %v7996_v15 }
 0x22b   : > { %1244 = vmatmul.mubr.f32.vlgmr.msra.gmra.mrb[2].mxu1 %v8638_v48 }
 0x22c   : > { %6589 = vmatprep.mubr.msk.f32.mxu1 %vm7997_vm0, %v7996_v15 }
 0x2be   : > { %v1174_v16 = vpop.f32.mrb[0].mxu1 }
 0x2bf   : > { %v8752_v17 = vpop.f32.mrb[1].mxu1  ;;  %v1175_v23 = vadd.f32 %v1174_v16, %v1070_v21  ;;  %v980_v16 = vld [vmem:[%s8554_s25 + $0x358] sm:$0xff]  ;;  %v6905_v21 = vpack.c.bf16 %v967_v13, %v961_v12 }
 0x2c1   : > { %v8774_v27 = vmul.f32 0.25, %v1175_v23  ;;  %v973_v23 = vld [vmem:[%s8554_s25 + $0x320] sm:$0xff]  ;;  %6906 = vmatpush1.bf16.msra.mxu0 %v6905_v21 }
 0x2fe   : > { %v1245_v24 = vpop.f32.mrb[2].mxu1 }
 0x2ff   : > { %v8766_v25 = vadd.f32 %v1245_v24, %v1078_v22  ;;  %v8768_v26 = vpop.f32.mrb[3].mxu1  ;;  %v6907_v22 = vpack.c.bf16 %v980_v16, %v974_v14  ;;  %v979_v24 = vld [vmem:[%s8554_s25 + $0x350] sm:$0xff]  ;;  %s8000_s25 = smov 80  }
 0x300   : > { %v6909_v30 = vpack.c.bf16 %v979_v24, %v973_v23  ;;  %v1085_v23 = vsub.s32 4, %v8627_v35 }
 0x301   : > { %1556 = vrot.lane.b32.xlu1 %v8766_v25, %s7998_s1  ;;  %6588 = vmatpush3.xpose.msk.msra.mxu1 %vm1387_vm1, %v8766_v25 }
 0x302   : > { %6592 = vmatprep.subr.mxu1 %v7996_v15  ;;  %6908 = vmatprep.subr.bf16.mxu0 %v6907_v22 }
 0x303   : > { %6910 = vmatpush1.bf16.msra.mxu0 %v6909_v30 }
 0x304   : > { %6590 = vmatmul.mubr.msk.f32.vlgmr.msra.gmra.mrb[4].mxu1 %vm1387_vm1, %v8774_v27  ;;  %6912 = vmatprep.subr.bf16.mxu0 %v6911_v31 }
 0x305   : > { %1554 = vrot.lane.b32.xlu1 %v8774_v27, %s7998_s1  ;;  %6594 = vmatprep.mubr.msk.f32.mxu1 %vm7997_vm0, %v7996_v15 }
 0x307   : > { %6914 = vmatpush1.bf16.msra.mxu0 %v6913_v37 }
 0x308   : > { %6916 = vmatprep.subr.bf16.mxu0 %v6915_v38 }
 0x30b   : > { %6918 = vmatpush1.bf16.msra.mxu0 %v6917_v44 }
 0x30c   : > { %6920 = vmatprep.subr.bf16.mxu0 %v6919_v45 }
 0x30f   : > { %6922 = vmatpush1.bf16.msra.mxu0 %v6921_v51  ;;  %v6939_v51 = vpack.c.bf16 %v1330_v50, %v1328_v49 }
 0x310   : > { %6924 = vmatprep.subr.bf16.mxu0 %v6923_v53 }
 0x313   : > { %6926 = vmatpush1.bf16.msra.mxu0 %v6925_v58 }
 0x314   : > { %6928 = vmatprep.subr.bf16.mxu0 %v6927_v59  ;;  %v1324_v59 = vld [vmem:[%s8563_s20 + $0x8] sm:$0xff] }
 0x315   : > { %v6943_v61 = vpack.c.bf16 %v1326_v60, %v1324_v59 }
 0x317   : > { %6930 = vmatpush1.bf16.msra.mxu0 %v6929_v0  ;;  %v6945_v0 = vpack.c.bf16 %v1325_v63, %v1323_v62 }
 0x318   : > { %6932 = vmatprep.subr.bf16.mxu0 %v6931_v1 }
 0x31b   : > { %6934 = vmatpush1.bf16.msra.mxu0 %v6933_v5 }
 0x31c   : > { %6936 = vmatprep.subr.bf16.mxu0 %v6935_v6 }
 0x31f   : > { %6938 = vmatpush1.bf16.msra.mxu0 %v6937_v9 }
 0x320   : > { %6642 = vmatprep.subr.mxu0 %v7996_v15 }
 0x322   : > { %1315 = vmatmul.mubr.f32.vlgmr.msra.gmra.mrb[0].mxu0 %v8638_v48  ;;  %v1086_v48 = vrot.slane %v8758_v19, %v1085_v23  ;;  %v1333_v23 = vld [vmem:[%s8563_s20 + $0x50] sm:$0xff] }
 0x323   : > { %6644 = vmatprep.mubr.msk.f32.mxu0 %vm7997_vm0, %v7996_v15 }
 0x373   : > { %v1557_v32 = vpop.permute.xlu1 %1556 }
 0x377   : > { %v1555_v34 = vpop.permute.xlu1 %1554 }
 0x3d7   : > { %v1460_v10 = vpop.f32.mrb[4].mxu1 }
 0x3d8   : > { %v6591_v11 = vpop.f32.mrb[5].mxu1  ;;  %v1465_v12 = vsel %vm1464_vm2, %v1460_v10, -inf }
 0x3d9   : > { %1466 = vmax.xlane.f32.xlu0 %v1465_v12  ;;  %v1332_v12 = vld [vmem:[%s8563_s20 + $0x48] sm:$0xff] }
 0x3f5   : > { %v1316_v24 = vpop.f32.mrb[0].mxu0 }
 0x3f6   : > { %v8855_v28 = vadd.f32 %v1316_v24, %v1086_v48  ;;  %v8857_v29 = vpop.f32.mrb[1].mxu0 }
 0x3f8   : > { %6593 = vmatpush3.msk.msra.mxu1 %vm1480_vm3, %v8855_v28 }
 0x3f9   : > { %6597 = vmatprep.subr.mxu1 %v7996_v15 }
 0x466   : > { %v1467_v13 = vpop.xlane.xlu0 %1466 }
 0x467   : > { %v1468_v14 = vsub.f32 %v1460_v10, %v1467_v13  ;;  %v1334_v13 = vld [vmem:[%s8563_s20 + $0x58] sm:$0xff] }
 0x469   : > { %v1469_v16 = vmul.f32 1.442695, %v1468_v14 }
 0x46b   : > { %7428 = vpow2.f32 %v1469_v16  ;;  %v6947_v16 = vpack.c.bf16 %v1334_v13, %v1332_v12 }
 0x475   : > { %v7429_v21 = vpop.eup %7428 }
 0x476   : > { %v1471_v22 = vsel %vm1464_vm2, %v7429_v21, 0.0 }
 0x477   : > { %1472 = vadd.xlane.f32.xlu0 %v1471_v22  ;;  %v1331_v22 = vld [vmem:[%s8563_s20 + $0x40] sm:$0xff] }
 0x478   : > { %v6949_v24 = vpack.c.bf16 %v1333_v23, %v1331_v22 }
 0x504   : > { %v1473_v30 = vpop.xlane.xlu0 %1472 }
 0x505   : > { %7430 = vrcp.f32 %v1473_v30 }
 0x50f   : > { %v7431_v31 = vpop.eup %7430 }
 0x510   : > { %v1475_v33 = vmul.f32 %v7431_v31, %v7429_v21 }
 0x512   : > { %6595 = vmatmul.mubr.msk.f32.vlgmr.msra.gmra.mrb[6].mxu1 %vm1476_vm4, %v1475_v33 }
 0x513   : > { %6598 = vmatpush3.xpose.msk.msra.mxu1 %vm1387_vm1, %v1557_v32  ;;  %6599 = vmatprep.mubr.msk.f32.mxu1 %vm7997_vm0, %v7996_v15 }
 0x514   : > { %6602 = vmatprep.subr.mxu1 %v7996_v15 }
 0x516   : > { %6600 = vmatmul.mubr.msk.f32.vlgmr.msra.gmra.mrb[8].mxu1 %vm1387_vm1, %v1555_v34 }
 0x517   : > { %6604 = vmatprep.mubr.msk.f32.mxu1 %vm7997_vm0, %v7996_v15 }
 0x5e5   : > { %v1550_v36 = vpop.f32.mrb[6].mxu1 }
 0x5e6   : > { %v6596_v37 = vpop.f32.mrb[7].mxu1 }
 0x5e9   : > { %v1628_v38 = vpop.f32.mrb[8].mxu1 }
 0x5ea   : > { %v6601_v39 = vpop.f32.mrb[9].mxu1  ;;  %v1632_v40 = vsel %vm1464_vm2, %v1628_v38, -inf }
 0x5eb   : > { %1633 = vmax.xlane.f32.xlu0 %v1632_v40 }
 0x601   : > { %1643 = vrot.lane.b32.xlu0 %v8855_v28, %s7998_s1 }
 0x605   : > { %1870 = vrot.lane.b32.xlu0 %v8766_v25, %s7999_s27 }
 0x609   : > { %1868 = vrot.lane.b32.xlu0 %v8774_v27, %s7999_s27 }
 0x678   : > { %v1634_v41 = vpop.xlane.xlu0 %1633 }
 0x679   : > { %v1635_v42 = vsub.f32 %v1628_v38, %v1634_v41 }
 0x67b   : > { %v1636_v44 = vmul.f32 1.442695, %v1635_v42 }
 0x67c   : > { %v1644_v45 = vpop.permute.xlu0 %1643 }
 0x67d   : > { %7432 = vpow2.f32 %v1636_v44  ;;  %6603 = vmatpush3.msk.msra.mxu1 %vm1480_vm3, %v1644_v45 }
 0x67e   : > { %6940 = vmatprep.subr.bf16.mxu1 %v6939_v51  ;;  %v1335_v51 = vld [vmem:[%s8563_s20 + $0x60] sm:$0xff] }
 0x680   : > { %v1871_v3 = vpop.permute.xlu0 %1870 }
 0x684   : > { %v1869_v4 = vpop.permute.xlu0 %1868 }
 0x687   : > { %v7433_v46 = vpop.eup %7432 }
 0x688   : > { %v1638_v47 = vsel %vm1464_vm2, %v7433_v46, 0.0 }
 0x689   : > { %1639 = vadd.xlane.f32.xlu1 %v1638_v47  ;;  %v1338_v47 = vld [vmem:[%s8563_s20 + $0x78] sm:$0xff] }
 0x716   : > { %v1640_v53 = vpop.xlane.xlu1 %1639 }
 0x717   : > { %7434 = vrcp.f32 %v1640_v53  ;;  %v1337_v53 = vld [vmem:[%s8563_s20 + $0x70] sm:$0xff] }
 0x718   : > { %v6953_v55 = vpack.c.bf16 %v1337_v53, %v1335_v51 }
 0x721   : > { %v7435_v56 = vpop.eup %7434 }
 0x722   : > { %v1642_v58 = vmul.f32 %v7435_v56, %v7433_v46  ;;  %v1336_v46 = vld [vmem:[%s8563_s20 + $0x68] sm:$0xff] }
 0x723   : > { %v6951_v49 = vpack.c.bf16 %v1338_v47, %v1336_v46 }
 0x724   : > { %6605 = vmatmul.mubr.msk.f32.vlgmr.msra.gmra.mrb[10].mxu1 %vm1476_vm4, %v1642_v58 }
 0x725   : > { %6942 = vmatpush1.bf16.msra.mxu1 %v6941_v57  ;;  %1787 = vmatprep.mubr.f32.mxu1 %v7996_v15 }
 0x726   : > { %6944 = vmatprep.subr.bf16.mxu1 %v6943_v61 }
 0x7f7   : > { %v1716_v1 = vpop.f32.mrb[10].mxu1 }
 0x7f8   : > { %v6606_v2 = vpop.f32.mrb[11].mxu1  ;;  %6437 = vmatmul.mubr.msk.f32.vlgmr.msra.gmra.mrb[12].mxu1 %vm1387_vm1, %v1716_v1 }
 0x7f9   : > { %6946 = vmatpush1.bf16.msra.mxu1 %v6945_v0  ;;  %1861 = vmatprep.mubr.f32.mxu1 %v7996_v15 }
 0x7fa   : > { %6607 = vmatprep.subr.mxu1 %v7996_v15 }
 0x800   : > { %6438 = vmatmul.mubr.msk.f32.vlgmr.msra.gmra.mrb[12].mxu1 %vm1387_vm1, %v1550_v36 }
 0x801   : > { %6609 = vmatprep.mubr.msk.f32.mxu1 %vm7997_vm0, %v7996_v15 }
 0x802   : > { %6608 = vmatpush3.xpose.msk.msra.mxu1 %vm1387_vm1, %v1871_v3 }
 0x803   : > { %6612 = vmatprep.subr.mxu1 %v7996_v15 }
 0x805   : > { %6610 = vmatmul.mubr.msk.f32.vlgmr.msra.gmra.mrb[14].mxu1 %vm1387_vm1, %v1869_v4 }
 0x806   : > { %6614 = vmatprep.mubr.msk.f32.mxu1 %vm7997_vm0, %v7996_v15 }
 0x8d8   : > { %v1942_v52 = vpop.f32.mrb[14].mxu1 }
 0x8d9   : > { %v6611_v5 = vpop.f32.mrb[15].mxu1  ;;  %v1946_v6 = vsel %vm1464_vm2, %v1942_v52, -inf }
 0x8da   : > { %1947 = vmax.xlane.f32.xlu0 %v1946_v6  ;;  %v1342_v5 = vld [vmem:[%s8563_s20 + $0x98] sm:$0xff] }
 0x967   : > { %v1948_v7 = vpop.xlane.xlu0 %1947 }
 0x968   : > { %v1949_v8 = vsub.f32 %v1942_v52, %v1948_v7  ;;  %v1340_v52 = vld [vmem:[%s8563_s20 + $0x88] sm:$0xff] }
 0x969   : > { %v6955_v7 = vpack.c.bf16 %v1342_v5, %v1340_v52 }
 0x96a   : > { %v1950_v9 = vmul.f32 1.442695, %v1949_v8 }
 0x96c   : > { %7436 = vpow2.f32 %v1950_v9  ;;  %v1339_v9 = vld [vmem:[%s8563_s20 + $0x80] sm:$0xff] }
 0x976   : > { %v7437_v10 = vpop.eup %7436 }
 0x977   : > { %v1952_v11 = vsel %vm1464_vm2, %v7437_v10, 0.0 }
 0x978   : > { %1953 = vadd.xlane.f32.xlu1 %v1952_v11 }
 0x989   : > { %1957 = vrot.lane.b32.xlu1 %v8855_v28, %s7999_s27 }
 0x98d   : > { %2112 = vrot.lane.b32.xlu1 %v8766_v25, %s8000_s25 }
 0x991   : > { %2110 = vrot.lane.b32.xlu1 %v8774_v27, %s8000_s25 }
 0xa05   : > { %v1954_v14 = vpop.xlane.xlu1 %1953 }
 0xa06   : > { %7438 = vrcp.f32 %v1954_v14 }
 0xa09   : > { %v1958_v21 = vpop.permute.xlu1 %1957 }
 0xa0a   : > { %6613 = vmatpush3.msk.msra.mxu1 %vm1480_vm3, %v1958_v21 }
 0xa0b   : > { %6948 = vmatprep.subr.bf16.mxu1 %v6947_v16 }
 0xa0d   : > { %v2113_v31 = vpop.permute.xlu1 %2112 }
 0xa10   : > { %v7439_v48 = vpop.eup %7438 }
 0xa11   : > { %v1956_v30 = vmul.f32 %v7439_v48, %v7437_v10  ;;  %v2111_v34 = vpop.permute.xlu1 %2110  ;;  %v1341_v10 = vld [vmem:[%s8563_s20 + $0x90] sm:$0xff] }
 0xa12   : > { %v6957_v12 = vpack.c.bf16 %v1341_v10, %v1339_v9 }
 0xa13   : > { %6615 = vmatmul.mubr.msk.f32.vlgmr.msra.gmra.mrb[16].mxu1 %vm1476_vm4, %v1956_v30 }
 0xa14   : > { %6950 = vmatpush1.bf16.msra.mxu1 %v6949_v24  ;;  %2101 = vmatprep.mubr.f32.mxu1 %v7996_v15 }
 0xa15   : > { %6617 = vmatprep.subr.mxu1 %v7996_v15 }
 0xae6   : > { %v2030_v32 = vpop.f32.mrb[16].mxu1 }
 0xae7   : > { %v6616_v33 = vpop.f32.mrb[17].mxu1  ;;  %6443 = vmatmul.mubr.msk.f32.vlgmr.msra.gmra.mrb[12].mxu1 %vm1387_vm1, %v2030_v32 }
 0xae8   : > { %6618 = vmatpush3.xpose.msk.msra.mxu1 %vm1387_vm1, %v2113_v31  ;;  %6619 = vmatprep.mubr.msk.f32.mxu1 %vm7997_vm0, %v7996_v15 }
 0xae9   : > { %6622 = vmatprep.subr.mxu1 %v7996_v15 }
 0xaeb   : > { %6620 = vmatmul.mubr.msk.f32.vlgmr.msra.gmra.mrb[18].mxu1 %vm1387_vm1, %v2111_v34 }
 0xaec   : > { %6624 = vmatprep.mubr.msk.f32.mxu1 %vm7997_vm0, %v7996_v15 }
 0xbbe   : > { %v2184_v36 = vpop.f32.mrb[18].mxu1 }
 0xbbf   : > { %v6621_v37 = vpop.f32.mrb[19].mxu1  ;;  %v2188_v38 = vsel %vm1464_vm2, %v2184_v36, -inf }
 0xbc0   : > { %2189 = vmax.xlane.f32.xlu0 %v2188_v38  ;;  %v1344_v37 = vld [vmem:[%s8563_s20 + $0xa8] sm:$0xff]  ;;  %v1346_v38 = vld [vmem:[%s8563_s20 + $0xb8] sm:$0xff] }
 0xbd6   : > { %2199 = vrot.lane.b32.xlu0 %v8855_v28, %s8000_s25 }
 0xbda   : > { %2354 = vrot.lane.b32.xlu0 %v8766_v25, %s8001_s7 }
 0xbde   : > { %2352 = vrot.lane.b32.xlu0 %v8774_v27, %s8001_s7 }
 0xc4d   : > { %v2190_v39 = vpop.xlane.xlu0 %2189 }
 0xc4e   : > { %v2191_v40 = vsub.f32 %v2184_v36, %v2190_v39  ;;  %v6959_v39 = vpack.c.bf16 %v1346_v38, %v1344_v37 }
 0xc50   : > { %v2192_v41 = vmul.f32 1.442695, %v2191_v40  ;;  %v1345_v40 = vld [vmem:[%s8563_s20 + $0xb0] sm:$0xff] }
 0xc51   : > { %v2200_v42 = vpop.permute.xlu0 %2199 }
 0xc52   : > { %7440 = vpow2.f32 %v2192_v41  ;;  %6623 = vmatpush3.msk.msra.mxu1 %vm1480_vm3, %v2200_v42 }
 0xc53   : > { %6952 = vmatprep.subr.bf16.mxu1 %v6951_v49 }
 0xc55   : > { %v2355_v57 = vpop.permute.xlu0 %2354 }
 0xc59   : > { %v2353_v60 = vpop.permute.xlu0 %2352 }
 0xc5c   : > { %v7441_v44 = vpop.eup %7440 }
 0xc5d   : > { %v2194_v45 = vsel %vm1464_vm2, %v7441_v44, 0.0 }
 0xc5e   : > { %2195 = vadd.xlane.f32.xlu1 %v2194_v45 }
 0xceb   : > { %v2196_v50 = vpop.xlane.xlu1 %2195 }
 0xcec   : > { %7442 = vrcp.f32 %v2196_v50 }
 0xcf6   : > { %v7443_v54 = vpop.eup %7442 }
 0xcf7   : > { %v2198_v56 = vmul.f32 %v7443_v54, %v7441_v44 }
 0xcf9   : > { %6625 = vmatmul.mubr.msk.f32.vlgmr.msra.gmra.mrb[20].mxu1 %vm1476_vm4, %v2198_v56 }
 0xcfa   : > { %6954 = vmatpush1.bf16.msra.mxu1 %v6953_v55  ;;  %2343 = vmatprep.mubr.f32.mxu1 %v7996_v15 }
 0xcfb   : > { %6627 = vmatprep.subr.mxu1 %v7996_v15 }
 0xdcc   : > { %v2272_v58 = vpop.f32.mrb[20].mxu1 }
 0xdcd   : > { %v6626_v59 = vpop.f32.mrb[21].mxu1  ;;  %6448 = vmatmul.mubr.msk.f32.vlgmr.msra.gmra.mrb[12].mxu1 %vm1387_vm1, %v2272_v58  ;;  %v9009_v58 = vsub.s32 1, %v8627_v35 }
 0xdce   : > { %6628 = vmatpush3.xpose.msk.msra.mxu1 %vm1387_vm1, %v2355_v57  ;;  %6629 = vmatprep.mubr.msk.f32.mxu1 %vm7997_vm0, %v7996_v15 }
 0xdcf   : > { %6632 = vmatprep.subr.mxu1 %v7996_v15  ;;  %v1074_v59 = vrot.slane %v8758_v19, %v9009_v58 }
 0xdd1   : > { %6630 = vmatmul.mubr.msk.f32.vlgmr.msra.gmra.mrb[22].mxu1 %vm1387_vm1, %v2353_v60  ;;  %v1177_v60 = vadd.f32 %v8752_v17, %v1074_v59 }
 0xdd2   : > { %6634 = vmatprep.mubr.msk.f32.mxu1 %vm7997_vm0, %v7996_v15 }
 0xea4   : > { %v2426_v61 = vpop.f32.mrb[22].mxu1 }
 0xea5   : > { %v6631_v62 = vpop.f32.mrb[23].mxu1  ;;  %v2430_v63 = vsel %vm1464_vm2, %v2426_v61, -inf }
 0xea6   : > { %2431 = vmax.xlane.f32.xlu0 %v2430_v63 }
 0xf33   : > { %v2432_v0 = vpop.xlane.xlu0 %2431 }
 0xf34   : > { %v2433_v1 = vsub.f32 %v2426_v61, %v2432_v0  ;;  %v9016_v61 = vmul.f32 0.25, %v1177_v60 }
 0xf36   : > { %v2434_v2 = vmul.f32 1.442695, %v2433_v1 }
 0xf38   : > { %7444 = vpow2.f32 %v2434_v2 }
 0xf42   : > { %v7445_v3 = vpop.eup %7444 }
 0xf43   : > { %v2436_v4 = vsel %vm1464_vm2, %v7445_v3, 0.0 }
 0xf44   : > { %2437 = vadd.xlane.f32.xlu1 %v2436_v4 }
 0xf55   : > { %2441 = vrot.lane.b32.xlu1 %v8855_v28, %s8001_s7 }
 0xf59   : > { %2596 = vrot.lane.b32.xlu1 %v8766_v25, %s8002_s12 }
 0xf5d   : > { %2594 = vrot.lane.b32.xlu1 %v8774_v27, %s8002_s12 }
 0xfd1   : > { %v2438_v6 = vpop.xlane.xlu1 %2437 }
 0xfd2   : > { %7446 = vrcp.f32 %v2438_v6 }
 0xfd5   : > { %v2442_v8 = vpop.permute.xlu1 %2441 }
 0xfd6   : > { %6633 = vmatpush3.msk.msra.mxu1 %vm1480_vm3, %v2442_v8 }
 0xfd7   : > { %6956 = vmatprep.subr.bf16.mxu1 %v6955_v7 }
 0xfd9   : > { %v2597_v14 = vpop.permute.xlu1 %2596 }
 0xfdc   : > { %v7447_v11 = vpop.eup %7446 }
 0xfdd   : > { %v2440_v13 = vmul.f32 %v7447_v11, %v7445_v3  ;;  %v2595_v22 = vpop.permute.xlu1 %2594  ;;  %v1081_v3 = vsub.s32 3, %v8627_v35 }
 0xfdf   : > { %6635 = vmatmul.mubr.msk.f32.vlgmr.msra.gmra.mrb[24].mxu1 %vm1476_vm4, %v2440_v13  ;;  %v1082_v4 = vrot.slane %v8758_v19, %v1081_v3 }
 0xfe0   : > { %6958 = vmatpush1.bf16.msra.mxu1 %v6957_v12  ;;  %2585 = vmatprep.mubr.f32.mxu1 %v7996_v15 }
 0xfe1   : > { %6637 = vmatprep.subr.mxu1 %v7996_v15  ;;  %v9028_v52 = vadd.f32 %v8768_v26, %v1082_v4 }
0x10b2   : > { %v2514_v16 = vpop.f32.mrb[24].mxu1 }
0x10b3   : > { %v6636_v21 = vpop.f32.mrb[25].mxu1  ;;  %6453 = vmatmul.mubr.msk.f32.vlgmr.msra.gmra.mrb[12].mxu1 %vm1387_vm1, %v2514_v16 }
0x10b4   : > { %6638 = vmatpush3.xpose.msk.msra.mxu1 %vm1387_vm1, %v2597_v14  ;;  %6639 = vmatprep.mubr.msk.f32.mxu1 %vm7997_vm0, %v7996_v15  ;;  %v1089_v21 = vsub.s32 5, %v8627_v35 }
0x10b5   : > { %6960 = vmatprep.subr.bf16.mxu1 %v6959_v39 }
0x10b7   : > { %6640 = vmatmul.mubr.msk.f32.vlgmr.msra.gmra.mrb[26].mxu1 %vm1387_vm1, %v2595_v22  ;;  %v1090_v22 = vrot.slane %v8758_v19, %v1089_v21 }
0x10b8   : > { %2827 = vmatprep.mubr.f32.mxu1 %v7996_v15 }
0x118a   : > { %v2668_v23 = vpop.f32.mrb[26].mxu1 }
0x118b   : > { %v6641_v48 = vpop.f32.mrb[27].mxu1  ;;  %v2672_v24 = vsel %vm1464_vm2, %v2668_v23, -inf }
0x118c   : > { %2673 = vmax.xlane.f32.xlu0 %v2672_v24 }
0x11a2   : > { %2683 = vrot.lane.b32.xlu0 %v8855_v28, %s8002_s12 }
0x11a6   : > { %2838 = vrot.lane.b32.xlu0 %v8766_v25, %s8003_s10 }
0x11aa   : > { %2836 = vrot.lane.b32.xlu0 %v8774_v27, %s8003_s10 }
0x11ae   : > { %3080 = vrot.lane.b32.xlu0 %v8766_v25, %s8004_s28  ;;  %v1343_v25 = vld [vmem:[%s8563_s20 + $0xa0] sm:$0xff] }
0x11af   : > { %v6961_v41 = vpack.c.bf16 %v1345_v40, %v1343_v25 }
0x11b1   : > { %6962 = vmatpush1.bf16.msra.mxu1 %v6961_v41 }
0x11b2   : > { %6652 = vmatprep.subr.mxu1 %v7996_v15 }
0x1219   : > { %v2674_v30 = vpop.xlane.xlu0 %2673 }
0x121a   : > { %v2675_v31 = vsub.f32 %v2668_v23, %v2674_v30  ;;  %v9055_v23 = vadd.f32 %v8857_v29, %v1090_v22 }
0x121c   : > { %v2676_v32 = vmul.f32 1.442695, %v2675_v31 }
0x121d   : > { %v2684_v33 = vpop.permute.xlu0 %2683 }
0x121e   : > { %7448 = vpow2.f32 %v2676_v32  ;;  %6643 = vmatpush3.msk.msra.mxu0 %vm1480_vm3, %v2684_v33 }
0x121f   : > { %6647 = vmatprep.subr.mxu0 %v7996_v15 }
0x1221   : > { %v2839_v44 = vpop.permute.xlu0 %2838 }
0x1225   : > { %v2837_v46 = vpop.permute.xlu0 %2836 }
0x1228   : > { %v7449_v34 = vpop.eup %7448 }
0x1229   : > { %v2678_v36 = vsel %vm1464_vm2, %v7449_v34, 0.0 }
0x122a   : > { %2679 = vadd.xlane.f32.xlu1 %v2678_v36 }
0x123b   : > { %3078 = vrot.lane.b32.xlu1 %v8774_v27, %s8004_s28  ;;  %v3081_v27 = vpop.permute.xlu0 %3080 }
0x12b7   : > { %v2680_v42 = vpop.xlane.xlu1 %2679 }
0x12b8   : > { %7450 = vrcp.f32 %v2680_v42 }
0x12bb   : > { %v3079_v49 = vpop.permute.xlu1 %3078 }
0x12c2   : > { %v7451_v45 = vpop.eup %7450 }
0x12c3   : > { %v2682_v47 = vmul.f32 %v7451_v45, %v7449_v34 }
0x12c5   : > { %6645 = vmatmul.mubr.msk.f32.vlgmr.msra.gmra.mrb[2].mxu0 %vm1476_vm4, %v2682_v47 }
0x12c6   : > { %6648 = vmatpush3.xpose.msk.msra.mxu0 %vm1387_vm1, %v2839_v44  ;;  %6649 = vmatprep.mubr.msk.f32.mxu0 %vm7997_vm0, %v7996_v15 }
0x12c7   : > { %6657 = vmatprep.subr.mxu0 %v7996_v15 }
0x12c9   : > { %6650 = vmatmul.mubr.msk.f32.vlgmr.msra.gmra.mrb[4].mxu0 %vm1387_vm1, %v2837_v46 }
0x12ca   : > { %6658 = vmatpush3.xpose.msk.msra.mxu0 %vm1387_vm1, %v3081_v27  ;;  %6659 = vmatprep.mubr.msk.f32.mxu0 %vm7997_vm0, %v7996_v15 }
0x12cb   : > { %6662 = vmatprep.subr.mxu0 %v7996_v15 }
0x12cd   : > { %6660 = vmatmul.mubr.msk.f32.vlgmr.msra.gmra.mrb[6].mxu0 %vm1387_vm1, %v3079_v49 }
0x12ce   : > { %6664 = vmatprep.mubr.msk.f32.mxu0 %vm7997_vm0, %v7996_v15 }
0x1398   : > { %v2756_v50 = vpop.f32.mrb[2].mxu0 }
0x1399   : > { %v6646_v51 = vpop.f32.mrb[3].mxu0  ;;  %6458 = vmatmul.mubr.msk.f32.vlgmr.msra.gmra.mrb[12].mxu1 %vm1387_vm1, %v2756_v50 }
0x139a   : > { %6654 = vmatprep.mubr.msk.f32.mxu1 %vm7997_vm0, %v7996_v15 }
0x139c   : > { %v9005_v53 = vpop.f32.mrb[4].mxu0 }
0x139d   : > { %v6651_v54 = vpop.f32.mrb[5].mxu0  ;;  %v2914_v32 = vsel %vm1464_vm2, %v9005_v53, -inf }
0x13a0   : > { %v3152_v55 = vpop.f32.mrb[6].mxu0 }
0x13a1   : > { %v6661_v56 = vpop.f32.mrb[7].mxu0  ;;  %v3156_v57 = vsel %vm1464_vm2, %v3152_v55, -inf }
0x13a2   : > { %3157 = vmax.xlane.f32.xlu0 %v3156_v57 }
0x13b8   : > { %3167 = vrot.lane.b32.xlu0 %v8855_v28, %s8004_s28 }
0x13bc   : > { %3559 = vrot.lane.b32.xlu0 %v9016_v61, %s7998_s1 }
0x142f   : > { %v3158_v62 = vpop.xlane.xlu0 %3157 }
0x1430   : > { %v3159_v63 = vsub.f32 %v3152_v55, %v3158_v62 }
0x1432   : > { %v3160_v0 = vmul.f32 1.442695, %v3159_v63 }
0x1433   : > { %v3168_v1 = vpop.permute.xlu0 %3167 }
0x1434   : > { %7452 = vpow2.f32 %v3160_v0  ;;  %6663 = vmatpush3.msk.msra.mxu0 %vm1480_vm3, %v3168_v1 }
0x1435   : > { %6667 = vmatprep.subr.mxu0 %v7996_v15 }
0x1437   : > { %v3560_v26 = vpop.permute.xlu0 %3559 }
0x143e   : > { %v7453_v2 = vpop.eup %7452 }
0x143f   : > { %v3162_v17 = vsel %vm1464_vm2, %v7453_v2, 0.0 }
0x1440   : > { %3163 = vadd.xlane.f32.xlu1 %v3162_v17  ;;  %v1350_v17 = vld [vmem:[%s8563_s20 + $0xd8] sm:$0xff] }
0x1451   : > { %3561 = vrot.lane.b32.xlu1 %v9028_v52, %s7998_s1 }
0x14cd   : > { %v3164_v5 = vpop.xlane.xlu1 %3163 }
0x14ce   : > { %7454 = vrcp.f32 %v3164_v5  ;;  %v1347_v5 = vld [vmem:[%s8563_s20 + $0xc0] sm:$0xff] }
0x14d1   : > { %v3562_v8 = vpop.permute.xlu1 %3561 }
0x14d8   : > { %v7455_v6 = vpop.eup %7454 }
0x14d9   : > { %v3166_v7 = vmul.f32 %v7455_v6, %v7453_v2  ;;  %v1348_v2 = vld [vmem:[%s8563_s20 + $0xc8] sm:$0xff]  ;;  %v1349_v6 = vld [vmem:[%s8563_s20 + $0xd0] sm:$0xff] }
0x14da   : > { %v6963_v4 = vpack.c.bf16 %v1350_v17, %v1348_v2 }
0x14db   : > { %6665 = vmatmul.mubr.msk.f32.vlgmr.msra.gmra.mrb[8].mxu0 %vm1476_vm4, %v3166_v7  ;;  %v6965_v7 = vpack.c.bf16 %v1349_v6, %v1347_v5  ;;  %v1359_v6 = vld [vmem:[%s8563_s20 + $0x120] sm:$0xff] }
0x14dc   : > { %6668 = vmatpush3.xpose.msk.msra.mxu0 %vm1387_vm1, %v9028_v52  ;;  %6669 = vmatprep.mubr.msk.f32.mxu0 %vm7997_vm0, %v7996_v15 }
0x14dd   : > { %6677 = vmatprep.subr.mxu0 %v7996_v15 }
0x14df   : > { %6670 = vmatmul.mubr.msk.f32.vlgmr.msra.gmra.mrb[10].mxu0 %vm1387_vm1, %v9016_v61 }
0x14e0   : > { %6678 = vmatpush3.xpose.msk.msra.mxu0 %vm1387_vm1, %v3562_v8  ;;  %6679 = vmatprep.mubr.msk.f32.mxu0 %vm7997_vm0, %v7996_v15  ;;  %v1352_v8 = vld [vmem:[%s8563_s20 + $0xe8] sm:$0xff] }
0x14e1   : > { %6682 = vmatprep.subr.mxu0 %v7996_v15 }
0x14e3   : > { %6680 = vmatmul.mubr.msk.f32.vlgmr.msra.gmra.mrb[12].mxu0 %vm1387_vm1, %v3560_v26  ;;  %v1354_v26 = vld [vmem:[%s8563_s20 + $0xf8] sm:$0xff] }
0x14e4   : > { %6684 = vmatprep.mubr.msk.f32.mxu0 %vm7997_vm0, %v7996_v15 }
0x15ae   : > { %v9047_v9 = vpop.f32.mrb[8].mxu0 }
0x15af   : > { %v6666_v10 = vpop.f32.mrb[9].mxu0 }
0x15b0   : > { %v6967_v10 = vpack.c.bf16 %v1354_v26, %v1352_v8 }
0x15b2   : > { %v9049_v11 = vpop.f32.mrb[10].mxu0 }
0x15b3   : > { %v6671_v12 = vpop.f32.mrb[11].mxu0  ;;  %v3396_v0 = vsel %vm1464_vm2, %v9049_v11, -inf }
0x15b6   : > { %v3633_v13 = vpop.f32.mrb[12].mxu0 }
0x15b7   : > { %v6681_v14 = vpop.f32.mrb[13].mxu0  ;;  %v3637_v16 = vsel %vm1464_vm2, %v3633_v13, -inf }
0x15b8   : > { %3638 = vmax.xlane.f32.xlu0 %v3637_v16 }
0x15ce   : > { %3648 = vrot.lane.b32.xlu0 %v9055_v23, %s7998_s1 }
0x15d2   : > { %3801 = vrot.lane.b32.xlu0 %v9016_v61, %s7999_s27 }
0x15d6   : > { %4045 = vrot.lane.b32.xlu0 %v9028_v52, %s8000_s25 }
0x15da   : > { %4043 = vrot.lane.b32.xlu0 %v9016_v61, %s8000_s25 }
0x1645   : > { %v3639_v48 = vpop.xlane.xlu0 %3638 }
0x1646   : > { %v3640_v24 = vsub.f32 %v3633_v13, %v3639_v48 }
0x1648   : > { %v3641_v30 = vmul.f32 1.442695, %v3640_v24 }
0x1649   : > { %v3649_v31 = vpop.permute.xlu0 %3648 }
0x164a   : > { %7456 = vpow2.f32 %v3641_v30  ;;  %6683 = vmatpush3.msk.msra.mxu0 %vm1480_vm3, %v3649_v31 }
0x164b   : > { %6687 = vmatprep.subr.mxu0 %v7996_v15 }
0x164d   : > { %v3802_v34 = vpop.permute.xlu0 %3801 }
0x1651   : > { %v4046_v25 = vpop.permute.xlu0 %4045 }
0x1654   : > { %v7457_v19 = vpop.eup %7456 }
0x1655   : > { %v3643_v29 = vsel %vm1464_vm2, %v7457_v19, 0.0  ;;  %v4044_v39 = vpop.permute.xlu0 %4043 }
0x1656   : > { %3644 = vadd.xlane.f32.xlu1 %v3643_v29  ;;  %v1353_v29 = vld [vmem:[%s8563_s20 + $0xf0] sm:$0xff] }
0x1667   : > { %3803 = vrot.lane.b32.xlu1 %v9028_v52, %s7999_s27 }
0x168b   : > { %2915 = vmax.xlane.f32.xlu1 %v2914_v32 }
0x16e3   : > { %v3645_v33 = vpop.xlane.xlu1 %3644 }
0x16e4   : > { %7458 = vrcp.f32 %v3645_v33 }
0x16e7   : > { %v3804_v38 = vpop.permute.xlu1 %3803 }
0x16ee   : > { %v7459_v36 = vpop.eup %7458 }
0x16ef   : > { %v3647_v37 = vmul.f32 %v7459_v36, %v7457_v19  ;;  %v1351_v19 = vld [vmem:[%s8563_s20 + $0xe0] sm:$0xff] }
0x16f0   : > { %v6969_v33 = vpack.c.bf16 %v1353_v29, %v1351_v19  ;;  %v1370_v19 = vld [vmem:[%s8563_s20 + $0x178] sm:$0xff] }
0x16f1   : > { %6685 = vmatmul.mubr.msk.f32.vlgmr.msra.gmra.mrb[14].mxu0 %vm1476_vm4, %v3647_v37 }
0x16f2   : > { %6688 = vmatpush3.xpose.msk.msra.mxu0 %vm1387_vm1, %v3804_v38  ;;  %6689 = vmatprep.mubr.msk.f32.mxu0 %vm7997_vm0, %v7996_v15 }
0x16f3   : > { %6697 = vmatprep.subr.mxu0 %v7996_v15 }
0x16f5   : > { %6690 = vmatmul.mubr.msk.f32.vlgmr.msra.gmra.mrb[16].mxu0 %vm1387_vm1, %v3802_v34 }
0x16f6   : > { %6698 = vmatpush3.xpose.msk.msra.mxu0 %vm1387_vm1, %v4046_v25  ;;  %6699 = vmatprep.mubr.msk.f32.mxu0 %vm7997_vm0, %v7996_v15 }
0x16f7   : > { %6702 = vmatprep.subr.mxu0 %v7996_v15 }
0x16f9   : > { %6700 = vmatmul.mubr.msk.f32.vlgmr.msra.gmra.mrb[18].mxu0 %vm1387_vm1, %v4044_v39 }
0x16fa   : > { %6704 = vmatprep.mubr.msk.f32.mxu0 %vm7997_vm0, %v7996_v15 }
0x1718   : > { %v2916_v40 = vpop.xlane.xlu1 %2915 }
0x1719   : > { %v2917_v41 = vsub.f32 %v9005_v53, %v2916_v40 }
0x171b   : > { %v2918_v42 = vmul.f32 1.442695, %v2917_v41 }
0x171d   : > { %7460 = vpow2.f32 %v2918_v42 }
0x1727   : > { %v7461_v44 = vpop.eup %7460 }
0x1728   : > { %v2920_v45 = vsel %vm1464_vm2, %v7461_v44, 0.0 }
0x1729   : > { %2921 = vadd.xlane.f32.xlu0 %v2920_v45 }
0x17b6   : > { %v2922_v53 = vpop.xlane.xlu0 %2921 }
0x17b7   : > { %7462 = vrcp.f32 %v2922_v53  ;;  %v1358_v53 = vld [vmem:[%s8563_s20 + $0x118] sm:$0xff] }
0x17c1   : > { %v7463_v56 = vpop.eup %7462 }
0x17c4   : > { %v9087_v46 = vpop.f32.mrb[14].mxu0 }
0x17c5   : > { %v6686_v47 = vpop.f32.mrb[15].mxu0 }
0x17c8   : > { %v9089_v27 = vpop.f32.mrb[16].mxu0 }
0x17c9   : > { %v6691_v49 = vpop.f32.mrb[17].mxu0  ;;  %v3879_v1 = vsel %vm1464_vm2, %v9089_v27, -inf }
0x17cc   : > { %v4117_v50 = vpop.f32.mrb[18].mxu0 }
0x17cd   : > { %v6701_v51 = vpop.f32.mrb[19].mxu0  ;;  %v4121_v54 = vsel %vm1464_vm2, %v4117_v50, -inf }
0x17ce   : > { %4122 = vmax.xlane.f32.xlu0 %v4121_v54  ;;  %v1356_v54 = vld [vmem:[%s8563_s20 + $0x108] sm:$0xff] }
0x17e4   : > { %2925 = vrot.lane.b32.xlu0 %v8855_v28, %s8003_s10  ;;  %v2924_v28 = vmul.f32 %v7463_v56, %v7461_v44  ;;  %v6971_v56 = vpack.c.bf16 %v1358_v53, %v1356_v54 }
0x17e8   : > { %4287 = vrot.lane.b32.xlu0 %v9028_v52, %s8001_s7 }
0x17ec   : > { %4285 = vrot.lane.b32.xlu0 %v9016_v61, %s8001_s7 }
0x17f0   : > { %4529 = vrot.lane.b32.xlu0 %v9028_v52, %s8002_s12 }
0x17f4   : > { %4527 = vrot.lane.b32.xlu0 %v9016_v61, %s8002_s12 }
0x185b   : > { %v4123_v55 = vpop.xlane.xlu0 %4122 }
0x185c   : > { %v4124_v57 = vsub.f32 %v4117_v50, %v4123_v55  ;;  %v1355_v55 = vld [vmem:[%s8563_s20 + $0x100] sm:$0xff] }
0x185e   : > { %v4125_v59 = vmul.f32 1.442695, %v4124_v57  ;;  %v1357_v57 = vld [vmem:[%s8563_s20 + $0x110] sm:$0xff] }
0x185f   : > { %v2926_v60 = vpop.permute.xlu0 %2925 }
0x1860   : > { %7464 = vpow2.f32 %v4125_v59  ;;  %6653 = vmatpush3.msk.msra.mxu1 %vm1480_vm3, %v2926_v60  ;;  %v6973_v59 = vpack.c.bf16 %v1357_v57, %v1355_v55  ;;  %v1362_v60 = vld [vmem:[%s8563_s20 + $0x138] sm:$0xff] }
0x1861   : > { %6655 = vmatmul.mubr.msk.f32.vlgmr.msra.gmra.mrb[28].mxu1 %vm1476_vm4, %v2924_v28  ;;  %6964 = vmatprep.subr.bf16.mxu1 %v6963_v4  ;;  %v1360_v28 = vld [vmem:[%s8563_s20 + $0x128] sm:$0xff] }
0x1862   : > { %3069 = vmatprep.mubr.f32.mxu1 %v7996_v15  ;;  %6966 = vmatpush1.bf16.msra.mxu1 %v6965_v7  ;;  %v1361_v7 = vld [vmem:[%s8563_s20 + $0x130] sm:$0xff] }
0x1863   : > { %6968 = vmatprep.subr.bf16.mxu1 %v6967_v10  ;;  %v4288_v13 = vpop.permute.xlu0 %4287  ;;  %v6977_v8 = vpack.c.bf16 %v1361_v7, %v1359_v6 }
0x1867   : > { %v4286_v16 = vpop.permute.xlu0 %4285 }
0x186a   : > { %v7465_v62 = vpop.eup %7464 }
0x186b   : > { %v4127_v63 = vsel %vm1464_vm2, %v7465_v62, 0.0  ;;  %v4530_v48 = vpop.permute.xlu0 %4529 }
0x186c   : > { %4128 = vadd.xlane.f32.xlu1 %v4127_v63 }
0x186f   : > { %v4528_v24 = vpop.permute.xlu0 %4527 }
0x187d   : > { %4132 = vrot.lane.b32.xlu1 %v9055_v23, %s8000_s25 }
0x18a1   : > { %3397 = vmax.xlane.f32.xlu1 %v3396_v0 }
0x18a5   : > { %3880 = vmax.xlane.f32.xlu1 %v3879_v1 }
0x18f9   : > { %v4129_v12 = vpop.xlane.xlu1 %4128 }
0x18fa   : > { %7466 = vrcp.f32 %v4129_v12 }
0x18fd   : > { %v4133_v14 = vpop.permute.xlu1 %4132 }
0x18fe   : > { %6703 = vmatpush3.msk.msra.mxu0 %vm1480_vm3, %v4133_v14 }
0x18ff   : > { %6707 = vmatprep.subr.mxu0 %v7996_v15 }
0x1904   : > { %v7467_v21 = vpop.eup %7466 }
0x1905   : > { %v4131_v22 = vmul.f32 %v7467_v21, %v7465_v62  ;;  %v6975_v62 = vpack.c.bf16 %v1362_v60, %v1360_v28  ;;  %v1366_v21 = vld [vmem:[%s8563_s20 + $0x158] sm:$0xff] }
0x1907   : > { %6705 = vmatmul.mubr.msk.f32.vlgmr.msra.gmra.mrb[20].mxu0 %vm1476_vm4, %v4131_v22  ;;  %v1363_v22 = vld [vmem:[%s8563_s20 + $0x140] sm:$0xff] }
0x1908   : > { %6708 = vmatpush3.xpose.msk.msra.mxu0 %vm1387_vm1, %v4288_v13  ;;  %6709 = vmatprep.mubr.msk.f32.mxu0 %vm7997_vm0, %v7996_v15 }
0x1909   : > { %6717 = vmatprep.subr.mxu0 %v7996_v15 }
0x190b   : > { %6710 = vmatmul.mubr.msk.f32.vlgmr.msra.gmra.mrb[22].mxu0 %vm1387_vm1, %v4286_v16  ;;  %v1364_v16 = vld [vmem:[%s8563_s20 + $0x148] sm:$0xff] }
0x190c   : > { %6718 = vmatpush3.xpose.msk.msra.mxu0 %vm1387_vm1, %v4530_v48  ;;  %6719 = vmatprep.mubr.msk.f32.mxu0 %vm7997_vm0, %v7996_v15  ;;  %v1365_v48 = vld [vmem:[%s8563_s20 + $0x150] sm:$0xff] }
0x190d   : > { %6722 = vmatprep.subr.mxu0 %v7996_v15 }
0x190f   : > { %6720 = vmatmul.mubr.msk.f32.vlgmr.msra.gmra.mrb[24].mxu0 %vm1387_vm1, %v4528_v24  ;;  %v6981_v24 = vpack.c.bf16 %v1365_v48, %v1363_v22  ;;  %v1375_v22 = vld [vmem:[%s8563_s20 + $0x1a0] sm:$0xff] }
0x1910   : > { %6724 = vmatprep.mubr.msk.f32.mxu0 %vm7997_vm0, %v7996_v15 }
0x192e   : > { %v3398_v30 = vpop.xlane.xlu1 %3397 }
0x192f   : > { %v3399_v31 = vsub.f32 %v9049_v11, %v3398_v30 }
0x1931   : > { %v3400_v32 = vmul.f32 1.442695, %v3399_v31  ;;  %v1368_v31 = vld [vmem:[%s8563_s20 + $0x168] sm:$0xff] }
0x1933   : > { %7468 = vpow2.f32 %v3400_v32  ;;  %v6983_v32 = vpack.c.bf16 %v1370_v19, %v1368_v31  ;;  %v1380_v31 = vld [vmem:[%s8563_s20 + $0x1c8] sm:$0xff]  ;;  %v1382_v19 = vld [vmem:[%s8563_s20 + $0x1d8] sm:$0xff] }
0x1934   : > { %v2998_v34 = vpop.f32.mrb[28].mxu1 }
0x1935   : > { %v6656_v36 = vpop.f32.mrb[29].mxu1  ;;  %6463 = vmatmul.mubr.msk.f32.vlgmr.msra.gmra.mrb[12].mxu1 %vm1387_vm1, %v2998_v34 }
0x1936   : > { %6970 = vmatpush1.bf16.msra.mxu1 %v6969_v33  ;;  %3311 = vmatprep.mubr.f32.mxu1 %v7996_v15 }
0x1937   : > { %6672 = vmatprep.subr.mxu1 %v7996_v15 }
0x193d   : > { %v7469_v37 = vpop.eup %7468  ;;  %6468 = vmatmul.mubr.msk.f32.vlgmr.msra.gmra.mrb[12].mxu1 %vm1387_vm1, %v9047_v9  ;;  %v3881_v9 = vpop.xlane.xlu1 %3880 }
0x193e   : > { %6673 = vmatpush3.msk.msra.mxu1 %vm1480_vm3, %v9055_v23  ;;  %v3402_v11 = vsel %vm1464_vm2, %v7469_v37, 0.0  ;;  %6674 = vmatprep.mubr.msk.f32.mxu1 %vm7997_vm0, %v7996_v15  ;;  %v3882_v25 = vsub.f32 %v9089_v27, %v3881_v9 }
0x193f   : > { %3403 = vadd.xlane.f32.xlu0 %v3402_v11  ;;  %6972 = vmatprep.subr.bf16.mxu1 %v6971_v56 }
0x1940   : > { %v3883_v39 = vmul.f32 1.442695, %v3882_v25 }
0x1955   : > { %3890 = vrot.lane.b32.xlu0 %v9055_v23, %s7999_s27 }
0x1959   : > { %4769 = vrot.lane.b32.xlu0 %v9016_v61, %s8003_s10 }
0x195d   : > { %5011 = vrot.lane.b32.xlu0 %v9016_v61, %s8004_s28 }
0x19cc   : > { %v3404_v38 = vpop.xlane.xlu0 %3403 }
0x19cd   : > { %7470 = vrcp.f32 %v3404_v38 }
0x19ce   : > { %7472 = vpow2.f32 %v3883_v39 }
0x19d0   : > { %v3891_v13 = vpop.permute.xlu0 %3890 }
0x19d4   : > { %v4770_v36 = vpop.permute.xlu0 %4769 }
0x19d7   : > { %v7471_v40 = vpop.eup %7470 }
0x19d8   : > { %v3406_v41 = vmul.f32 %v7471_v40, %v7469_v37  ;;  %v7473_v50 = vpop.eup %7472  ;;  %v5012_v11 = vpop.permute.xlu0 %5011 }
0x19d9   : > { %v3885_v51 = vsel %vm1464_vm2, %v7473_v50, 0.0 }
0x19da   : > { %6675 = vmatmul.mubr.msk.f32.vlgmr.msra.gmra.mrb[30].mxu1 %vm1476_vm4, %v3406_v41  ;;  %v9154_v42 = vpop.f32.mrb[20].mxu0  ;;  %v1367_v41 = vld [vmem:[%s8563_s20 + $0x160] sm:$0xff] }
0x19db   : > { %v6706_v44 = vpop.f32.mrb[21].mxu0  ;;  %3550 = vmatprep.mubr.f32.mxu1 %v7996_v15  ;;  %6974 = vmatpush1.bf16.msra.mxu1 %v6973_v59 }
0x19dc   : > { %6976 = vmatprep.subr.bf16.mxu1 %v6975_v62  ;;  %v1369_v44 = vld [vmem:[%s8563_s20 + $0x170] sm:$0xff]  ;;  %v1372_v62 = vld [vmem:[%s8563_s20 + $0x188] sm:$0xff] }
0x19de   : > { %v9157_v61 = vpop.f32.mrb[22].mxu0 }
0x19df   : > { %v6711_v45 = vpop.f32.mrb[23].mxu0 }
0x19e0   : > { %v6985_v45 = vpack.c.bf16 %v1369_v44, %v1367_v41  ;;  %v1383_v44 = vld [vmem:[%s8563_s20 + $0x1e0] sm:$0xff] }
0x19e2   : > { %v4601_v47 = vpop.f32.mrb[24].mxu0 }
0x19e3   : > { %v6721_v27 = vpop.f32.mrb[25].mxu0  ;;  %v4605_v49 = vsel %vm1464_vm2, %v4601_v47, -inf }
0x19e4   : > { %4606 = vmax.xlane.f32.xlu1 %v4605_v49 }
0x19e8   : > { %3886 = vadd.xlane.f32.xlu1 %v3885_v51 }
0x19f9   : > { %4616 = vrot.lane.b32.xlu1 %v9055_v23, %s8002_s12 }
0x19fd   : > { %4771 = vrot.lane.b32.xlu1 %v9028_v52, %s8003_s10 }
0x1a71   : > { %v4607_v63 = vpop.xlane.xlu1 %4606 }
0x1a72   : > { %v4608_v0 = vsub.f32 %v4601_v47, %v4607_v63  ;;  %v1374_v63 = vld [vmem:[%s8563_s20 + $0x198] sm:$0xff] }
0x1a74   : > { %v4609_v1 = vmul.f32 1.442695, %v4608_v0  ;;  %v1371_v0 = vld [vmem:[%s8563_s20 + $0x180] sm:$0xff] }
0x1a75   : > { %v3887_v2 = vpop.xlane.xlu1 %3886 }
0x1a76   : > { %7474 = vpow2.f32 %v4609_v1  ;;  %v6987_v1 = vpack.c.bf16 %v1374_v63, %v1372_v62 }
0x1a77   : > { %7476 = vrcp.f32 %v3887_v2  ;;  %v1373_v2 = vld [vmem:[%s8563_s20 + $0x190] sm:$0xff] }
0x1a79   : > { %v4617_v17 = vpop.permute.xlu1 %4616 }
0x1a7a   : > { %6723 = vmatpush3.msk.msra.mxu0 %vm1480_vm3, %v4617_v17  ;;  %v6989_v17 = vpack.c.bf16 %v1373_v2, %v1371_v0 }
0x1a7b   : > { %6727 = vmatprep.subr.mxu0 %v7996_v15 }
0x1a7d   : > { %v4772_v30 = vpop.permute.xlu1 %4771 }
0x1a80   : > { %v7475_v4 = vpop.eup %7474 }
0x1a81   : > { %v4611_v5 = vsel %vm1464_vm2, %v7475_v4, 0.0  ;;  %v7477_v12 = vpop.eup %7476 }
0x1a82   : > { %4612 = vadd.xlane.f32.xlu1 %v4611_v5  ;;  %v3889_v14 = vmul.f32 %v7477_v12, %v7473_v50  ;;  %v1378_v5 = vld [vmem:[%s8563_s20 + $0x1b8] sm:$0xff] }
0x1a93   : > { %5013 = vrot.lane.b32.xlu1 %v9028_v52, %s8004_s28  ;;  %v4363_v52 = vsel %vm1464_vm2, %v9157_v61, -inf }
0x1aad   : > { %v3479_v26 = vpop.f32.mrb[30].mxu1 }
0x1aae   : > { %v6676_v10 = vpop.f32.mrb[31].mxu1  ;;  %6473 = vmatmul.mubr.msk.f32.vlgmr.msra.gmra.mrb[12].mxu1 %vm1387_vm1, %v3479_v26 }
0x1aaf   : > { %6978 = vmatpush1.bf16.msra.mxu1 %v6977_v8  ;;  %3792 = vmatprep.mubr.f32.mxu1 %v7996_v15 }
0x1ab0   : > { %6692 = vmatprep.subr.mxu1 %v7996_v15 }
0x1ab6   : > { %6478 = vmatmul.mubr.msk.f32.vlgmr.msra.gmra.mrb[12].mxu1 %vm1387_vm1, %v9087_v46  ;;  %v6979_v46 = vpack.c.bf16 %v1366_v21, %v1364_v16 }
0x1ab7   : > { %6693 = vmatpush3.msk.msra.mxu1 %vm1480_vm3, %v3891_v13  ;;  %4364 = vmax.xlane.f32.xlu1 %v4363_v52 }
0x1ab8   : > { %6694 = vmatprep.mubr.msk.f32.mxu1 %vm7997_vm0, %v7996_v15  ;;  %6980 = vmatprep.subr.bf16.mxu1 %v6979_v46  ;;  %v1377_v46 = vld [vmem:[%s8563_s20 + $0x1b0] sm:$0xff] }
0x1ab9   : > { %v6993_v48 = vpack.c.bf16 %v1377_v46, %v1375_v22  ;;  %v5388_v22 = vld [vmem:[%s8580_s5 + $0x58] sm:$0xff] }
0x1aba   : > { %6695 = vmatmul.mubr.msk.f32.vlgmr.msra.gmra.mrb[32].mxu1 %vm1476_vm4, %v3889_v14  ;;  %v5392_v46 = vld [vmem:[%s8580_s5 + $0x78] sm:$0xff] }
0x1abb   : > { %4034 = vmatprep.mubr.f32.mxu1 %v7996_v15  ;;  %6982 = vmatpush1.bf16.msra.mxu1 %v6981_v24 }
0x1abc   : > { %6984 = vmatprep.subr.bf16.mxu1 %v6983_v32  ;;  %v6995_v32 = vpack.c.bf16 %v1382_v19, %v1380_v31  ;;  %v5387_v31 = vld [vmem:[%s8580_s5 + $0x50] sm:$0xff] }
0x1b0f   : > { %v4613_v29 = vpop.xlane.xlu1 %4612 }
0x1b10   : > { %7478 = vrcp.f32 %v4613_v29 }
0x1b13   : > { %v5014_v37 = vpop.permute.xlu1 %5013 }
0x1b1a   : > { %v7479_v33 = vpop.eup %7478 }
0x1b1b   : > { %v4615_v34 = vmul.f32 %v7479_v33, %v7475_v4  ;;  %v1376_v4 = vld [vmem:[%s8563_s20 + $0x1a8] sm:$0xff] }
0x1b1c   : > { %v6991_v6 = vpack.c.bf16 %v1378_v5, %v1376_v4  ;;  %v5382_v4 = vld [vmem:[%s8580_s5 + $0x28] sm:$0xff]  ;;  %v5380_v5 = vld [vmem:[%s8580_s5 + $0x18] sm:$0xff] }
0x1b1d   : > { %6725 = vmatmul.mubr.msk.f32.vlgmr.msra.gmra.mrb[26].mxu0 %vm1476_vm4, %v4615_v34  ;;  %v1379_v34 = vld [vmem:[%s8563_s20 + $0x1c0] sm:$0xff] }
0x1b1e   : > { %6728 = vmatpush3.xpose.msk.msra.mxu0 %vm1387_vm1, %v4772_v30  ;;  %6729 = vmatprep.mubr.msk.f32.mxu0 %vm7997_vm0, %v7996_v15 }
0x1b1f   : > { %6737 = vmatprep.subr.mxu0 %v7996_v15 }
0x1b21   : > { %6730 = vmatmul.mubr.msk.f32.vlgmr.msra.gmra.mrb[28].mxu0 %vm1387_vm1, %v4770_v36  ;;  %v1381_v36 = vld [vmem:[%s8563_s20 + $0x1d0] sm:$0xff] }
0x1b22   : > { %6738 = vmatpush3.xpose.msk.msra.mxu0 %vm1387_vm1, %v5014_v37  ;;  %6739 = vmatprep.mubr.msk.f32.mxu0 %vm7997_vm0, %v7996_v15 }
0x1b23   : > { %6742 = vmatprep.subr.mxu0 %v7996_v15 }
0x1b25   : > { %6740 = vmatmul.mubr.msk.f32.vlgmr.msra.gmra.mrb[30].mxu0 %vm1387_vm1, %v5012_v11  ;;  %v6997_v11 = vpack.c.bf16 %v1381_v36, %v1379_v34 }
0x1b26   : > { %6744 = vmatprep.mubr.msk.f32.mxu0 %vm7997_vm0, %v7996_v15 }
0x1b44   : > { %v4365_v38 = vpop.xlane.xlu1 %4364 }
0x1b45   : > { %v4366_v9 = vsub.f32 %v9157_v61, %v4365_v38 }
0x1b47   : > { %v4367_v25 = vmul.f32 1.442695, %v4366_v9 }
0x1b49   : > { %7480 = vpow2.f32 %v4367_v25 }
0x1b53   : > { %v7481_v39 = vpop.eup %7480 }
0x1b54   : > { %v4369_v40 = vsel %vm1464_vm2, %v7481_v39, 0.0 }
0x1b55   : > { %4370 = vadd.xlane.f32.xlu0 %v4369_v40  ;;  %v1386_v40 = vld [vmem:[%s8563_s20 + $0x1f8] sm:$0xff] }
0x1b6b   : > { %4374 = vrot.lane.b32.xlu0 %v9055_v23, %s8001_s7 }
0x1b6f   : > { %5100 = vrot.lane.b32.xlu0 %v9055_v23, %s8004_s28 }
0x1b8d   : > { %v3963_v47 = vpop.f32.mrb[32].mxu1 }
0x1b8e   : > { %v6696_v27 = vpop.f32.mrb[33].mxu1  ;;  %6483 = vmatmul.mubr.msk.f32.vlgmr.msra.gmra.mrb[12].mxu1 %vm1387_vm1, %v3963_v47 }
0x1b8f   : > { %6986 = vmatpush1.bf16.msra.mxu1 %v6985_v45  ;;  %4276 = vmatprep.mubr.f32.mxu1 %v7996_v15  ;;  %v1385_v45 = vld [vmem:[%s8563_s20 + $0x1f0] sm:$0xff] }
0x1b90   : > { %6712 = vmatprep.subr.mxu1 %v7996_v15  ;;  %v7001_v47 = vpack.c.bf16 %v1385_v45, %v1383_v44  ;;  %v5402_v44 = vld [vmem:[%s8580_s5 + $0xc8] sm:$0xff] }
0x1b91   : > { %v5406_v45 = vld [vmem:[%s8580_s5 + $0xe8] sm:$0xff] }
0x1b96   : > { %6488 = vmatmul.mubr.msk.f32.vlgmr.msra.gmra.mrb[12].mxu1 %vm1387_vm1, %v9154_v42 }
0x1b97   : > { %6714 = vmatprep.mubr.msk.f32.mxu1 %vm7997_vm0, %v7996_v15 }
0x1be2   : > { %v4371_v61 = vpop.xlane.xlu0 %4370 }
0x1be3   : > { %7482 = vrcp.f32 %v4371_v61 }
0x1be6   : > { %v4375_v49 = vpop.permute.xlu0 %4374 }
0x1be7   : > { %6713 = vmatpush3.msk.msra.mxu1 %vm1480_vm3, %v4375_v49 }
0x1be8   : > { %6988 = vmatprep.subr.bf16.mxu1 %v6987_v1 }
0x1bea   : > { %v5101_v50 = vpop.permute.xlu0 %5100 }
0x1beb   : > { %6743 = vmatpush3.msk.msra.mxu0 %vm1480_vm3, %v5101_v50 }
0x1bed   : > { %v7483_v51 = vpop.eup %7482 }
0x1bee   : > { %v4373_v54 = vmul.f32 %v7483_v51, %v7481_v39  ;;  %v1384_v39 = vld [vmem:[%s8563_s20 + $0x1e8] sm:$0xff]  ;;  %v5253_v51 = vld [vmem:[%s701_s24] sm:$0x3]  ;;  %s8006_s20 = smov [#allocation23]  }
0x1bef   : > { %v6999_v41 = vpack.c.bf16 %v1386_v40, %v1384_v39  ;;  %v5395_v39 = vld [vmem:[%s8580_s5 + $0x90] sm:$0xff]  ;;  %s6083_s3 = sshll.u32 %s8006_s20, 4  ;;  %s6084_s3 = int_to_ptr.vmem [resolvable:$true] %s6083_s3 }
0x1bf0   : > { %6715 = vmatmul.mubr.msk.f32.vlgmr.msra.gmra.mrb[34].mxu1 %vm1476_vm4, %v4373_v54  ;;  %v4689_v42 = vpop.f32.mrb[26].mxu0  ;;  %v5258_v54 = vrot.slane %v5253_v51, %v8755_v18  ;;  %v5399_v40 = vld [vmem:[%s8580_s5 + $0xb0] sm:$0xff]  ;;  %s7886_s24 = scalar_lea.vmem %s6084_s3, 64  ;;  %p7893_p4 = scmp.lt.s32.totalorder %s6084_s3, %s6084_s3 }
0x1bf1   : > { %v6726_v53 = vpop.f32.mrb[27].mxu0  ;;  %4518 = vmatprep.mubr.f32.mxu1 %v7996_v15  ;;  %6990 = vmatpush1.bf16.msra.mxu1 %v6989_v17  ;;  %v5378_v17 = vld [vmem:[%s8580_s5 + $0x8] sm:$0xff]  ;;  %p7887_p0 = scmp.ne.s32.totalorder %s6084_s3, %s7886_s24  ;;  %p7894_p10 = scmp.lt.s32.totalorder %s7886_s24, %s7886_s24 }
0x1bf2   : > { %6992 = vmatprep.subr.bf16.mxu1 %v6991_v6  ;;  %v7003_v6 = vpack.c.bf16 %v5382_v4, %v5378_v17  ;;  %v5415_v17 = vld [vmem:[%s8580_s5 + $0x130] sm:$0xff]  ;;  %v5418_v4 = vld [vmem:[%s8580_s5 + $0x148] sm:$0xff] }
0x1bf3   : > { %p7888_p11 = pnand %p7887_p0, %p7375_p13  ;;  %p7895_p7 = por %p7894_p10, %p7893_p4 }
0x1bf4   : > { %v4843_v55 = vpop.f32.mrb[28].mxu0  ;;  %7004 = vmatprep.subr.bf16.mxu0 %v7003_v6  ;;  %v5420_v6 = vld [vmem:[%s8580_s5 + $0x158] sm:$0xff] }
0x1bf5   : > { %v6731_v56 = vpop.f32.mrb[29].mxu0  ;;  %v4847_v57 = vsel %vm1464_vm2, %v4843_v55, -inf  ;;  %p7889_p1 = pneg %p7888_p11 }
0x1bf6   : > { %4848 = vmax.xlane.f32.xlu1 %v4847_v57 }
0x1bf7   : > { %p7896_p3 = pnand %p7895_p7, %p7889_p1 }
0x1bf8   : > { %v5085_v59 = vpop.f32.mrb[30].mxu0 }
0x1bf9   : > { %v6741_v28 = vpop.f32.mrb[31].mxu0  ;;  %v5089_v60 = vsel %vm1464_vm2, %v5085_v59, -inf }
0x1bfa   : > { %5090 = vmax.xlane.f32.xlu1 %v5089_v60  ;;  %v7496_v28 = vld [vmem:[#allocation23] sm:$0xf] }
0x1c83   : > { %v4849_v7 = vpop.xlane.xlu1 %4848 }
0x1c84   : > { %v4850_v8 = vsub.f32 %v4843_v55, %v4849_v7  ;;  %v5384_v7 = vld [vmem:[%s8580_s5 + $0x38] sm:$0xff] }
0x1c86   : > { %v4851_v26 = vmul.f32 1.442695, %v4850_v8  ;;  %v5377_v8 = vld [vmem:[%s8580_s5] sm:$0xff] }
0x1c87   : > { %v5091_v10 = vpop.xlane.xlu1 %5090 }
0x1c88   : > { %7484 = vpow2.f32 %v4851_v26  ;;  %v5092_v12 = vsub.f32 %v5085_v59, %v5091_v10  ;;  %v5381_v26 = vld [vmem:[%s8580_s5 + $0x20] sm:$0xff]  ;;  %v7067_v10 = vpack.c.bf16 %v5384_v7, %v5380_v5  ;;  %v5422_v5 = vld [vmem:[%s8580_s5 + $0x168] sm:$0xff]  ;;  %v5424_v7 = vld [vmem:[%s8580_s5 + $0x178] sm:$0xff] }
0x1c8a   : > { %v5093_v13 = vmul.f32 1.442695, %v5092_v12  ;;  %v7005_v12 = vpack.c.bf16 %v5381_v26, %v5377_v8 }
0x1c8c   : > { %7486 = vpow2.f32 %v5093_v13  ;;  %v5379_v13 = vld [vmem:[%s8580_s5 + $0x10] sm:$0xff] }
0x1c92   : > { %v7485_v52 = vpop.eup %7484 }
0x1c93   : > { %v4853_v14 = vsel %vm1464_vm2, %v7485_v52, 0.0 }
0x1c94   : > { %4854 = vadd.xlane.f32.xlu1 %v4853_v14  ;;  %v5386_v14 = vld [vmem:[%s8580_s5 + $0x48] sm:$0xff] }
0x1c96   : > { %v7487_v16 = vpop.eup %7486 }
0x1c97   : > { %v5095_v21 = vsel %vm1464_vm2, %v7487_v16, 0.0 }
0x1c98   : > { %5096 = vadd.xlane.f32.xlu1 %v5095_v21  ;;  %v5390_v21 = vld [vmem:[%s8580_s5 + $0x68] sm:$0xff] }
0x1ca9   : > { %4858 = vrot.lane.b32.xlu1 %v9055_v23, %s8003_s10 }
0x1cc3   : > { %v4447_v24 = vpop.f32.mrb[34].mxu1 }
0x1cc4   : > { %v6716_v30 = vpop.f32.mrb[35].mxu1  ;;  %6493 = vmatmul.mubr.msk.f32.vlgmr.msra.gmra.mrb[12].mxu1 %vm1387_vm1, %v4447_v24  ;;  %v7071_v24 = vpack.c.bf16 %v5392_v46, %v5388_v22  ;;  %v5430_v22 = vld [vmem:[%s8580_s5 + $0x1a8] sm:$0xff]  ;;  %v5428_v46 = vld [vmem:[%s8580_s5 + $0x198] sm:$0xff] }
0x1cc5   : > { %6994 = vmatpush1.bf16.msra.mxu1 %v6993_v48  ;;  %4760 = vmatprep.mubr.f32.mxu1 %v7996_v15  ;;  %v7007_v48 = vpack.c.bf16 %v5390_v21, %v5386_v14  ;;  %v5385_v30 = vld [vmem:[%s8580_s5 + $0x40] sm:$0xff]  ;;  %v7087_v14 = vpack.c.bf16 %v5424_v7, %v5420_v6  ;;  %v5426_v21 = vld [vmem:[%s8580_s5 + $0x188] sm:$0xff] }
0x1cc6   : > { %6732 = vmatprep.subr.mxu1 %v7996_v15 }
0x1ccc   : > { %6498 = vmatmul.mubr.msk.f32.vlgmr.msra.gmra.mrb[12].mxu1 %vm1387_vm1, %v4689_v42  ;;  %v5262_v42 = vrot.slane %v5253_v51, %v9009_v58  ;;  %v5405_v51 = vld [vmem:[%s8580_s5 + $0xe0] sm:$0xff] }
0x1ccd   : > { %6734 = vmatprep.mubr.msk.f32.mxu1 %vm7997_vm0, %v7996_v15 }
0x1d21   : > { %v4855_v23 = vpop.xlane.xlu1 %4854 }
0x1d22   : > { %7488 = vrcp.f32 %v4855_v23  ;;  %v5389_v23 = vld [vmem:[%s8580_s5 + $0x60] sm:$0xff] }
0x1d23   : > { %v7009_v19 = vpack.c.bf16 %v5389_v23, %v5385_v30  ;;  %v7027_v23 = vpack.c.bf16 %v5430_v22, %v5426_v21  ;;  %v5453_v21 = vld [vmem:[%s8580_s5 + $0x260] sm:$0xff] }
0x1d25   : > { %v5097_v29 = vpop.xlane.xlu1 %5096 }
0x1d26   : > { %7490 = vrcp.f32 %v5097_v29  ;;  %v5391_v29 = vld [vmem:[%s8580_s5 + $0x70] sm:$0xff] }
0x1d27   : > { %v7073_v34 = vpack.c.bf16 %v5391_v29, %v5387_v31  ;;  %v5425_v31 = vld [vmem:[%s8580_s5 + $0x180] sm:$0xff]  ;;  %v5427_v29 = vld [vmem:[%s8580_s5 + $0x190] sm:$0xff] }
0x1d29   : > { %v4859_v33 = vpop.permute.xlu1 %4858 }
0x1d2a   : > { %6733 = vmatpush3.msk.msra.mxu1 %vm1480_vm3, %v4859_v33  ;;  %v5398_v33 = vld [vmem:[%s8580_s5 + $0xa8] sm:$0xff] }
0x1d2b   : > { %6996 = vmatprep.subr.bf16.mxu1 %v6995_v32  ;;  %v5394_v32 = vld [vmem:[%s8580_s5 + $0x88] sm:$0xff] }
0x1d2c   : > { %v7489_v37 = vpop.eup %7488  ;;  %v7011_v36 = vpack.c.bf16 %v5398_v33, %v5394_v32  ;;  %v5431_v33 = vld [vmem:[%s8580_s5 + $0x1b0] sm:$0xff] }
0x1d2d   : > { %v4857_v38 = vmul.f32 %v7489_v37, %v7485_v52  ;;  %v5383_v52 = vld [vmem:[%s8580_s5 + $0x30] sm:$0xff]  ;;  %v5396_v37 = vld [vmem:[%s8580_s5 + $0x98] sm:$0xff] }
0x1d2f   : > { %6735 = vmatmul.mubr.msk.f32.vlgmr.msra.gmra.mrb[36].mxu1 %vm1476_vm4, %v4857_v38  ;;  %v5393_v38 = vld [vmem:[%s8580_s5 + $0x80] sm:$0xff] }
0x1d30   : > { %v7491_v9 = vpop.eup %7490  ;;  %6998 = vmatpush1.bf16.msra.mxu1 %v6997_v11  ;;  %5002 = vmatprep.mubr.f32.mxu1 %v7996_v15  ;;  %v5400_v11 = vld [vmem:[%s8580_s5 + $0xb8] sm:$0xff] }
0x1d31   : > { %v5099_v25 = vmul.f32 %v7491_v9, %v7487_v16  ;;  %7000 = vmatprep.subr.bf16.mxu1 %v6999_v41  ;;  %v7069_v16 = vpack.c.bf16 %v5383_v52, %v5379_v13  ;;  %v7075_v9 = vpack.c.bf16 %v5400_v11, %v5396_v37  ;;  %v5421_v13 = vld [vmem:[%s8580_s5 + $0x160] sm:$0xff]  ;;  %v5419_v52 = vld [vmem:[%s8580_s5 + $0x150] sm:$0xff]  ;;  %v5436_v37 = vld [vmem:[%s8580_s5 + $0x1d8] sm:$0xff] }
0x1d32   : > { %v5440_v11 = vld [vmem:[%s8580_s5 + $0x1f8] sm:$0xff] }
0x1d33   : > { %6745 = vmatmul.mubr.msk.f32.vlgmr.msra.gmra.mrb[32].mxu0 %vm1476_vm4, %v5099_v25  ;;  %v5397_v25 = vld [vmem:[%s8580_s5 + $0xa0] sm:$0xff] }
0x1d34   : > { %7006 = vmatpush1.bf16.msra.mxu0 %v7005_v12  ;;  %v7013_v41 = vpack.c.bf16 %v5397_v25, %v5393_v38  ;;  %v5417_v12 = vld [vmem:[%s8580_s5 + $0x140] sm:$0xff] }
0x1d35   : > { %7008 = vmatprep.subr.bf16.mxu0 %v7007_v48  ;;  %v5432_v48 = vld [vmem:[%s8580_s5 + $0x1b8] sm:$0xff] }
0x1d36   : > { %v7091_v32 = vpack.c.bf16 %v5432_v48, %v5428_v46  ;;  %v5451_v48 = vld [vmem:[%s8580_s5 + $0x250] sm:$0xff] }
0x1d38   : > { %7010 = vmatpush1.bf16.msra.mxu0 %v7009_v19  ;;  %v5429_v19 = vld [vmem:[%s8580_s5 + $0x1a0] sm:$0xff] }
0x1d39   : > { %7012 = vmatprep.subr.bf16.mxu0 %v7011_v36  ;;  %v5438_v36 = vld [vmem:[%s8580_s5 + $0x1e8] sm:$0xff]  ;;  %v7029_v38 = vpack.c.bf16 %v5429_v19, %v5425_v31  ;;  %v5460_v19 = vld [vmem:[%s8580_s5 + $0x298] sm:$0xff] }
0x1d3a   : > { %v5462_v31 = vld [vmem:[%s8580_s5 + $0x2a8] sm:$0xff] }
0x1d3c   : > { %7014 = vmatpush1.bf16.msra.mxu0 %v7013_v41  ;;  %v5435_v41 = vld [vmem:[%s8580_s5 + $0x1d0] sm:$0xff] }
0x1e02   : > { %v4931_v27 = vpop.f32.mrb[36].mxu1 }
0x1e03   : > { %v6736_v61 = vpop.f32.mrb[37].mxu1  ;;  %6503 = vmatmul.mubr.msk.f32.vlgmr.msra.gmra.mrb[12].mxu1 %vm1387_vm1, %v4931_v27  ;;  %v7077_v27 = vpack.c.bf16 %v5399_v40, %v5395_v39  ;;  %v5433_v39 = vld [vmem:[%s8580_s5 + $0x1c0] sm:$0xff] }
0x1e04   : > { %7002 = vmatpush1.bf16.msra.mxu1 %v7001_v47  ;;  %5244 = vmatprep.mubr.f32.mxu1 %v7996_v15  ;;  %v5404_v47 = vld [vmem:[%s8580_s5 + $0xd8] sm:$0xff]  ;;  %v7015_v61 = vpack.c.bf16 %v5406_v45, %v5402_v44  ;;  %v5437_v40 = vld [vmem:[%s8580_s5 + $0x1e0] sm:$0xff]  ;;  %v7095_v44 = vpack.c.bf16 %v5440_v11, %v5436_v37  ;;  %v5439_v45 = vld [vmem:[%s8580_s5 + $0x1f0] sm:$0xff] }
0x1e05   : > { %7068 = vmatprep.subr.bf16.mxu1 %v7067_v10  ;;  %v7023_v10 = vpack.c.bf16 %v5422_v5, %v5418_v4  ;;  %v5459_v11 = vld [vmem:[%s8580_s5 + $0x290] sm:$0xff] }
0x1e06   : > { %v5173_v49 = vpop.f32.mrb[32].mxu0  ;;  %7016 = vmatprep.subr.bf16.mxu0 %v7015_v61  ;;  %v5444_v61 = vld [vmem:[%s8580_s5 + $0x218] sm:$0xff] }
0x1e07   : > { %v6746_v50 = vpop.f32.mrb[33].mxu0 }
0x1e08   : > { %v5401_v50 = vld [vmem:[%s8580_s5 + $0xc0] sm:$0xff] }
0x1e0b   : > { %6508 = vmatmul.mubr.msk.f32.vlgmr.msra.gmra.mrb[12].mxu1 %vm1387_vm1, %v5173_v49  ;;  %v5408_v49 = vld [vmem:[%s8580_s5 + $0xf8] sm:$0xff] }
0x1e0c   : > { %7070 = vmatpush1.bf16.msra.mxu1 %v7069_v16  ;;  %v5423_v16 = vld [vmem:[%s8580_s5 + $0x170] sm:$0xff] }
0x1e0d   : > { %7072 = vmatprep.subr.bf16.mxu1 %v7071_v24  ;;  %v7025_v24 = vpack.c.bf16 %v5421_v13, %v5417_v12  ;;  %v7089_v30 = vpack.c.bf16 %v5423_v16, %v5419_v52  ;;  %v5450_v12 = vld [vmem:[%s8580_s5 + $0x248] sm:$0xff]  ;;  %v5449_v16 = vld [vmem:[%s8580_s5 + $0x240] sm:$0xff] }
0x1e0e   : > { %v5454_v13 = vld [vmem:[%s8580_s5 + $0x268] sm:$0xff]  ;;  %v7041_v46 = vpack.c.bf16 %v5453_v21, %v5449_v16  ;;  %v5492_v21 = vld [vmem:[%s8580_s5 + $0x398] sm:$0xff] }
0x1e0f   : > { %v7039_v52 = vpack.c.bf16 %v5454_v13, %v5450_v12  ;;  %v5483_v13 = vld [vmem:[%s8580_s5 + $0x350] sm:$0xff]  ;;  %v5494_v16 = vld [vmem:[%s8580_s5 + $0x3a8] sm:$0xff] }
0x1e10   : > { %7074 = vmatpush1.bf16.msra.mxu1 %v7073_v34  ;;  %v5434_v34 = vld [vmem:[%s8580_s5 + $0x1c8] sm:$0xff] }
0x1e11   : > { %7076 = vmatprep.subr.bf16.mxu1 %v7075_v9  ;;  %v7093_v9 = vpack.c.bf16 %v5431_v33, %v5427_v29  ;;  %v7031_v25 = vpack.c.bf16 %v5438_v36, %v5434_v34  ;;  %v5457_v33 = vld [vmem:[%s8580_s5 + $0x280] sm:$0xff] }
0x1e12   : > { %v5461_v34 = vld [vmem:[%s8580_s5 + $0x2a0] sm:$0xff] }
0x1e13   : > { %v7045_v37 = vpack.c.bf16 %v5461_v34, %v5457_v33  ;;  %v5502_v33 = vld [vmem:[%s8580_s5 + $0x3e8] sm:$0xff]  ;;  %v5500_v34 = vld [vmem:[%s8580_s5 + $0x3d8] sm:$0xff] }
0x1e14   : > { %7078 = vmatpush1.bf16.msra.mxu1 %v7077_v27  ;;  %v5446_v27 = vld [vmem:[%s8580_s5 + $0x228] sm:$0xff] }
0x1ede   : > { %v5246_v53 = vpop.f32.mrb[12].mxu1 }
0x1edf   : > { %v5265_v55 = vadd.f32 %v5258_v54, %v5246_v53  ;;  %v5248_v56 = vpop.f32.mrb[13].mxu1  ;;  %v7079_v54 = vpack.c.bf16 %v5408_v49, %v5404_v47  ;;  %v5407_v53 = vld [vmem:[%s8580_s5 + $0xf0] sm:$0xff]  ;;  %v5442_v47 = vld [vmem:[%s8580_s5 + $0x208] sm:$0xff]  ;;  %v5448_v49 = vld [vmem:[%s8580_s5 + $0x238] sm:$0xff] }
0x1ee0   : > { %v5266_v57 = vadd.f32 %v5262_v42, %v5248_v56  ;;  %v5403_v42 = vld [vmem:[%s8580_s5 + $0xd0] sm:$0xff]  ;;  %v5414_v56 = vld [vmem:[%s8580_s5 + $0x128] sm:$0xff] }
0x1ee1   : > { %7080 = vmatprep.subr.bf16.mxu1 %v7079_v54  ;;  %v7035_v54 = vpack.c.bf16 %v5446_v27, %v5442_v47  ;;  %v5469_v47 = vld [vmem:[%s8580_s5 + $0x2e0] sm:$0xff] }
0x1ee2   : > { %v5269_v15 = vcombine.low %v5265_v55, %v5266_v57  ;;  %v5410_v55 = vld [vmem:[%s8580_s5 + $0x108] sm:$0xff]  ;;  %v5412_v57 = vld [vmem:[%s8580_s5 + $0x118] sm:$0xff] }
0x1ee4   : > { %v5276_v59 = vrot.slane %v5269_v15, %v8634_v43  ;;  %v5416_v15 = vld [vmem:[%s8580_s5 + $0x138] sm:$0xff] }
0x1ee6   : > { %v9268_v60 = vadd.f32 %v7496_v28, %v5276_v59  ;;  %v7017_v59 = vpack.c.bf16 %v5405_v51, %v5401_v50  ;;  %v7081_v28 = vpack.c.bf16 %v5407_v53, %v5403_v42  ;;  %v7033_v50 = vpack.c.bf16 %v5437_v40, %v5433_v39  ;;  %v5441_v42 = vld [vmem:[%s8580_s5 + $0x200] sm:$0xff]  ;;  %v5470_v39 = vld [vmem:[%s8580_s5 + $0x2e8] sm:$0xff]  ;;  %v5468_v40 = vld [vmem:[%s8580_s5 + $0x2d8] sm:$0xff] }
0x1ee7   : > { %v7097_v51 = vpack.c.bf16 %v5439_v45, %v5435_v41  ;;  %v5445_v53 = vld [vmem:[%s8580_s5 + $0x220] sm:$0xff] }
0x1ee8   : > { %v5288_v62 = vrot.slane %v9268_v60, %v8634_v43  ;;  %7018 = vmatpush1.bf16.msra.mxu0 %v7017_v59  ;;  %7082 = vmatpush1.bf16.msra.mxu1 %v7081_v28  ;;  %v8005_v28 = vmov 269488144   ;;  %v5465_v45 = vld [vmem:[%s8580_s5 + $0x2c0] sm:$0xff] }
0x1eea   : > { %v5289_v63 = vcombine.high %v5288_v62, %v5288_v62  ;;  %v5292_v0 = vsel %vm1480_vm3, %v5288_v62, 0.0  ;;  %v7019_v62 = vpack.c.bf16 %v5414_v56, %v5410_v55  ;;  %v7099_v55 = vpack.c.bf16 %v5448_v49, %v5444_v61  ;;  %v5443_v56 = vld [vmem:[%s8580_s5 + $0x210] sm:$0xff] }
0x1eeb   : > { %v7049_v61 = vpack.c.bf16 %v5469_v47, %v5465_v45  ;;  %v5467_v49 = vld [vmem:[%s8580_s5 + $0x2d0] sm:$0xff]  ;;  %v5687_v45 = vld [vmem:[%s8589_s21 + $0x18] sm:$0xff] }
0x1eec   : > { %v5293_v1 = vsel %vm1480_vm3, %v5289_v63, 0.0  ;;  %v5409_v63 = vld [vmem:[%s8580_s5 + $0x100] sm:$0xff]  ;;  %7020 = vmatprep.subr.bf16.mxu0 %v7019_v62  ;;  %v5301_v62 = vunpack.c.l.s4 %v8005_v28 }
0x1eed   : > { %v5294_v2 = vadd.f32 %v5293_v1, %v5292_v0  ;;  %v5413_v0 = vld [vmem:[%s8580_s5 + $0x120] sm:$0xff]  ;;  %v5411_v1 = vld [vmem:[%s8580_s5 + $0x110] sm:$0xff] }
0x1eee   : > { %v7021_v8 = vpack.c.bf16 %v5413_v0, %v5409_v63  ;;  %v7085_v26 = vpack.c.bf16 %v5415_v17, %v5411_v1  ;;  %v5302_v63 = vunpack.c.0.s8 %v5301_v62  ;;  %v5475_v62 = vld [vmem:[%s8580_s5 + $0x310] sm:$0xff] }
0x1eef   : > { %5295 = vadd.xlane.f32.xlu0 %v5294_v2  ;;  %v7083_v2 = vpack.c.bf16 %v5416_v15, %v5412_v57  ;;  %v5447_v57 = vld [vmem:[%s8580_s5 + $0x230] sm:$0xff]  ;;  %v7037_v15 = vpack.c.bf16 %v5445_v53, %v5441_v42  ;;  %v5478_v42 = vld [vmem:[%s8580_s5 + $0x328] sm:$0xff]  ;;  %v5476_v53 = vld [vmem:[%s8580_s5 + $0x318] sm:$0xff] }
0x1ef0   : > { %7022 = vmatpush1.bf16.msra.mxu0 %v7021_v8  ;;  %v7101_v59 = vpack.c.bf16 %v5447_v57, %v5443_v56  ;;  %v9347_v0 = vsub.s32 %v5302_v63, %v8627_v35  ;;  %v5480_v56 = vld [vmem:[%s8580_s5 + $0x338] sm:$0xff]  ;;  %v5473_v57 = vld [vmem:[%s8580_s5 + $0x300] sm:$0xff]  ;;  %v5479_v63 = vld [vmem:[%s8580_s5 + $0x330] sm:$0xff] }
0x1ef1   : > { %7084 = vmatprep.subr.bf16.mxu1 %v7083_v2  ;;  %7024 = vmatprep.subr.bf16.mxu0 %v7023_v10 }
0x1ef2   : > { %7086 = vmatpush1.bf16.msra.mxu1 %v7085_v26 }
0x1ef3   : > { %7088 = vmatprep.subr.bf16.mxu1 %v7087_v14  ;;  %v5456_v14 = vld [vmem:[%s8580_s5 + $0x278] sm:$0xff] }
0x1ef4   : > { %7026 = vmatpush1.bf16.msra.mxu0 %v7025_v24  ;;  %v5455_v24 = vld [vmem:[%s8580_s5 + $0x270] sm:$0xff] }
0x1ef5   : > { %7028 = vmatprep.subr.bf16.mxu0 %v7027_v23  ;;  %v5458_v23 = vld [vmem:[%s8580_s5 + $0x288] sm:$0xff] }
0x1ef6   : > { %7090 = vmatpush1.bf16.msra.mxu1 %v7089_v30  ;;  %v7105_v30 = vpack.c.bf16 %v5455_v24, %v5451_v48  ;;  %v7043_v29 = vpack.c.bf16 %v5462_v31, %v5458_v23  ;;  %v5489_v48 = vld [vmem:[%s8580_s5 + $0x380] sm:$0xff]  ;;  %v5491_v31 = vld [vmem:[%s8580_s5 + $0x390] sm:$0xff] }
0x1ef7   : > { %7092 = vmatprep.subr.bf16.mxu1 %v7091_v32  ;;  %v5464_v32 = vld [vmem:[%s8580_s5 + $0x2b8] sm:$0xff]  ;;  %v5493_v24 = vld [vmem:[%s8580_s5 + $0x3a0] sm:$0xff] }
0x1ef8   : > { %7030 = vmatpush1.bf16.msra.mxu0 %v7029_v38  ;;  %v7107_v36 = vpack.c.bf16 %v5464_v32, %v5460_v19  ;;  %v5463_v38 = vld [vmem:[%s8580_s5 + $0x2b0] sm:$0xff]  ;;  %v7061_v23 = vpack.c.bf16 %v5493_v24, %v5489_v48  ;;  %v5699_v48 = vld [vmem:[%s8589_s21 + $0x78] sm:$0xff] }
0x1ef9   : > { %7032 = vmatprep.subr.bf16.mxu0 %v7031_v25  ;;  %v5466_v25 = vld [vmem:[%s8580_s5 + $0x2c8] sm:$0xff]  ;;  %v5495_v19 = vld [vmem:[%s8580_s5 + $0x3b0] sm:$0xff] }
0x1efa   : > { %7094 = vmatpush1.bf16.msra.mxu1 %v7093_v9  ;;  %v7109_v9 = vpack.c.bf16 %v5463_v38, %v5459_v11  ;;  %v7047_v41 = vpack.c.bf16 %v5470_v39, %v5466_v25  ;;  %v7125_v32 = vpack.c.bf16 %v5495_v19, %v5491_v31  ;;  %v5497_v38 = vld [vmem:[%s8580_s5 + $0x3c0] sm:$0xff]  ;;  %v5499_v25 = vld [vmem:[%s8580_s5 + $0x3d0] sm:$0xff]  ;;  %v5698_v31 = vld [vmem:[%s8589_s21 + $0x70] sm:$0xff] }
0x1efb   : > { %7096 = vmatprep.subr.bf16.mxu1 %v7095_v44  ;;  %v5472_v44 = vld [vmem:[%s8580_s5 + $0x2f8] sm:$0xff]  ;;  %v5701_v19 = vld [vmem:[%s8589_s21 + $0x88] sm:$0xff] }
0x1efc   : > { %7034 = vmatpush1.bf16.msra.mxu0 %v7033_v50  ;;  %v7111_v27 = vpack.c.bf16 %v5472_v44, %v5468_v40  ;;  %v5471_v50 = vld [vmem:[%s8580_s5 + $0x2f0] sm:$0xff] }
0x1efd   : > { %7036 = vmatprep.subr.bf16.mxu0 %v7035_v54  ;;  %v5474_v54 = vld [vmem:[%s8580_s5 + $0x308] sm:$0xff]  ;;  %v5503_v40 = vld [vmem:[%s8580_s5 + $0x3f0] sm:$0xff] }
0x1efe   : > { %7098 = vmatpush1.bf16.msra.mxu1 %v7097_v51  ;;  %v7113_v51 = vpack.c.bf16 %v5471_v50, %v5467_v49  ;;  %v5685_v44 = vld [vmem:[%s8589_s21 + $0x8] sm:$0xff]  ;;  %v5279_v50 = vld [vmem:[%s710_s13] sm:$0x3] }
0x1eff   : > { %7100 = vmatprep.subr.bf16.mxu1 %v7099_v55  ;;  %v7051_v55 = vpack.c.bf16 %v5478_v42, %v5474_v54  ;;  %v7131_v47 = vpack.c.bf16 %v5687_v45, %v5685_v44  ;;  %v5343_v54 = vrot.slane %v5279_v50, %v8755_v18  ;;  %v5347_v42 = vrot.slane %v5279_v50, %v9009_v58 }
0x1f00   : > { %7038 = vmatpush1.bf16.msra.mxu0 %v7037_v15  ;;  %v5477_v15 = vld [vmem:[%s8580_s5 + $0x320] sm:$0xff] }
0x1f01   : > { %7040 = vmatprep.subr.bf16.mxu0 %v7039_v52  ;;  %v7053_v28 = vpack.c.bf16 %v5477_v15, %v5473_v57 }
0x1f02   : > { %7102 = vmatpush1.bf16.msra.mxu1 %v7101_v59  ;;  %v7115_v59 = vpack.c.bf16 %v5480_v56, %v5476_v53  ;;  %v5348_v56 = vcombine.low %v5343_v54, %v5347_v42  ;;  %v5712_v54 = vld [vmem:[%s8589_s21 + $0xe0] sm:$0xff]  ;;  %v5714_v42 = vld [vmem:[%s8589_s21 + $0xf0] sm:$0xff] }
0x1f04   : > { %7042 = vmatpush1.bf16.msra.mxu0 %v7041_v46  ;;  %v5496_v46 = vld [vmem:[%s8580_s5 + $0x3b8] sm:$0xff] }
0x1f05   : > { %7044 = vmatprep.subr.bf16.mxu0 %v7043_v29  ;;  %v5498_v29 = vld [vmem:[%s8580_s5 + $0x3c8] sm:$0xff] }
0x1f08   : > { %7046 = vmatpush1.bf16.msra.mxu0 %v7045_v37  ;;  %v7063_v37 = vpack.c.bf16 %v5502_v33, %v5498_v29  ;;  %v5703_v29 = vld [vmem:[%s8589_s21 + $0x98] sm:$0xff] }
0x1f09   : > { %7048 = vmatprep.subr.bf16.mxu0 %v7047_v41  ;;  %v7129_v41 = vpack.c.bf16 %v5503_v40, %v5499_v25  ;;  %v7147_v33 = vpack.c.bf16 %v5703_v29, %v5701_v19  ;;  %v5704_v25 = vld [vmem:[%s8589_s21 + $0xa0] sm:$0xff]  ;;  %v5709_v40 = vld [vmem:[%s8589_s21 + $0xc8] sm:$0xff] }
0x1f0c   : > { %7050 = vmatpush1.bf16.msra.mxu0 %v7049_v61 }
0x1f0d   : > { %7052 = vmatprep.subr.bf16.mxu0 %v7051_v55 }
0x1f10   : > { %7054 = vmatpush1.bf16.msra.mxu0 %v7053_v28  ;;  %v5355_v28 = vrot.slane %v5348_v56, %v8634_v43  ;;  %v7161_v56 = vpack.c.bf16 %v5714_v42, %v5712_v54 }
0x1f7c   : > { %v5296_v1 = vpop.xlane.xlu0 %5295 }
0x1f7d   : > { %v5298_v2 = vmul.f32 0.00390625, %v5296_v1  ;;  %v7117_v1 = vpack.c.bf16 %v5479_v63, %v5475_v62 }
0x1f7f   : > { %v5306_v17 = vrot.slane %v5298_v2, %v9347_v0  ;;  %v5482_v2 = vld [vmem:[%s8580_s5 + $0x348] sm:$0xff] }
0x1f81   : > { %v9351_v4 = vsub.f32 %v9268_v60, %v5306_v17  ;;  %v5452_v60 = vld [vmem:[%s8580_s5 + $0x258] sm:$0xff]  ;;  %v5486_v17 = vld [vmem:[%s8580_s5 + $0x368] sm:$0xff] }
0x1f82   : > { %v7103_v22 = vpack.c.bf16 %v5456_v14, %v5452_v60  ;;  %v5487_v60 = vld [vmem:[%s8580_s5 + $0x370] sm:$0xff]  ;;  %v5490_v14 = vld [vmem:[%s8580_s5 + $0x388] sm:$0xff] }
0x1f83   : > { %v5309_v5 = vmul.f32 %v9351_v4, %v9351_v4  ;;  %v7121_v52 = vpack.c.bf16 %v5487_v60, %v5483_v13  ;;  %v5690_v13 = vld [vmem:[%s8589_s21 + $0x30] sm:$0xff]  ;;  %v5693_v60 = vld [vmem:[%s8589_s21 + $0x48] sm:$0xff] }
0x1f84   : > { %7104 = vmatprep.subr.bf16.mxu1 %v7103_v22  ;;  %v7059_v22 = vpack.c.bf16 %v5494_v16, %v5490_v14 }
0x1f85   : > { %v5317_v6 = vrot.slane %v5309_v5, %v8634_v43  ;;  %7106 = vmatpush1.bf16.msra.mxu1 %v7105_v30  ;;  %v5484_v5 = vld [vmem:[%s8580_s5 + $0x358] sm:$0xff]  ;;  %v7123_v30 = vpack.c.bf16 %v5496_v46, %v5492_v21  ;;  %v5692_v21 = vld [vmem:[%s8589_s21 + $0x40] sm:$0xff]  ;;  %v5697_v46 = vld [vmem:[%s8589_s21 + $0x68] sm:$0xff] }
0x1f86   : > { %7108 = vmatprep.subr.bf16.mxu1 %v7107_v36  ;;  %v5504_v36 = vld [vmem:[%s8580_s5 + $0x3f8] sm:$0xff] }
0x1f87   : > { %v5318_v7 = vcombine.high %v5317_v6, %v5317_v6  ;;  %v5321_v8 = vsel %vm1480_vm3, %v5317_v6, 0.0  ;;  %v7055_v6 = vpack.c.bf16 %v5486_v17, %v5482_v2  ;;  %v7127_v11 = vpack.c.bf16 %v5504_v36, %v5500_v34  ;;  %v5684_v17 = vld [vmem:[%s8589_s21] sm:$0xff]  ;;  %v5702_v36 = vld [vmem:[%s8589_s21 + $0x90] sm:$0xff] }
0x1f88   : > { %v5700_v34 = vld [vmem:[%s8589_s21 + $0x80] sm:$0xff] }
0x1f89   : > { %v5322_v26 = vsel %vm1480_vm3, %v5318_v7, 0.0  ;;  %7110 = vmatpush1.bf16.msra.mxu1 %v7109_v9  ;;  %v5488_v7 = vld [vmem:[%s8580_s5 + $0x378] sm:$0xff]  ;;  %7056 = vmatprep.subr.bf16.mxu0 %v7055_v6  ;;  %v5501_v9 = vld [vmem:[%s8580_s5 + $0x3e0] sm:$0xff] }
0x1f8a   : > { %v5323_v10 = vadd.f32 %v5322_v26, %v5321_v8  ;;  %7112 = vmatprep.subr.bf16.mxu1 %v7111_v27  ;;  %v5481_v8 = vld [vmem:[%s8580_s5 + $0x340] sm:$0xff]  ;;  %v7065_v39 = vpack.c.bf16 %v5501_v9, %v5497_v38  ;;  %v7149_v38 = vpack.c.bf16 %v5702_v36, %v5700_v34  ;;  %v5741_v34 = vld [vmem:[%s8589_s21 + $0x1c8] sm:$0xff] }
0x1f8b   : > { %v5485_v26 = vld [vmem:[%s8580_s5 + $0x360] sm:$0xff] }
0x1f8c   : > { %5324 = vadd.xlane.f32.xlu1 %v5323_v10  ;;  %v7119_v10 = vpack.c.bf16 %v5488_v7, %v5484_v5  ;;  %v7057_v12 = vpack.c.bf16 %v5485_v26, %v5481_v8  ;;  %v5686_v5 = vld [vmem:[%s8589_s21 + $0x10] sm:$0xff]  ;;  %v5689_v7 = vld [vmem:[%s8589_s21 + $0x28] sm:$0xff]  ;;  %v5691_v8 = vld [vmem:[%s8589_s21 + $0x38] sm:$0xff] }
0x1f8d   : > { %7114 = vmatpush1.bf16.msra.mxu1 %v7113_v51  ;;  %v5280_v51 = vld [vmem:[%s719_s23] sm:$0x3]  ;;  %v5743_v36 = vld [vmem:[%s8589_s21 + $0x1d8] sm:$0xff] }
0x1f8e   : > { %7116 = vmatprep.subr.bf16.mxu1 %v7115_v59  ;;  %7058 = vmatpush1.bf16.msra.mxu0 %v7057_v12  ;;  %v5362_v53 = vrot.slane %v5280_v51, %v8755_v18  ;;  %v5366_v55 = vrot.slane %v5280_v51, %v9009_v58  ;;  %v5688_v12 = vld [vmem:[%s8589_s21 + $0x20] sm:$0xff] }
0x1f8f   : > { %7060 = vmatprep.subr.bf16.mxu0 %v7059_v22  ;;  %v7137_v14 = vpack.c.bf16 %v5690_v13, %v5688_v12  ;;  %v5694_v22 = vld [vmem:[%s8589_s21 + $0x50] sm:$0xff]  ;;  %v5729_v12 = vld [vmem:[%s8589_s21 + $0x168] sm:$0xff]  ;;  %v5731_v13 = vld [vmem:[%s8589_s21 + $0x178] sm:$0xff] }
0x1f90   : > { %v5367_v57 = vcombine.low %v5362_v53, %v5366_v55  ;;  %v7141_v24 = vpack.c.bf16 %v5694_v22, %v5692_v21  ;;  %v5717_v53 = vld [vmem:[%s8589_s21 + $0x108] sm:$0xff]  ;;  %v5719_v55 = vld [vmem:[%s8589_s21 + $0x118] sm:$0xff] }
0x1f91   : > { %7118 = vmatpush1.bf16.msra.mxu1 %v7117_v1  ;;  %v5733_v21 = vld [vmem:[%s8589_s21 + $0x188] sm:$0xff]  ;;  %v5735_v22 = vld [vmem:[%s8589_s21 + $0x198] sm:$0xff] }
0x1f92   : > { %7120 = vmatprep.subr.bf16.mxu1 %v7119_v10  ;;  %7062 = vmatpush1.bf16.msra.mxu0 %v7061_v23  ;;  %v5374_v63 = vrot.slane %v5367_v57, %v8634_v43  ;;  %v7133_v10 = vpack.c.bf16 %v5686_v5, %v5684_v17  ;;  %v5696_v23 = vld [vmem:[%s8589_s21 + $0x60] sm:$0xff]  ;;  %v7163_v57 = vpack.c.bf16 %v5719_v55, %v5717_v53  ;;  %v5722_v5 = vld [vmem:[%s8589_s21 + $0x130] sm:$0xff] }
0x1f93   : > { %7064 = vmatprep.subr.bf16.mxu0 %v7063_v37  ;;  %v5705_v37 = vld [vmem:[%s8589_s21 + $0xa8] sm:$0xff]  ;;  %v5720_v17 = vld [vmem:[%s8589_s21 + $0x120] sm:$0xff] }
0x1f95   : > { %7122 = vmatpush1.bf16.msra.mxu1 %v7121_v52  ;;  %v5695_v52 = vld [vmem:[%s8589_s21 + $0x58] sm:$0xff] }
0x1f96   : > { %7124 = vmatprep.subr.bf16.mxu1 %v7123_v30  ;;  %7066 = vmatpush1.bf16.msra.mxu0 %v7065_v39  ;;  %v7139_v16 = vpack.c.bf16 %v5695_v52, %v5693_v60  ;;  %v7143_v30 = vpack.c.bf16 %v5699_v48, %v5697_v46  ;;  %v5706_v39 = vld [vmem:[%s8589_s21 + $0xb0] sm:$0xff]  ;;  %v7175_v52 = vpack.c.bf16 %v5731_v13, %v5729_v12  ;;  %v5759_v12 = vld [vmem:[%s8589_s21 + $0x258] sm:$0xff] }
0x1f97   : > { %7132 = vmatprep.subr.bf16.mxu0 %v7131_v47  ;;  %v7153_v44 = vpack.c.bf16 %v5706_v39, %v5704_v25  ;;  %v5708_v47 = vld [vmem:[%s8589_s21 + $0xc0] sm:$0xff]  ;;  %v7179_v48 = vpack.c.bf16 %v5735_v22, %v5733_v21  ;;  %v5745_v39 = vld [vmem:[%s8589_s21 + $0x1e8] sm:$0xff]  ;;  %v5763_v21 = vld [vmem:[%s8589_s21 + $0x278] sm:$0xff] }
0x1f99   : > { %7126 = vmatpush1.bf16.msra.mxu1 %v7125_v32  ;;  %v7145_v32 = vpack.c.bf16 %v5698_v31, %v5696_v23  ;;  %v5737_v23 = vld [vmem:[%s8589_s21 + $0x1a8] sm:$0xff]  ;;  %v5739_v31 = vld [vmem:[%s8589_s21 + $0x1b8] sm:$0xff] }
0x1f9a   : > { %7128 = vmatprep.subr.bf16.mxu1 %v7127_v11  ;;  %v5707_v11 = vld [vmem:[%s8589_s21 + $0xb8] sm:$0xff]  ;;  %v7183_v29 = vpack.c.bf16 %v5739_v31, %v5737_v23 }
0x1f9b   : > { %v7151_v9 = vpack.c.bf16 %v5707_v11, %v5705_v37  ;;  %v7187_v11 = vpack.c.bf16 %v5743_v36, %v5741_v34  ;;  %v5767_v23 = vld [vmem:[%s8589_s21 + $0x298] sm:$0xff] }
0x1f9c   : > { %v5771_v34 = vld [vmem:[%s8589_s21 + $0x2b8] sm:$0xff] }
0x1f9d   : > { %7130 = vmatpush1.bf16.msra.mxu1 %v7129_v41  ;;  %v5711_v41 = vld [vmem:[%s8589_s21 + $0xd8] sm:$0xff] }
0x1f9e   : > { %v7155_v45 = vpack.c.bf16 %v5711_v41, %v5709_v40  ;;  %v5747_v40 = vld [vmem:[%s8589_s21 + $0x1f8] sm:$0xff] }
0x1f9f   : > { %v7191_v41 = vpack.c.bf16 %v5747_v40, %v5745_v39 }
0x2019   : > { %v5325_v27 = vpop.xlane.xlu1 %5324 }
0x201a   : > { %v5326_v61 = vmul.f32 0.00390625, %v5325_v27  ;;  %v5710_v27 = vld [vmem:[%s8589_s21 + $0xd0] sm:$0xff] }
0x201b   : > { %v7157_v50 = vpack.c.bf16 %v5710_v27, %v5708_v47  ;;  %v5749_v27 = vld [vmem:[%s8589_s21 + $0x208] sm:$0xff] }
0x201c   : > { %v5327_v49 = vadd.f32 1e-05, %v5326_v61  ;;  %v5713_v61 = vld [vmem:[%s8589_s21 + $0xe8] sm:$0xff] }
0x201e   : > { %7492 = vrsqrt.f32 %v5327_v49  ;;  %v5715_v49 = vld [vmem:[%s8589_s21 + $0xf8] sm:$0xff] }
0x201f   : > { %v7159_v51 = vpack.c.bf16 %v5715_v49, %v5713_v61  ;;  %v5751_v61 = vld [vmem:[%s8589_s21 + $0x218] sm:$0xff] }
0x2020   : > { %v7195_v49 = vpack.c.bf16 %v5751_v61, %v5749_v27 }
0x2028   : > { %v7493_v15 = vpop.eup %7492 }
0x2029   : > { %v5336_v59 = vrot.slane %v7493_v15, %v9347_v0  ;;  %v5716_v15 = vld [vmem:[%s8589_s21 + $0x100] sm:$0xff] }
0x202b   : > { %v5338_v62 = vmul.f32 %v5336_v59, %v9351_v4  ;;  %v7135_v4 = vpack.c.bf16 %v5691_v8, %v5689_v7  ;;  %v5718_v59 = vld [vmem:[%s8589_s21 + $0x110] sm:$0xff]  ;;  %v5727_v7 = vld [vmem:[%s8589_s21 + $0x158] sm:$0xff]  ;;  %v7169_v8 = vpack.c.bf16 %v5722_v5, %v5720_v17 }
0x202c   : > { %v5755_v17 = vld [vmem:[%s8589_s21 + $0x238] sm:$0xff] }
0x202d   : > { %v5357_v1 = vmul.f32 %v5355_v28, %v5338_v62  ;;  %v5721_v28 = vld [vmem:[%s8589_s21 + $0x128] sm:$0xff]  ;;  %v5723_v62 = vld [vmem:[%s8589_s21 + $0x138] sm:$0xff] }
0x202f   : > { %v9428_v2 = vadd.f32 %v5374_v63, %v5357_v1  ;;  %v7165_v63 = vpack.c.bf16 %v5718_v59, %v5716_v15  ;;  %v7167_v1 = vpack.c.bf16 %v5723_v62, %v5721_v28  ;;  %v5748_v59 = vld [vmem:[%s8589_s21 + $0x200] sm:$0xff]  ;;  %v5750_v28 = vld [vmem:[%s8589_s21 + $0x210] sm:$0xff] }
0x2031   : > { %v5534_v6 = vrot.slane %v9428_v2, %v8634_v43 }
0x2033   : > { %v5535_v26 = vcombine.high %v5534_v6, %v5534_v6 }
0x2035   : > { %5602 = vmatprep.mubr.f32.mxu0 %v5535_v26  ;;  %5673 = vmatprep.mubr.f32.mxu1 %v5535_v26 }
0x2036   : > { %5603 = vmatmul.mubr.f32.vlgmr.msra.gmra.mrb[34].mxu0 %v5534_v6  ;;  %5674 = vmatmul.mubr.f32.vlgmr.msra.gmra.mrb[38].mxu1 %v5534_v6  ;;  %v5725_v6 = vld [vmem:[%s8589_s21 + $0x148] sm:$0xff] }
0x2037   : > { %7134 = vmatpush1.bf16.msra.mxu0 %v7133_v10  ;;  %v7171_v26 = vpack.c.bf16 %v5727_v7, %v5725_v6  ;;  %v5724_v10 = vld [vmem:[%s8589_s21 + $0x140] sm:$0xff]  ;;  %v7197_v6 = vpack.c.bf16 %v5750_v28, %v5748_v59  ;;  %v5785_v59 = vld [vmem:[%s8589_s21 + $0x328] sm:$0xff]  ;;  %v5787_v28 = vld [vmem:[%s8589_s21 + $0x338] sm:$0xff] }
0x2038   : > { %7136 = vmatprep.subr.bf16.mxu0 %v7135_v4  ;;  %v5726_v4 = vld [vmem:[%s8589_s21 + $0x150] sm:$0xff] }
0x2039   : > { %v7173_v60 = vpack.c.bf16 %v5726_v4, %v5724_v10  ;;  %v5757_v4 = vld [vmem:[%s8589_s21 + $0x248] sm:$0xff] }
0x203b   : > { %7138 = vmatpush1.bf16.msra.mxu0 %v7137_v14  ;;  %v5728_v14 = vld [vmem:[%s8589_s21 + $0x160] sm:$0xff] }
0x203c   : > { %7140 = vmatprep.subr.bf16.mxu0 %v7139_v16  ;;  %v5730_v16 = vld [vmem:[%s8589_s21 + $0x170] sm:$0xff] }
0x203d   : > { %v7177_v46 = vpack.c.bf16 %v5730_v16, %v5728_v14  ;;  %v5758_v14 = vld [vmem:[%s8589_s21 + $0x250] sm:$0xff]  ;;  %v5761_v16 = vld [vmem:[%s8589_s21 + $0x268] sm:$0xff] }
0x203f   : > { %7142 = vmatpush1.bf16.msra.mxu0 %v7141_v24  ;;  %v5732_v24 = vld [vmem:[%s8589_s21 + $0x180] sm:$0xff] }
0x2040   : > { %7144 = vmatprep.subr.bf16.mxu0 %v7143_v30  ;;  %v5734_v30 = vld [vmem:[%s8589_s21 + $0x190] sm:$0xff] }
0x2041   : > { %v7181_v19 = vpack.c.bf16 %v5734_v30, %v5732_v24  ;;  %v5762_v24 = vld [vmem:[%s8589_s21 + $0x270] sm:$0xff]  ;;  %v5765_v30 = vld [vmem:[%s8589_s21 + $0x288] sm:$0xff] }
0x2043   : > { %7146 = vmatpush1.bf16.msra.mxu0 %v7145_v32  ;;  %v5736_v32 = vld [vmem:[%s8589_s21 + $0x1a0] sm:$0xff] }
0x2044   : > { %7148 = vmatprep.subr.bf16.mxu0 %v7147_v33  ;;  %v5738_v33 = vld [vmem:[%s8589_s21 + $0x1b0] sm:$0xff] }
0x2045   : > { %v7185_v37 = vpack.c.bf16 %v5738_v33, %v5736_v32  ;;  %v5766_v32 = vld [vmem:[%s8589_s21 + $0x290] sm:$0xff]  ;;  %v5769_v33 = vld [vmem:[%s8589_s21 + $0x2a8] sm:$0xff] }
0x2047   : > { %7150 = vmatpush1.bf16.msra.mxu0 %v7149_v38  ;;  %v5740_v38 = vld [vmem:[%s8589_s21 + $0x1c0] sm:$0xff] }
0x2048   : > { %7152 = vmatprep.subr.bf16.mxu0 %v7151_v9  ;;  %v5742_v9 = vld [vmem:[%s8589_s21 + $0x1d0] sm:$0xff] }
0x2049   : > { %v7189_v25 = vpack.c.bf16 %v5742_v9, %v5740_v38  ;;  %v5770_v38 = vld [vmem:[%s8589_s21 + $0x2b0] sm:$0xff]  ;;  %v5773_v9 = vld [vmem:[%s8589_s21 + $0x2c8] sm:$0xff] }
0x204b   : > { %7154 = vmatpush1.bf16.msra.mxu0 %v7153_v44  ;;  %v5744_v44 = vld [vmem:[%s8589_s21 + $0x1e0] sm:$0xff] }
0x204c   : > { %7156 = vmatprep.subr.bf16.mxu0 %v7155_v45  ;;  %v5746_v45 = vld [vmem:[%s8589_s21 + $0x1f0] sm:$0xff] }
0x204d   : > { %v7193_v47 = vpack.c.bf16 %v5746_v45, %v5744_v44  ;;  %v5774_v44 = vld [vmem:[%s8589_s21 + $0x2d0] sm:$0xff]  ;;  %v5777_v45 = vld [vmem:[%s8589_s21 + $0x2e8] sm:$0xff] }
0x204f   : > { %7158 = vmatpush1.bf16.msra.mxu0 %v7157_v50  ;;  %v9497_v50 = vld [vmem:[%s8586_s30] sm:$0xf] }
0x2050   : > { %7160 = vmatprep.subr.bf16.mxu0 %v7159_v51  ;;  %v5510_v51 = vrot.slane %v9497_v50, %v8755_v18  ;;  %v5514_v54 = vrot.slane %v9497_v50, %v9009_v58  ;;  %v5522_v42 = vrot.slane %v9497_v50, %v1081_v3 }
0x2053   : > { %7162 = vmatpush1.bf16.msra.mxu0 %v7161_v56 }
0x2054   : > { %7164 = vmatprep.subr.bf16.mxu0 %v7163_v57 }
0x2057   : > { %7166 = vmatpush1.bf16.msra.mxu0 %v7165_v63 }
0x2058   : > { %7168 = vmatprep.subr.bf16.mxu0 %v7167_v1  ;;  %v5753_v1 = vld [vmem:[%s8589_s21 + $0x228] sm:$0xff] }
0x2059   : > { %v7199_v7 = vpack.c.bf16 %v5755_v17, %v5753_v1  ;;  %v5784_v1 = vld [vmem:[%s8589_s21 + $0x320] sm:$0xff]  ;;  %v5786_v17 = vld [vmem:[%s8589_s21 + $0x330] sm:$0xff] }
0x205b   : > { %7170 = vmatpush1.bf16.msra.mxu0 %v7169_v8  ;;  %v5752_v8 = vld [vmem:[%s8589_s21 + $0x220] sm:$0xff] }
0x205c   : > { %7172 = vmatprep.subr.bf16.mxu0 %v7171_v26  ;;  %v5754_v26 = vld [vmem:[%s8589_s21 + $0x230] sm:$0xff] }
0x205d   : > { %v7201_v13 = vpack.c.bf16 %v5754_v26, %v5752_v8  ;;  %v5788_v8 = vld [vmem:[%s8589_s21 + $0x340] sm:$0xff]  ;;  %v5790_v26 = vld [vmem:[%s8589_s21 + $0x350] sm:$0xff] }
0x205f   : > { %7174 = vmatpush1.bf16.msra.mxu0 %v7173_v60  ;;  %v7203_v60 = vpack.c.bf16 %v5759_v12, %v5757_v4  ;;  %v5795_v4 = vld [vmem:[%s8589_s21 + $0x378] sm:$0xff]  ;;  %v7237_v12 = vpack.c.bf16 %v5790_v26, %v5788_v8 }
0x2060   : > { %7176 = vmatprep.subr.bf16.mxu0 %v7175_v52  ;;  %v5756_v52 = vld [vmem:[%s8589_s21 + $0x240] sm:$0xff] }
0x2061   : > { %v7205_v22 = vpack.c.bf16 %v5758_v14, %v5756_v52  ;;  %v5794_v52 = vld [vmem:[%s8589_s21 + $0x370] sm:$0xff]  ;;  %v5797_v14 = vld [vmem:[%s8589_s21 + $0x388] sm:$0xff] }
0x2063   : > { %7178 = vmatpush1.bf16.msra.mxu0 %v7177_v46  ;;  %v7207_v46 = vpack.c.bf16 %v5763_v21, %v5761_v16  ;;  %v5799_v16 = vld [vmem:[%s8589_s21 + $0x398] sm:$0xff] }
0x2064   : > { %7180 = vmatprep.subr.bf16.mxu0 %v7179_v48  ;;  %v5760_v48 = vld [vmem:[%s8589_s21 + $0x260] sm:$0xff] }
0x2065   : > { %v7209_v31 = vpack.c.bf16 %v5762_v24, %v5760_v48  ;;  %v5798_v48 = vld [vmem:[%s8589_s21 + $0x390] sm:$0xff]  ;;  %v5801_v24 = vld [vmem:[%s8589_s21 + $0x3a8] sm:$0xff] }
0x2067   : > { %7182 = vmatpush1.bf16.msra.mxu0 %v7181_v19  ;;  %v7211_v19 = vpack.c.bf16 %v5767_v23, %v5765_v30  ;;  %v5803_v30 = vld [vmem:[%s8589_s21 + $0x3b8] sm:$0xff] }
0x2068   : > { %7184 = vmatprep.subr.bf16.mxu0 %v7183_v29  ;;  %v5764_v29 = vld [vmem:[%s8589_s21 + $0x280] sm:$0xff] }
0x2069   : > { %v7213_v36 = vpack.c.bf16 %v5766_v32, %v5764_v29  ;;  %v5802_v29 = vld [vmem:[%s8589_s21 + $0x3b0] sm:$0xff]  ;;  %v5805_v32 = vld [vmem:[%s8589_s21 + $0x3c8] sm:$0xff] }
0x206b   : > { %7186 = vmatpush1.bf16.msra.mxu0 %v7185_v37  ;;  %v7215_v37 = vpack.c.bf16 %v5771_v34, %v5769_v33  ;;  %v5807_v33 = vld [vmem:[%s8589_s21 + $0x3d8] sm:$0xff] }
0x206c   : > { %7188 = vmatprep.subr.bf16.mxu0 %v7187_v11  ;;  %v5768_v11 = vld [vmem:[%s8589_s21 + $0x2a0] sm:$0xff] }
0x206d   : > { %v7217_v39 = vpack.c.bf16 %v5770_v38, %v5768_v11  ;;  %v5806_v11 = vld [vmem:[%s8589_s21 + $0x3d0] sm:$0xff]  ;;  %v5809_v38 = vld [vmem:[%s8589_s21 + $0x3e8] sm:$0xff] }
0x206f   : > { %7190 = vmatpush1.bf16.msra.mxu0 %v7189_v25  ;;  %v5775_v25 = vld [vmem:[%s8589_s21 + $0x2d8] sm:$0xff] }
0x2070   : > { %7192 = vmatprep.subr.bf16.mxu0 %v7191_v41  ;;  %v7219_v40 = vpack.c.bf16 %v5775_v25, %v5773_v9  ;;  %v5772_v41 = vld [vmem:[%s8589_s21 + $0x2c0] sm:$0xff]  ;;  %v5811_v9 = vld [vmem:[%s8589_s21 + $0x3f8] sm:$0xff] }
0x2071   : > { %v7221_v27 = vpack.c.bf16 %v5774_v44, %v5772_v41  ;;  %v5808_v41 = vld [vmem:[%s8589_s21 + $0x3e0] sm:$0xff]  ;;  %v5810_v44 = vld [vmem:[%s8589_s21 + $0x3f0] sm:$0xff] }
0x2073   : > { %7194 = vmatpush1.bf16.msra.mxu0 %v7193_v47  ;;  %v5779_v47 = vld [vmem:[%s8589_s21 + $0x2f8] sm:$0xff] }
0x2074   : > { %7196 = vmatprep.subr.bf16.mxu0 %v7195_v49  ;;  %v7223_v61 = vpack.c.bf16 %v5779_v47, %v5777_v45  ;;  %v5776_v49 = vld [vmem:[%s8589_s21 + $0x2e0] sm:$0xff]  ;;  %v7257_v45 = vpack.c.bf16 %v5810_v44, %v5808_v41 }
0x2109   : > { %v5604_v53 = vpop.f32.mrb[34].mxu0  ;;  %v9506_v55 = vpop.f32.mrb[38].mxu1 }
0x210a   : > { %v5605_v56 = vadd.f32 %v5604_v53, %v5510_v51  ;;  %v5606_v57 = vpop.f32.mrb[35].mxu0  ;;  %v5677_v15 = vpop.f32.mrb[39].mxu1  ;;  %v5778_v51 = vld [vmem:[%s8589_s21 + $0x2f0] sm:$0xff] }
0x210b   : > { %v5607_v62 = vadd.f32 %v5606_v57, %v5514_v54  ;;  %v5678_v63 = vadd.f32 %v5677_v15, %v5522_v42  ;;  %v5781_v54 = vld [vmem:[%s8589_s21 + $0x308] sm:$0xff]  ;;  %v5783_v42 = vld [vmem:[%s8589_s21 + $0x318] sm:$0xff]  ;;  %v7225_v53 = vpack.c.bf16 %v5778_v51, %v5776_v49  ;;  %v5780_v57 = vld [vmem:[%s8589_s21 + $0x300] sm:$0xff] }
0x210c   : > { %v5680_v3 = vmax.f32 %v5605_v56, 0.0  ;;  %v7227_v56 = vpack.c.bf16 %v5783_v42, %v5781_v54  ;;  %v5782_v15 = vld [vmem:[%s8589_s21 + $0x310] sm:$0xff] }
0x210d   : > { %v5681_v5 = vmax.f32 %v5607_v62, 0.0  ;;  %v5683_v10 = vmax.f32 %v5678_v63, 0.0  ;;  %v7229_v62 = vpack.c.bf16 %v5782_v15, %v5780_v57  ;;  %v7231_v63 = vpack.c.bf16 %v5787_v28, %v5785_v59 }
0x210f   : > { %5888 = vmatprep.mubr.f32.mxu0 %v5681_v5  ;;  %v5789_v5 = vld [vmem:[%s8589_s21 + $0x348] sm:$0xff] }
0x2110   : > { %5889 = vmatmul.mubr.f32.vlgmr.msra.gmra.mrb[36].mxu0 %v5680_v3  ;;  %v7233_v3 = vpack.c.bf16 %v5786_v17, %v5784_v1 }
0x2111   : > { %7198 = vmatpush1.bf16.msra.mxu0 %v7197_v6  ;;  %5959 = vmatprep.mubr.f32.mxu0 %v5683_v10  ;;  %v5791_v6 = vld [vmem:[%s8589_s21 + $0x358] sm:$0xff]  ;;  %v5793_v10 = vld [vmem:[%s8589_s21 + $0x368] sm:$0xff] }
0x2112   : > { %7200 = vmatprep.subr.bf16.mxu0 %v7199_v7  ;;  %v7235_v7 = vpack.c.bf16 %v5791_v6, %v5789_v5 }
0x2115   : > { %7202 = vmatpush1.bf16.msra.mxu0 %v7201_v13  ;;  %v7239_v13 = vpack.c.bf16 %v5795_v4, %v5793_v10 }
0x2116   : > { %7204 = vmatprep.subr.bf16.mxu0 %v7203_v60  ;;  %v5792_v60 = vld [vmem:[%s8589_s21 + $0x360] sm:$0xff] }
0x2117   : > { %v7241_v21 = vpack.c.bf16 %v5794_v52, %v5792_v60 }
0x2119   : > { %7206 = vmatpush1.bf16.msra.mxu0 %v7205_v22  ;;  %v7243_v22 = vpack.c.bf16 %v5799_v16, %v5797_v14 }
0x211a   : > { %7208 = vmatprep.subr.bf16.mxu0 %v7207_v46  ;;  %v5796_v46 = vld [vmem:[%s8589_s21 + $0x380] sm:$0xff] }
0x211b   : > { %v7245_v23 = vpack.c.bf16 %v5798_v48, %v5796_v46 }
0x211d   : > { %7210 = vmatpush1.bf16.msra.mxu0 %v7209_v31  ;;  %v7247_v31 = vpack.c.bf16 %v5803_v30, %v5801_v24 }
0x211e   : > { %7212 = vmatprep.subr.bf16.mxu0 %v7211_v19  ;;  %v5800_v19 = vld [vmem:[%s8589_s21 + $0x3a0] sm:$0xff] }
0x211f   : > { %v7249_v34 = vpack.c.bf16 %v5802_v29, %v5800_v19 }
0x2121   : > { %7214 = vmatpush1.bf16.msra.mxu0 %v7213_v36  ;;  %v7251_v36 = vpack.c.bf16 %v5807_v33, %v5805_v32 }
0x2122   : > { %7216 = vmatprep.subr.bf16.mxu0 %v7215_v37  ;;  %v5804_v37 = vld [vmem:[%s8589_s21 + $0x3c0] sm:$0xff] }
0x2123   : > { %v7253_v25 = vpack.c.bf16 %v5806_v11, %v5804_v37 }
0x2125   : > { %7218 = vmatpush1.bf16.msra.mxu0 %v7217_v39  ;;  %v5518_v39 = vrot.slane %v9497_v50, %v1077_v20 }
0x2126   : > { %7220 = vmatprep.subr.bf16.mxu0 %v7219_v40  ;;  %v7255_v40 = vpack.c.bf16 %v5811_v9, %v5809_v38 }
0x2127   : > { %v5676_v47 = vadd.f32 %v9506_v55, %v5518_v39 }
0x2129   : > { %7222 = vmatpush1.bf16.msra.mxu0 %v7221_v27  ;;  %v5682_v27 = vmax.f32 %v5676_v47, 0.0 }
0x212a   : > { %7224 = vmatprep.subr.bf16.mxu0 %v7223_v61  ;;  %v5812_v61 = vld [vmem:[%s755_s17] sm:$0x3] }
0x212b   : > { %v5817_v49 = vrot.slane %v5812_v61, %v8755_v18  ;;  %v5821_v35 = vrot.slane %v5812_v61, %v9009_v58 }
0x212d   : > { %7226 = vmatpush1.bf16.msra.mxu0 %v7225_v53 }
0x212e   : > { %7228 = vmatprep.subr.bf16.mxu0 %v7227_v56 }
0x2131   : > { %7230 = vmatpush1.bf16.msra.mxu0 %v7229_v62 }
0x2132   : > { %7232 = vmatprep.subr.bf16.mxu0 %v7231_v63 }
0x2135   : > { %7234 = vmatpush1.bf16.msra.mxu0 %v7233_v3 }
0x2136   : > { %7236 = vmatprep.subr.bf16.mxu0 %v7235_v7 }
0x2139   : > { %7238 = vmatpush1.bf16.msra.mxu0 %v7237_v12  ;;  %v5978_v12 = vld [vmem:[%s764_s15] sm:$0x3] }
0x213a   : > { %7240 = vmatprep.subr.bf16.mxu0 %v7239_v13  ;;  %v5979_v13 = vld [vmem:[%s773_s19] sm:$0x3]  ;;  %v6041_v60 = vrot.slane %v5978_v12, %v8755_v18  ;;  %v6045_v52 = vrot.slane %v5978_v12, %v9009_v58 }
0x213b   : > { %v6060_v14 = vrot.slane %v5979_v13, %v8755_v18  ;;  %v6064_v16 = vrot.slane %v5979_v13, %v9009_v58 }
0x213d   : > { %7242 = vmatpush1.bf16.msra.mxu0 %v7241_v21  ;;  %v6046_v21 = vcombine.low %v6041_v60, %v6045_v52 }
0x213e   : > { %7244 = vmatprep.subr.bf16.mxu0 %v7243_v22  ;;  %v6065_v22 = vcombine.low %v6060_v14, %v6064_v16 }
0x213f   : > { %v6053_v24 = vrot.slane %v6046_v21, %v8634_v43 }
0x2141   : > { %7246 = vmatpush1.bf16.msra.mxu0 %v7245_v23  ;;  %v6072_v23 = vrot.slane %v6065_v22, %v8634_v43 }
0x2142   : > { %7248 = vmatprep.subr.bf16.mxu0 %v7247_v31 }
0x2145   : > { %7250 = vmatpush1.bf16.msra.mxu0 %v7249_v34 }
0x2146   : > { %7252 = vmatprep.subr.bf16.mxu0 %v7251_v36 }
0x2149   : > { %7254 = vmatpush1.bf16.msra.mxu0 %v7253_v25 }
0x214a   : > { %7256 = vmatprep.subr.bf16.mxu0 %v7255_v40 }
0x214d   : > { %7258 = vmatpush1.bf16.msra.mxu0 %v7257_v45 }
0x2150   : > { %5960 = vmatmul.mubr.f32.vlgmr.msra.gmra.mrb[36].mxu0 %v5682_v27 }
0x2223   : > { %v5961_v51 = vpop.f32.mrb[36].mxu0 }
0x2224   : > { %v7259_v20 = vadd.f32 %v5961_v51, %v5817_v49  ;;  %v5963_v50 = vpop.f32.mrb[37].mxu0 }
0x2225   : > { %v7260_v54 = vadd.f32 %v5963_v50, %v5821_v35 }
0x2227   : > { %v5968_v42 = vcombine.low %v7259_v20, %v7260_v54 }
0x2229   : > { %v5975_v53 = vrot.slane %v5968_v42, %v8634_v43 }
0x222b   : > { %v5977_v56 = vadd.f32 %v5975_v53, %v9428_v2 }
0x222d   : > { %v5987_v55 = vrot.slane %v5977_v56, %v8634_v43 }
0x222f   : > { %v5988_v57 = vcombine.high %v5987_v55, %v5987_v55  ;;  %v5991_v15 = vsel %vm1480_vm3, %v5987_v55, 0.0 }
0x2231   : > { %v5992_v59 = vsel %vm1480_vm3, %v5988_v57, 0.0 }
0x2232   : > { %v5993_v28 = vadd.f32 %v5992_v59, %v5991_v15 }
0x2234   : > { %5994 = vadd.xlane.f32.xlu0 %v5993_v28 }
0x22c1   : > { %v5995_v62 = vpop.xlane.xlu0 %5994 }
0x22c2   : > { %v5996_v63 = vmul.f32 0.00390625, %v5995_v62 }
0x22c4   : > { %v6004_v1 = vrot.slane %v5996_v63, %v9347_v0 }
0x22c6   : > { %v6006_v17 = vsub.f32 %v5977_v56, %v6004_v1 }
0x22c8   : > { %v6007_v5 = vmul.f32 %v6006_v17, %v6006_v17 }
0x22ca   : > { %v6015_v6 = vrot.slane %v6007_v5, %v8634_v43 }
0x22cc   : > { %v6016_v2 = vcombine.high %v6015_v6, %v6015_v6  ;;  %v6019_v3 = vsel %vm1480_vm3, %v6015_v6, 0.0 }
0x22ce   : > { %v6020_v7 = vsel %vm1480_vm3, %v6016_v2, 0.0 }
0x22cf   : > { %v6021_v8 = vadd.f32 %v6020_v7, %v6019_v3 }
0x22d1   : > { %6022 = vadd.xlane.f32.xlu0 %v6021_v8 }
0x235e   : > { %v6023_v26 = vpop.xlane.xlu0 %6022 }
0x235f   : > { %v6024_v10 = vmul.f32 0.00390625, %v6023_v26 }
0x2361   : > { %v6025_v4 = vadd.f32 1e-05, %v6024_v10 }
0x2363   : > { %7494 = vrsqrt.f32 %v6025_v4 }
0x236d   : > { %v7495_v46 = vpop.eup %7494 }
0x236e   : > { %v6034_v48 = vrot.slane %v7495_v46, %v9347_v0 }
0x2370   : > { %v6036_v30 = vmul.f32 %v6034_v48, %v6006_v17 }
0x2372   : > { %v6055_v31 = vmul.f32 %v6053_v24, %v6036_v30 }
0x2374   : > { %v6074_v19 = vadd.f32 %v6072_v23, %v6055_v31 }
0x2376   : > { %6075 = vst [vmem:[#allocation23] sm:$0xf] %v6074_v19 }
0x2377   : > { %7899 = shalt.err (!%p7896_p3)
}
0x2378   : > { %s9714_s5 = sld [smem:[#allocation42_spill]] }
0x237e   : > { %s7900_s30 = scalar_lea.hbm %s9714_s5, 64 }
0x237f   : > { %p7901_p9 = scmp.ne.s32.totalorder %s9714_s5, %s7900_s30  ;;  %p7906_p8 = scmp.lt.u32.totalorder %s7900_s30, %s9714_s5 }
0x2381   : > { %p7902_p5 = pnand %p7901_p9, %p7375_p13 }
0x2383   : > { %p7903_p2 = pneg %p7902_p5 }
0x2385   : > { %p7908_p6 = pnand %p7906_p8, %p7903_p2 }
0x2387   : > { %7911 = shalt.err (!%p7908_p6)
}
0x2388   : > { %7328 = dma.vmem_to_hbm [thread:$0]  (%p7375_p13), %s6084_s3, 64, %s9714_s5, [#allocation4]  }
0x2389   : > { %7957 = dma.done.wait (%p7375_p13), [#allocation4], 64  }
0x238a   : > { %7959 = vsyncadd (%p7375_p13), [#allocation4], 4294967232 }
0x238b PF: > { %s9715_s28 = sld [smem:[#allocation33_spill]]  ;;  %s9716_s1 = sld [smem:[#allocation32_spill]] }
0x238c   : > { %s9717_s27 = sld [smem:[#allocation34_spill]]  ;;  %s9718_s25 = smov %s7966_s26 }
0x2391   : > { %p40_p12 = scmp.ge.s32.totalorder %s9715_s28, 14   ;;  %s9719_s26 = smov %s9716_s1 }
0x2393   :  { %42 = sbr.rel (!%p40_p12) target bundleno = 24 (0x18), region = 249 }
0x239a   :  { %6096 = vsyncpa [#allocation3], 1 }
0x239b   :  { %6098 = vsyncpa [#allocation3 + $0x1], 1 }
0x239c   :  { %6099 = vsyncpa [#allocation6], 1 }
0x239d   :  { %6101 = vsyncpa [#allocation6 + $0x1], 1 }
0x239e   :  { %6102 = vsyncpa [#allocation9], 1 }
0x239f   :  { %6104 = vsyncpa [#allocation9 + $0x1], 1 }
0x23a0   :  { %6105 = vsyncpa [#allocation12], 1 }
0x23a1   :  { %6107 = vsyncpa [#allocation12 + $0x1], 1 }
0x23a2   :  { %6108 = vsyncpa [#allocation15], 1 }
0x23a3   :  { %6110 = vsyncpa [#allocation15 + $0x1], 1 }
0x23a4   :  { %6111 = vsyncpa [#allocation18], 1 }
0x23a5   :  { %6113 = vsyncpa [#allocation18 + $0x1], 1 }
0x23a6   :  { %6114 = vsyncpa [#allocation21], 1 }
0x23a7   :  { %6116 = vsyncpa [#allocation21 + $0x1], 1 }
0x23a8   :  { %6117 = vsyncpa [#allocation4], 1 }
0x23a9   :  { %6119 = vsyncpa [#allocation4 + $0x1], 1 }

</bundles_post_ra>
